<compile_context>
chip_gen: v7x
topology: tpu7x:2x2x1
jax: 0.10.0
libtpu: 0.0.40
codegen_flags: <defaults>
</compile_context>

<pallas_src>
import jax
import jax.numpy as jnp
from jax.experimental import pallas as pl
from jax.experimental.pallas import tpu as pltpu


def _leaky(x, slope=0.01):
    # PyTorch nn.LeakyReLU default negative_slope = 0.01
    return jnp.where(x >= 0, x, slope * x)


# ----------------------------------------------------------------------------- fused kernel


def _make_kernel(use_take: bool, n_valid_rows, block_e: int):
    """Build the fused kernel. `use_take` / `n_valid_rows` are static (Python-level) flags."""

    def kernel(src_ref, dst_ref, e_ref, h_ref,
               w1e_ref, w1m_ref, w2_ref, w3_ref, vec_ref, o_ref):
        h = h_ref[...]                                         # [n_nodes, node_dim] f32, resident

        # --- u_add_v gather: m = h[src] + h[dst] ------------------------------------------
        if use_take:
            # Large-graph path: O(E*D) VMEM gather instead of O(E*N) one-hot build.
            # TODO(synk): relies on Mosaic dynamic-gather lowering of jnp.take; fall back to a
            #             node-chunked one-hot matmul on older jax versions.
            src_idx = src_ref[...].reshape(-1)
            dst_idx = dst_ref[...].reshape(-1)
            m = jnp.take(h, src_idx, axis=0) + jnp.take(h, dst_idx, axis=0)
        else:
            # Small-graph path: one-hot incidence, gather collapses into ONE MXU matmul.
            te = src_ref.shape[0]
            n = h.shape[0]
            node_ids = jax.lax.broadcasted_iota(jnp.int32, (te, n), 1)
            inc = ((node_ids == src_ref[...]).astype(h.dtype)
                   + (node_ids == dst_ref[...]).astype(h.dtype))       # [te, n] f32 (0/1/2)
            m = jnp.dot(inc, h, preferred_element_type=jnp.float32)    # [te, node_dim]

        # Packed per-feature vectors (one resident (8, out_dim) tile).
        b1 = vec_ref[0:1, :]
        b2 = vec_ref[1:2, :]
        b3 = vec_ref[2:3, :]
        scale = vec_ref[3:4, :]
        shift = vec_ref[4:5, :]

        # --- Linear1 on cat([e, m]) folded into two partial matmuls ------------------------
        if e_ref.shape[1] == 1:
            # 1-dim edge feature (distance): broadcast multiply instead of a K=1 matmul.
            x = e_ref[...] * w1e_ref[...]
        else:
            x = jnp.dot(e_ref[...], w1e_ref[...], preferred_element_type=jnp.float32)
        x = x + jnp.dot(m, w1m_ref[...], preferred_element_type=jnp.float32) + b1
        x = _leaky(x)

        # --- Linear2 / Linear3 (f32 dots, f32 accumulation) --------------------------------
        x = _leaky(jnp.dot(x, w2_ref[...], preferred_element_type=jnp.float32) + b2)
        x = _leaky(jnp.dot(x, w3_ref[...], preferred_element_type=jnp.float32) + b3)

        # --- Dropout (identity, eval) + BatchNorm1d (eval) folded to scale/shift ------------
        y = x * scale + shift

        if n_valid_rows is not None:
            # Zero padded edge rows so the padded output is safe for downstream reductions.
            rows = (pl.program_id(0) * block_e
                    + jax.lax.broadcasted_iota(jnp.int32, y.shape, 0))
            y = jnp.where(rows < n_valid_rows, y, 0.0)

        o_ref[...] = y.astype(o_ref.dtype)

    return kernel


# ----------------------------------------------------------------------------- wrapper


def dti_conv_graph3_layer(atom_feats, bond_feats, src, dst, params, *,
                          block_e=1024, out_dtype=jnp.float32, gather_mode="auto"):
    """Fused DTIConvGraph3Layer forward (eval mode).

    atom_feats: [N, node_dim] f32 (bg.ndata['h'])
    bond_feats: [E, edge_dim] f32 (bg.edata['e'])
    src, dst  : [E] int32 edge endpoints
    returns   : [E, out_dim] of `out_dtype`
    """
    n_nodes, node_dim = atom_feats.shape
    n_edges, edge_dim = bond_feats.shape
    out_dim = params["b1"].shape[-1]

    n_blocks = pl.cdiv(n_edges, block_e)
    e_pad = n_blocks * block_e
    pad = e_pad - n_edges

    if gather_mode == "auto":
        # One-hot MXU gather only while the [block_e, n_nodes] intermediate stays small.
        gather_mode = "onehot" if n_nodes <= 1024 else "take"
    use_take = gather_mode == "take"

    # O(E) index columns instead of O(E*N) one-hot incidence matrices in HBM.
    src_i = jnp.pad(src.astype(jnp.int32).reshape(-1, 1), ((0, pad), (0, 0)))
    dst_i = jnp.pad(dst.astype(jnp.int32).reshape(-1, 1), ((0, pad), (0, 0)))
    e_in = jnp.pad(bond_feats, ((0, pad), (0, 0)))

    # Linear1 acts on cat([e, m]): split its weight rows accordingly (all f32, no casts).
    w1 = params["W1"]                                  # [edge_dim + node_dim, out_dim]
    w1e = w1[:edge_dim]
    w1m = w1[edge_dim:]
    w2 = params["W2"]
    w3 = params["W3"]

    # BatchNorm1d (eval, running stats, eps=1e-5) folded to scale/shift; pack the five
    # per-feature vectors into a single resident (8, out_dim) tile.
    scale = params["bn_g"] * jax.lax.rsqrt(params["bn_v"] + 1e-5)
    shift = params["bn_b"] - params["bn_m"] * scale
    vecs = jnp.concatenate(
        [params["b1"], params["b2"], params["b3"], scale, shift,
         jnp.zeros((3, out_dim), jnp.float32)], axis=0)            # [8, out_dim]

    full = lambda shape: pl.BlockSpec(shape, lambda i: (0, 0))     # resident across tiles
    edge = lambda width: pl.BlockSpec((block_e, width), lambda i: (i, 0))

    # Explicit scoped-VMEM budget: estimate + headroom, clamped (v7x physical VMEM is 64 MiB).
    out_itemsize = jnp.dtype(out_dtype).itemsize
    tile_bytes = block_e * ((2 + edge_dim) * 4 + out_dim * out_itemsize)
    resident_bytes = (n_nodes * node_dim
                      + (edge_dim + node_dim + 2 * out_dim + 8) * out_dim) * 4
    gather_bytes = block_e * (node_dim if use_take else n_nodes) * 4
    vmem_limit = int(min(max(2 * (2 * tile_bytes + resident_bytes + 2 * gather_bytes),
                             32 * 1024 * 1024), 96 * 1024 * 1024))

    out = pl.pallas_call(
        _make_kernel(use_take, n_edges if pad else None, block_e),
        out_shape=jax.ShapeDtypeStruct((e_pad, out_dim), out_dtype),
        grid=(n_blocks,),
        in_specs=[
            edge(1),                       # src indices
            edge(1),                       # dst indices
            edge(edge_dim),                # bond features
            full((n_nodes, node_dim)),     # atom features (f32, resident)
            full((edge_dim, out_dim)),     # W1 (edge part)
            full((node_dim, out_dim)),     # W1 (message part)
            full((out_dim, out_dim)),      # W2
            full((out_dim, out_dim)),      # W3
            full((8, out_dim)),            # packed [b1, b2, b3, bn_scale, bn_shift]
        ],
        out_specs=pl.BlockSpec((block_e, out_dim), lambda i: (i, 0)),
        compiler_params=pltpu.CompilerParams(
            dimension_semantics=("parallel",),       # shard edge tiles across TCs (v7x megacore)
            vmem_limit_bytes=vmem_limit),
    )(src_i, dst_i, e_in, atom_feats, w1e, w1m, w2, w3, vecs)

    if pad == 0:
        return out                                   # no trailing HBM->HBM slice copy
    # Padded rows are zeroed in-kernel; prefer padding E upstream to skip this slice too.
    return out[:n_edges]


# ----------------------------------------------------------------------------- params / graph


def init_params(key, node_dim, edge_dim, out_dim):
    ks = jax.random.split(key, 8)
    in_dim = edge_dim + node_dim

    def mat(k, shape, fan_in):
        return jax.random.normal(k, shape, jnp.float32) / jnp.sqrt(float(fan_in))

    return {
        "W1": mat(ks[0], (in_dim, out_dim), in_dim),        # pre-transposed ([in, out])
        "b1": 0.01 * jax.random.normal(ks[1], (1, out_dim), jnp.float32),
        "W2": mat(ks[2], (out_dim, out_dim), out_dim),
        "b2": 0.01 * jax.random.normal(ks[3], (1, out_dim), jnp.float32),
        "W3": mat(ks[4], (out_dim, out_dim), out_dim),
        "b3": 0.01 * jax.random.normal(ks[5], (1, out_dim), jnp.float32),
        "bn_g": 1.0 + 0.1 * jax.random.normal(ks[6], (1, out_dim), jnp.float32),
        "bn_b": 0.1 * jax.random.normal(ks[7], (1, out_dim), jnp.float32),
        "bn_m": jnp.zeros((1, out_dim), jnp.float32),
        "bn_v": jnp.ones((1, out_dim), jnp.float32),
    }


def build_graph(n_per_graph, n_graphs):
    """Batched bidirectional skip-2 ring graphs (stand-in for bg3), as index lists."""
    src, dst = [], []
    for g in range(n_graphs):
        base = g * n_per_graph
        for i in range(n_per_graph):
            u, v = base + i, base + (i + 2) % n_per_graph
            src += [u, v]
            dst += [v, u]
    return jnp.array(src, jnp.int32), jnp.array(dst, jnp.int32)


def reference_forward(atom_feats, bond_feats, src, dst, p):
    """Pure-JAX f32 reference of DTIConvGraph3Layer (eval mode)."""
    hp = jax.lax.Precision.HIGHEST
    m = atom_feats[src] + atom_feats[dst]
    x = jnp.concatenate([bond_feats, m], axis=1)
    x = _leaky(jnp.dot(x, p["W1"], precision=hp) + p["b1"])
    x = _leaky(jnp.dot(x, p["W2"], precision=hp) + p["b2"])
    x = _leaky(jnp.dot(x, p["W3"], precision=hp) + p["b3"])
    scale = p["bn_g"] * jax.lax.rsqrt(p["bn_v"] + 1e-5)
    return x * scale + (p["bn_b"] - p["bn_m"] * scale)


# ----------------------------------------------------------------------------- main


if __name__ == "__main__":
    NODE_DIM = 32        # atom feature size (graph_feat_size)
    EDGE_DIM = 1         # bond (distance) feature size  -> Linear in_dim = 33
    OUT_DIM = 32         # outdim_g3
    N_PER, G = 32, 16    # 512 nodes, 1024 edges  -> 4 edge tiles of 256, no padding
    BLOCK_E = 256        # demo tile; production default is 1024 (sweep 1024/2048/4096)

    key = jax.random.PRNGKey(0)
    kp, kh, ke = jax.random.split(key, 3)

    src, dst = build_graph(N_PER, G)
    n_nodes = N_PER * G
    n_edges = int(src.shape[0])

    atom_feats = jax.random.normal(kh, (n_nodes, NODE_DIM), jnp.float32)   # bg.ndata['h']
    bond_feats = jax.random.normal(ke, (n_edges, EDGE_DIM), jnp.float32)   # bg.edata['e']
    params = init_params(kp, NODE_DIM, EDGE_DIM, OUT_DIM)

    ref = reference_forward(atom_feats, bond_feats, src, dst, params)

    # 1) Exact-semantics path: f32 output, all-f32 internal math.
    out32 = dti_conv_graph3_layer(atom_feats, bond_feats, src, dst, params,
                                  block_e=BLOCK_E, out_dtype=jnp.float32)
    out32 = jax.block_until_ready(out32)
    assert out32.shape == (n_edges, OUT_DIM) and out32.dtype == jnp.float32
    assert bool(jnp.all(jnp.isfinite(out32)))
    err32 = float(jnp.max(jnp.abs(out32 - ref)))
    assert err32 < 5e-2, f"f32 path: max abs err vs reference too large: {err32}"

    # 2) Store-optimized path from the perf review: bf16 output (halves HBM writeback).
    out16 = dti_conv_graph3_layer(atom_feats, bond_feats, src, dst, params,
                                  block_e=BLOCK_E, out_dtype=jnp.bfloat16)
    out16 = jax.block_until_ready(out16)
    assert out16.shape == (n_edges, OUT_DIM) and out16.dtype == jnp.bfloat16
    err16 = float(jnp.max(jnp.abs(out16.astype(jnp.float32) - ref)))
    assert err16 < 0.15, f"bf16-output path: max abs err vs reference too large: {err16}"

    print("KERNEL_OK")
</pallas_src>

<mosaic_0001>
module attributes {stable_mosaic.version = 11 : i64} {
  func.func @kernel(%arg0: i32, %arg1: memref<256x1xi32, #tpu.memory_space<vmem>>, %arg2: memref<256x1xi32, #tpu.memory_space<vmem>>, %arg3: memref<256x1xf32, #tpu.memory_space<vmem>>, %arg4: memref<512x32xf32, #tpu.memory_space<vmem>>, %arg5: memref<1x32xf32, #tpu.memory_space<vmem>>, %arg6: memref<32x32xf32, #tpu.memory_space<vmem>>, %arg7: memref<32x32xf32, #tpu.memory_space<vmem>>, %arg8: memref<32x32xf32, #tpu.memory_space<vmem>>, %arg9: memref<8x32xf32, #tpu.memory_space<vmem>>, %arg10: memref<256x32xf32, #tpu.memory_space<vmem>>) attributes {dimension_semantics = [#tpu.dimension_semantics<parallel>], iteration_bounds = array<i64: 4>, scalar_prefetch = 0 : i64, scratch_operands = 0 : i64, tpu.core_type = #tpu.core_type<tc>, window_params = [{transform_indices = @transform_0, window_bounds = array<i64: 256, 1>}, {transform_indices = @transform_1, window_bounds = array<i64: 256, 1>}, {transform_indices = @transform_2, window_bounds = array<i64: 256, 1>}, {pipeline_mode = #tpu.pipeline_mode<synchronous>, transform_indices = @transform_3, window_bounds = array<i64: 512, 32>}, {pipeline_mode = #tpu.pipeline_mode<synchronous>, transform_indices = @transform_4, window_bounds = array<i64: 1, 32>}, {pipeline_mode = #tpu.pipeline_mode<synchronous>, transform_indices = @transform_5, window_bounds = array<i64: 32, 32>}, {pipeline_mode = #tpu.pipeline_mode<synchronous>, transform_indices = @transform_6, window_bounds = array<i64: 32, 32>}, {pipeline_mode = #tpu.pipeline_mode<synchronous>, transform_indices = @transform_7, window_bounds = array<i64: 32, 32>}, {pipeline_mode = #tpu.pipeline_mode<synchronous>, transform_indices = @transform_8, window_bounds = array<i64: 8, 32>}, {transform_indices = @transform_9, window_bounds = array<i64: 256, 32>}]} {
    %c0 = arith.constant 0 : index
    %c0_0 = arith.constant 0 : index
    %0 = vector.load %arg4[%c0, %c0_0] : memref<512x32xf32, #tpu.memory_space<vmem>>, vector<512x32xf32>
    %1 = tpu.iota {dimensions = array<i32: 1>} : vector<256x512xi32>
    %c0_1 = arith.constant 0 : index
    %c0_2 = arith.constant 0 : index
    %2 = vector.load %arg1[%c0_1, %c0_2] : memref<256x1xi32, #tpu.memory_space<vmem>>, vector<256x1xi32>
    %3 = vector.broadcast %2 : vector<256x1xi32> to vector<256x512xi32>
    %4 = arith.cmpi eq, %1, %3 : vector<256x512xi32>
    %5 = arith.extui %4 : vector<256x512xi1> to vector<256x512xi32>
    %6 = arith.sitofp %5 : vector<256x512xi32> to vector<256x512xf32>
    %c0_3 = arith.constant 0 : index
    %c0_4 = arith.constant 0 : index
    %7 = vector.load %arg2[%c0_3, %c0_4] : memref<256x1xi32, #tpu.memory_space<vmem>>, vector<256x1xi32>
    %8 = vector.broadcast %7 : vector<256x1xi32> to vector<256x512xi32>
    %9 = arith.cmpi eq, %1, %8 : vector<256x512xi32>
    %10 = arith.extui %9 : vector<256x512xi1> to vector<256x512xi32>
    %11 = arith.sitofp %10 : vector<256x512xi32> to vector<256x512xf32>
    %12 = arith.addf %6, %11 : vector<256x512xf32>
    %cst = arith.constant dense<0.000000e+00> : vector<256x32xf32>
    %13 = tpu.matmul %12, %0, %cst {dimension_numbers = #tpu.dot_dimension_numbers<[1], [0], [0], [1], [0, 0, 1, 1], [], []>} : vector<256x512xf32>, vector<512x32xf32>, vector<256x32xf32> -> vector<256x32xf32>
    %c0_5 = arith.constant 0 : index
    %c0_6 = arith.constant 0 : index
    %14 = vector.load %arg9[%c0_5, %c0_6] : memref<8x32xf32, #tpu.memory_space<vmem>>, vector<1x32xf32>
    %c1 = arith.constant 1 : index
    %c0_7 = arith.constant 0 : index
    %15 = vector.load %arg9[%c1, %c0_7] : memref<8x32xf32, #tpu.memory_space<vmem>>, vector<1x32xf32>
    %c2 = arith.constant 2 : index
    %c0_8 = arith.constant 0 : index
    %16 = vector.load %arg9[%c2, %c0_8] : memref<8x32xf32, #tpu.memory_space<vmem>>, vector<1x32xf32>
    %c3 = arith.constant 3 : index
    %c0_9 = arith.constant 0 : index
    %17 = vector.load %arg9[%c3, %c0_9] : memref<8x32xf32, #tpu.memory_space<vmem>>, vector<1x32xf32>
    %c4 = arith.constant 4 : index
    %c0_10 = arith.constant 0 : index
    %18 = vector.load %arg9[%c4, %c0_10] : memref<8x32xf32, #tpu.memory_space<vmem>>, vector<1x32xf32>
    %c0_11 = arith.constant 0 : index
    %c0_12 = arith.constant 0 : index
    %19 = vector.load %arg3[%c0_11, %c0_12] : memref<256x1xf32, #tpu.memory_space<vmem>>, vector<256x1xf32>
    %c0_13 = arith.constant 0 : index
    %c0_14 = arith.constant 0 : index
    %20 = vector.load %arg5[%c0_13, %c0_14] : memref<1x32xf32, #tpu.memory_space<vmem>>, vector<1x32xf32>
    %21 = vector.broadcast %19 : vector<256x1xf32> to vector<256x32xf32>
    %22 = vector.broadcast %20 : vector<1x32xf32> to vector<256x32xf32>
    %23 = arith.mulf %21, %22 : vector<256x32xf32>
    %c0_15 = arith.constant 0 : index
    %c0_16 = arith.constant 0 : index
    %24 = vector.load %arg6[%c0_15, %c0_16] : memref<32x32xf32, #tpu.memory_space<vmem>>, vector<32x32xf32>
    %cst_17 = arith.constant dense<0.000000e+00> : vector<256x32xf32>
    %25 = tpu.matmul %13, %24, %cst_17 {dimension_numbers = #tpu.dot_dimension_numbers<[1], [0], [0], [1], [0, 0, 1, 1], [], []>} : vector<256x32xf32>, vector<32x32xf32>, vector<256x32xf32> -> vector<256x32xf32>
    %26 = arith.addf %23, %25 : vector<256x32xf32>
    %27 = vector.broadcast %14 : vector<1x32xf32> to vector<256x32xf32>
    %28 = arith.addf %26, %27 : vector<256x32xf32>
    %cst_18 = arith.constant 0.000000e+00 : f32
    %29 = vector.broadcast %cst_18 : f32 to vector<256x32xf32>
    %30 = arith.cmpf oge, %28, %29 : vector<256x32xf32>
    %cst_19 = arith.constant 0.00999999977 : f32
    %31 = vector.broadcast %cst_19 : f32 to vector<256x32xf32>
    %32 = arith.mulf %31, %28 : vector<256x32xf32>
    %33 = arith.select %30, %28, %32 : vector<256x32xi1>, vector<256x32xf32>
    %c0_20 = arith.constant 0 : index
    %c0_21 = arith.constant 0 : index
    %34 = vector.load %arg7[%c0_20, %c0_21] : memref<32x32xf32, #tpu.memory_space<vmem>>, vector<32x32xf32>
    %cst_22 = arith.constant dense<0.000000e+00> : vector<256x32xf32>
    %35 = tpu.matmul %33, %34, %cst_22 {dimension_numbers = #tpu.dot_dimension_numbers<[1], [0], [0], [1], [0, 0, 1, 1], [], []>} : vector<256x32xf32>, vector<32x32xf32>, vector<256x32xf32> -> vector<256x32xf32>
    %36 = vector.broadcast %15 : vector<1x32xf32> to vector<256x32xf32>
    %37 = arith.addf %35, %36 : vector<256x32xf32>
    %cst_23 = arith.constant 0.000000e+00 : f32
    %38 = vector.broadcast %cst_23 : f32 to vector<256x32xf32>
    %39 = arith.cmpf oge, %37, %38 : vector<256x32xf32>
    %cst_24 = arith.constant 0.00999999977 : f32
    %40 = vector.broadcast %cst_24 : f32 to vector<256x32xf32>
    %41 = arith.mulf %40, %37 : vector<256x32xf32>
    %42 = arith.select %39, %37, %41 : vector<256x32xi1>, vector<256x32xf32>
    %c0_25 = arith.constant 0 : index
    %c0_26 = arith.constant 0 : index
    %43 = vector.load %arg8[%c0_25, %c0_26] : memref<32x32xf32, #tpu.memory_space<vmem>>, vector<32x32xf32>
    %cst_27 = arith.constant dense<0.000000e+00> : vector<256x32xf32>
    %44 = tpu.matmul %42, %43, %cst_27 {dimension_numbers = #tpu.dot_dimension_numbers<[1], [0], [0], [1], [0, 0, 1, 1], [], []>} : vector<256x32xf32>, vector<32x32xf32>, vector<256x32xf32> -> vector<256x32xf32>
    %45 = vector.broadcast %16 : vector<1x32xf32> to vector<256x32xf32>
    %46 = arith.addf %44, %45 : vector<256x32xf32>
    %cst_28 = arith.constant 0.000000e+00 : f32
    %47 = vector.broadcast %cst_28 : f32 to vector<256x32xf32>
    %48 = arith.cmpf oge, %46, %47 : vector<256x32xf32>
    %cst_29 = arith.constant 0.00999999977 : f32
    %49 = vector.broadcast %cst_29 : f32 to vector<256x32xf32>
    %50 = arith.mulf %49, %46 : vector<256x32xf32>
    %51 = arith.select %48, %46, %50 : vector<256x32xi1>, vector<256x32xf32>
    %52 = vector.broadcast %17 : vector<1x32xf32> to vector<256x32xf32>
    %53 = arith.mulf %51, %52 : vector<256x32xf32>
    %54 = vector.broadcast %18 : vector<1x32xf32> to vector<256x32xf32>
    %55 = arith.addf %53, %54 : vector<256x32xf32>
    %c0_30 = arith.constant 0 : index
    %c0_31 = arith.constant 0 : index
    %56 = vector.load %arg10[%c0_30, %c0_31] : memref<256x32xf32, #tpu.memory_space<vmem>>, vector<256x32xf32>
    tpu.vector_store %arg10[%c0_30, %c0_31], %55 {strides = array<i32>} : memref<256x32xf32, #tpu.memory_space<vmem>>, vector<256x32xf32>,
    return
  }
  func.func @transform_0(%arg0: i32) -> (i32, i32) {
    %c0_i32 = arith.constant 0 : i32
    %c0_i32_0 = arith.constant 0 : i32
    return %arg0, %c0_i32 : i32, i32
  }
  func.func @transform_1(%arg0: i32) -> (i32, i32) {
    %c0_i32 = arith.constant 0 : i32
    %c0_i32_0 = arith.constant 0 : i32
    return %arg0, %c0_i32 : i32, i32
  }
  func.func @transform_2(%arg0: i32) -> (i32, i32) {
    %c0_i32 = arith.constant 0 : i32
    %c0_i32_0 = arith.constant 0 : i32
    return %arg0, %c0_i32 : i32, i32
  }
  func.func @transform_3(%arg0: i32) -> (i32, i32) {
    %c0_i32 = arith.constant 0 : i32
    %c0_i32_0 = arith.constant 0 : i32
    %c0_i32_1 = arith.constant 0 : i32
    return %c0_i32, %c0_i32_0 : i32, i32
  }
  func.func @transform_4(%arg0: i32) -> (i32, i32) {
    %c0_i32 = arith.constant 0 : i32
    %c0_i32_0 = arith.constant 0 : i32
    %c0_i32_1 = arith.constant 0 : i32
    return %c0_i32, %c0_i32_0 : i32, i32
  }
  func.func @transform_5(%arg0: i32) -> (i32, i32) {
    %c0_i32 = arith.constant 0 : i32
    %c0_i32_0 = arith.constant 0 : i32
    %c0_i32_1 = arith.constant 0 : i32
    return %c0_i32, %c0_i32_0 : i32, i32
  }
  func.func @transform_6(%arg0: i32) -> (i32, i32) {
    %c0_i32 = arith.constant 0 : i32
    %c0_i32_0 = arith.constant 0 : i32
    %c0_i32_1 = arith.constant 0 : i32
    return %c0_i32, %c0_i32_0 : i32, i32
  }
  func.func @transform_7(%arg0: i32) -> (i32, i32) {
    %c0_i32 = arith.constant 0 : i32
    %c0_i32_0 = arith.constant 0 : i32
    %c0_i32_1 = arith.constant 0 : i32
    return %c0_i32, %c0_i32_0 : i32, i32
  }
  func.func @transform_8(%arg0: i32) -> (i32, i32) {
    %c0_i32 = arith.constant 0 : i32
    %c0_i32_0 = arith.constant 0 : i32
    %c0_i32_1 = arith.constant 0 : i32
    return %c0_i32, %c0_i32_0 : i32, i32
  }
  func.func @transform_9(%arg0: i32) -> (i32, i32) {
    %c0_i32 = arith.constant 0 : i32
    %c0_i32_0 = arith.constant 0 : i32
    return %arg0, %c0_i32 : i32, i32
  }
}

</mosaic_0001>

<bundles_post_ra>
// kernel: tpu_custom_call.1
= control target key start
LH: loop header
LB: loop body
LE: loop exit
PB: predicated region body
PF: predicated region fallthrough
CT: control target
= control target key end

     0   :  { %s4742_s30 = smov 0   ;;  %s7252_s0 = inlined_call_operand.vmem [shape: s32[1024,1], index: 0, kind: input, shape index: {}]   ;;  %s7253_s1 = inlined_call_operand.vmem [shape: s32[1024,1], index: 1, kind: input, shape index: {}]   ;;  %s7254_s2 = inlined_call_operand.vmem [shape: f32[1024,1], index: 2, kind: input, shape index: {}]   ;;  %s7255_s3 = inlined_call_operand.vmem [shape: f32[512,32], index: 3, kind: input, shape index: {}]   ;;  %s7256_s4 = inlined_call_operand.vmem [shape: f32[1,32], index: 4, kind: input, shape index: {}]   ;;  %s7257_s5 = inlined_call_operand.vmem [shape: f32[32,32], index: 5, kind: input, shape index: {}]   ;;  %s7258_s6 = inlined_call_operand.vmem [shape: f32[32,32], index: 6, kind: input, shape index: {}]   ;;  %s7259_s7 = inlined_call_operand.vmem [shape: f32[32,32], index: 7, kind: input, shape index: {}]   ;;  %s7260_s8 = inlined_call_operand.vmem [shape: f32[8,32], index: 8, kind: input, shape index: {}]   ;;  %s7261_s9 = inlined_call_operand.vmem [shape: f32[1024,32], index: 9, kind: output, shape index: {}]  }
   0x1 LB: > { %s3811_s10 = sadd.s32 4294967295, %s4687_s30   ;;  %p3815_p0 = scmp.ge.s32.totalorder %s4687_s30, 1  ;;  %s4687_s30 = sphi %s4742_s30, %s19_s30  }
   0x2   : > { %p310_p1 = scmp.lt.s32.totalorder %s4687_s30, 5 }
   0x4   : > { %p311_p2 = pnand %p3815_p0, %p310_p1 }
   0x6   : > { %314 = sbr.rel (%p311_p2) target bundleno = 1256 (0x4e8), region = 56 }
   0xd   : > { %s3816_s11 = sshll.u32 %s3811_s10, 5  ;;  %v380_v0 = vld [vmem:[%s7255_s3] sm:$0xff]  ;;  %v381_v1 = vld [vmem:[%s7255_s3 + $0x8] sm:$0xff]  ;;  %v382_v2 = vld [vmem:[%s7255_s3 + $0x10] sm:$0xff]  ;;  %v4689_v3 = vmov 0   ;;  %v4690_v6 = vmov 0.0|0.0  }
   0xe   : > { %4680 = vset.pattern.permute.xlu1 %v4689_v3  ;;  %4679 = vset.pattern.permute.xlu0 %v4689_v3  ;;  %p357_p3 = scmp.lt.s32.totalorder %s3816_s11, 127  ;;  %v4461_v4 = vpack.c.bf16 %v381_v1, %v380_v0  ;;  %v383_v5 = vld [vmem:[%s7255_s3 + $0x18] sm:$0xff]  ;;  %v384_v8 = vld [vmem:[%s7255_s3 + $0x20] sm:$0xff]  ;;  %v385_v9 = vld [vmem:[%s7255_s3 + $0x28] sm:$0xff] }
   0xf   : > { %4460 = vmatprep.subr.bf16.mxu0 %v4690_v6  ;;  %4580 = vmatprep.subr.bf16.mxu1 %v4690_v6  ;;  %v4464_v7 = vpack.c.bf16 %v383_v5, %v382_v2  ;;  %v4467_v12 = vpack.c.bf16 %v385_v9, %v384_v8  ;;  %v386_v13 = vld [vmem:[%s7255_s3 + $0x30] sm:$0xff]  ;;  %v387_v14 = vld [vmem:[%s7255_s3 + $0x38] sm:$0xff]  ;;  %v388_v18 = vld [vmem:[%s7255_s3 + $0x40] sm:$0xff] }
  0x10   : > { %s7341_s11 = smov (!%p357_p3, %s3816_s11), 127  ;;  %4462 = vmatpush1.bf16.msra.mxu0 %v4461_v4  ;;  %4596 = vmatpush1.bf16.msra.mxu1 %v4461_v4  ;;  %v4470_v17 = vpack.c.bf16 %v387_v14, %v386_v13  ;;  %v389_v19 = vld [vmem:[%s7255_s3 + $0x48] sm:$0xff]  ;;  %v390_v23 = vld [vmem:[%s7255_s3 + $0x50] sm:$0xff]  ;;  %v391_v24 = vld [vmem:[%s7255_s3 + $0x58] sm:$0xff] }
  0x11   : > { %4463 = vmatprep.subr.bf16.mxu0 %v4690_v6  ;;  %4581 = vmatprep.subr.bf16.mxu1 %v4690_v6  ;;  %s4772_s24 = sshll.u32 %s7341_s11, 3  ;;  %v4473_v22 = vpack.c.bf16 %v389_v19, %v388_v18  ;;  %v4476_v27 = vpack.c.bf16 %v391_v24, %v390_v23  ;;  %v392_v28 = vld [vmem:[%s7255_s3 + $0x60] sm:$0xff]  ;;  %v393_v29 = vld [vmem:[%s7255_s3 + $0x68] sm:$0xff]  ;;  %v394_v33 = vld [vmem:[%s7255_s3 + $0x70] sm:$0xff] }
  0x12   : > { %s4778_s27 = scalar_lea.vmem %s7252_s0, %s4772_s24  ;;  %s4786_s10 = scalar_lea.vmem %s7253_s1, %s4772_s24  ;;  %v4479_v32 = vpack.c.bf16 %v393_v29, %v392_v28  ;;  %v395_v34 = vld [vmem:[%s7255_s3 + $0x78] sm:$0xff]  ;;  %v396_v38 = vld [vmem:[%s7255_s3 + $0x80] sm:$0xff]  ;;  %v397_v39 = vld [vmem:[%s7255_s3 + $0x88] sm:$0xff] }
  0x13   : > { %v450_v10 = vld [vmem:[%s4778_s27 + $0x8] sm:$0xff]  ;;  %v449_v11 = vld [vmem:[%s4778_s27] sm:$0xff]  ;;  %v963_v20 = vld [vmem:[%s4786_s10 + $0x10] sm:$0xff]  ;;  %v4482_v37 = vpack.c.bf16 %v395_v34, %v394_v33  ;;  %v4485_v42 = vpack.c.bf16 %v397_v39, %v396_v38  ;;  %s4963_s14 = scalar_lea.vmem %s7254_s2, %s4772_s24  ;;  %s7090_s22 = scalar_lea.vmem %s7261_s9, %s4772_s24 }
  0x14   : > { %4465 = vmatpush1.bf16.msra.mxu0 %v4464_v7  ;;  %4597 = vmatpush1.bf16.msra.mxu1 %v4464_v7  ;;  %v962_v15 = vld [vmem:[%s4786_s10 + $0x8] sm:$0xff]  ;;  %v961_v16 = vld [vmem:[%s4786_s10] sm:$0xff]  ;;  %v451_v21 = vld [vmem:[%s4778_s27 + $0x10] sm:$0xff] }
  0x15   : > { %485 = vperm.xlu1 %4680, %v450_v10   ;;  %482 = vperm.xlu0 %4679, %v449_v11   ;;  %v964_v25 = vld [vmem:[%s4786_s10 + $0x18] sm:$0xff]  ;;  %v965_v30 = vld [vmem:[%s4786_s10 + $0x20] sm:$0xff]  ;;  %v966_v35 = vld [vmem:[%s4786_s10 + $0x28] sm:$0xff] }
  0x16   : > { %4466 = vmatprep.subr.bf16.mxu0 %v4690_v6  ;;  %4582 = vmatprep.subr.bf16.mxu1 %v4690_v6  ;;  %v452_v26 = vld [vmem:[%s4778_s27 + $0x18] sm:$0xff]  ;;  %v453_v31 = vld [vmem:[%s4778_s27 + $0x20] sm:$0xff]  ;;  %v454_v36 = vld [vmem:[%s4778_s27 + $0x28] sm:$0xff] }
  0x17   : > { %v967_v40 = vld [vmem:[%s4786_s10 + $0x30] sm:$0xff]  ;;  %v399_v44 = vld [vmem:[%s7255_s3 + $0x98] sm:$0xff]  ;;  %v400_v48 = vld [vmem:[%s7255_s3 + $0xa0] sm:$0xff] }
  0x18   : > { %4468 = vmatpush1.bf16.msra.mxu0 %v4467_v12  ;;  %4598 = vmatpush1.bf16.msra.mxu1 %v4467_v12  ;;  %v455_v41 = vld [vmem:[%s4778_s27 + $0x30] sm:$0xff]  ;;  %v968_v45 = vld [vmem:[%s4786_s10 + $0x38] sm:$0xff]  ;;  %v401_v49 = vld [vmem:[%s7255_s3 + $0xa8] sm:$0xff] }
  0x19   : > { %997 = vperm.xlu1 %4680, %v962_v15   ;;  %994 = vperm.xlu0 %4679, %v961_v16   ;;  %v398_v43 = vld [vmem:[%s7255_s3 + $0x90] sm:$0xff]  ;;  %v456_v46 = vld [vmem:[%s4778_s27 + $0x38] sm:$0xff]  ;;  %v969_v50 = vld [vmem:[%s4786_s10 + $0x40] sm:$0xff]  ;;  %v4491_v52 = vpack.c.bf16 %v401_v49, %v400_v48  ;;  %v444_v49 = vlaneseq }
  0x1a   : > { %4469 = vmatprep.subr.bf16.mxu0 %v4690_v6  ;;  %4583 = vmatprep.subr.bf16.mxu1 %v4690_v6  ;;  %v4488_v47 = vpack.c.bf16 %v399_v44, %v398_v43  ;;  %v457_v51 = vld [vmem:[%s4778_s27 + $0x40] sm:$0xff]  ;;  %v402_v53 = vld [vmem:[%s7255_s3 + $0xb0] sm:$0xff]  ;;  %v403_v54 = vld [vmem:[%s7255_s3 + $0xb8] sm:$0xff] }
  0x1b   : > { %v970_v55 = vld [vmem:[%s4786_s10 + $0x48] sm:$0xff]  ;;  %v4494_v57 = vpack.c.bf16 %v403_v54, %v402_v53  ;;  %v404_v58 = vld [vmem:[%s7255_s3 + $0xc0] sm:$0xff]  ;;  %v971_v60 = vld [vmem:[%s4786_s10 + $0x50] sm:$0xff] }
  0x1c   : > { %4471 = vmatpush1.bf16.msra.mxu0 %v4470_v17  ;;  %4599 = vmatpush1.bf16.msra.mxu1 %v4470_v17  ;;  %v458_v56 = vld [vmem:[%s4778_s27 + $0x48] sm:$0xff]  ;;  %v459_v61 = vld [vmem:[%s4778_s27 + $0x50] sm:$0xff]  ;;  %v407_v0 = vld [vmem:[%s7255_s3 + $0xd8] sm:$0xff] }
  0x1d   : > { %1000 = vperm.xlu1 %4680, %v963_v20   ;;  %488 = vperm.xlu0 %4679, %v451_v21   ;;  %v405_v59 = vld [vmem:[%s7255_s3 + $0xc8] sm:$0xff]  ;;  %v406_v63 = vld [vmem:[%s7255_s3 + $0xd0] sm:$0xff]  ;;  %v972_v1 = vld [vmem:[%s4786_s10 + $0x58] sm:$0xff] }
  0x1e   : > { %4472 = vmatprep.subr.bf16.mxu0 %v4690_v6  ;;  %4584 = vmatprep.subr.bf16.mxu1 %v4690_v6  ;;  %v4497_v62 = vpack.c.bf16 %v405_v59, %v404_v58  ;;  %v460_v2 = vld [vmem:[%s4778_s27 + $0x58] sm:$0xff]  ;;  %v4500_v3 = vpack.c.bf16 %v407_v0, %v406_v63  ;;  %v408_v4 = vld [vmem:[%s7255_s3 + $0xe0] sm:$0xff]  ;;  %v409_v5 = vld [vmem:[%s7255_s3 + $0xe8] sm:$0xff]  ;;  %v4691_v0 = vmov 0.0  }
  0x1f   : > { %v973_v7 = vld [vmem:[%s4786_s10 + $0x60] sm:$0xff]  ;;  %v4503_v9 = vpack.c.bf16 %v409_v5, %v408_v4  ;;  %v410_v10 = vld [vmem:[%s7255_s3 + $0xf0] sm:$0xff]  ;;  %v411_v11 = vld [vmem:[%s7255_s3 + $0xf8] sm:$0xff] }
  0x20   : > { %4474 = vmatpush1.bf16.msra.mxu0 %v4473_v22  ;;  %4600 = vmatpush1.bf16.msra.mxu1 %v4473_v22  ;;  %v461_v8 = vld [vmem:[%s4778_s27 + $0x60] sm:$0xff]  ;;  %v974_v12 = vld [vmem:[%s4786_s10 + $0x68] sm:$0xff]  ;;  %v4506_v14 = vpack.c.bf16 %v411_v11, %v410_v10  ;;  %v975_v15 = vld [vmem:[%s4786_s10 + $0x70] sm:$0xff] }
  0x21   : > { %1003 = vperm.xlu1 %4680, %v964_v25   ;;  %491 = vperm.xlu0 %4679, %v452_v26   ;;  %v462_v13 = vld [vmem:[%s4778_s27 + $0x68] sm:$0xff]  ;;  %v463_v16 = vld [vmem:[%s4778_s27 + $0x70] sm:$0xff]  ;;  %v976_v17 = vld [vmem:[%s4786_s10 + $0x78] sm:$0xff] }
  0x22   : > { %4475 = vmatprep.subr.bf16.mxu0 %v4690_v6  ;;  %4585 = vmatprep.subr.bf16.mxu1 %v4690_v6  ;;  %v464_v18 = vld [vmem:[%s4778_s27 + $0x78] sm:$0xff]  ;;  %v977_v19 = vld [vmem:[%s4786_s10 + $0x80] sm:$0xff]  ;;  %v978_v21 = vld [vmem:[%s4786_s10 + $0x88] sm:$0xff] }
  0x23   : > { %v465_v20 = vld [vmem:[%s4778_s27 + $0x80] sm:$0xff]  ;;  %v466_v22 = vld [vmem:[%s4778_s27 + $0x88] sm:$0xff]  ;;  %v979_v23 = vld [vmem:[%s4786_s10 + $0x90] sm:$0xff] }
  0x24   : > { %4477 = vmatpush1.bf16.msra.mxu0 %v4476_v27  ;;  %4601 = vmatpush1.bf16.msra.mxu1 %v4476_v27  ;;  %v467_v24 = vld [vmem:[%s4778_s27 + $0x90] sm:$0xff]  ;;  %v980_v25 = vld [vmem:[%s4786_s10 + $0x98] sm:$0xff]  ;;  %v981_v27 = vld [vmem:[%s4786_s10 + $0xa0] sm:$0xff] }
  0x25   : > { %1006 = vperm.xlu1 %4680, %v965_v30   ;;  %494 = vperm.xlu0 %4679, %v453_v31   ;;  %v468_v26 = vld [vmem:[%s4778_s27 + $0x98] sm:$0xff]  ;;  %v469_v28 = vld [vmem:[%s4778_s27 + $0xa0] sm:$0xff]  ;;  %v982_v29 = vld [vmem:[%s4786_s10 + $0xa8] sm:$0xff] }
  0x26   : > { %4478 = vmatprep.subr.bf16.mxu0 %v4690_v6  ;;  %4586 = vmatprep.subr.bf16.mxu1 %v4690_v6  ;;  %v470_v30 = vld [vmem:[%s4778_s27 + $0xa8] sm:$0xff]  ;;  %v983_v31 = vld [vmem:[%s4786_s10 + $0xb0] sm:$0xff]  ;;  %v984_v33 = vld [vmem:[%s4786_s10 + $0xb8] sm:$0xff] }
  0x27   : > { %v472_v34 = vld [vmem:[%s4778_s27 + $0xb8] sm:$0xff]  ;;  %v474_v38 = vld [vmem:[%s4778_s27 + $0xc8] sm:$0xff]  ;;  %v987_v39 = vld [vmem:[%s4786_s10 + $0xd0] sm:$0xff] }
  0x28   : > { %4480 = vmatpush1.bf16.msra.mxu0 %v4479_v32  ;;  %4602 = vmatpush1.bf16.msra.mxu1 %v4479_v32  ;;  %v471_v32 = vld [vmem:[%s4778_s27 + $0xb0] sm:$0xff]  ;;  %v989_v43 = vld [vmem:[%s4786_s10 + $0xe0] sm:$0xff]  ;;  %v2059_v59 = vld [vmem:[%s4963_s14 + $0x18] sm:$0xff] }
  0x29   : > { %1009 = vperm.xlu1 %4680, %v966_v35   ;;  %497 = vperm.xlu0 %4679, %v454_v36   ;;  %v985_v35 = vld [vmem:[%s4786_s10 + $0xc0] sm:$0xff]  ;;  %v479_v48 = vld [vmem:[%s4778_s27 + $0xf0] sm:$0xff]  ;;  %v2061_v4 = vld [vmem:[%s4963_s14 + $0x28] sm:$0xff] }
  0x2a   : > { %4481 = vmatprep.subr.bf16.mxu0 %v4690_v6  ;;  %4587 = vmatprep.subr.bf16.mxu1 %v4690_v6  ;;  %v473_v36 = vld [vmem:[%s4778_s27 + $0xc0] sm:$0xff] }
  0x2b   : > { %v477_v44 = vld [vmem:[%s4778_s27 + $0xe0] sm:$0xff] }
  0x2c   : > { %4483 = vmatpush1.bf16.msra.mxu0 %v4482_v37  ;;  %4603 = vmatpush1.bf16.msra.mxu1 %v4482_v37  ;;  %v986_v37 = vld [vmem:[%s4786_s10 + $0xc8] sm:$0xff]  ;;  %v412_v5 = vld [vmem:[%s7255_s3 + $0x100] sm:$0xff] }
  0x2d   : > { %1012 = vperm.xlu1 %4680, %v967_v40   ;;  %500 = vperm.xlu0 %4679, %v455_v41   ;;  %v475_v40 = vld [vmem:[%s4778_s27 + $0xd0] sm:$0xff]  ;;  %v988_v41 = vld [vmem:[%s4786_s10 + $0xd8] sm:$0xff]  ;;  %v2060_v10 = vld [vmem:[%s4963_s14 + $0x20] sm:$0xff] }
  0x2e   : > { %4484 = vmatprep.subr.bf16.mxu0 %v4690_v6  ;;  %4588 = vmatprep.subr.bf16.mxu1 %v4690_v6 }
  0x30   : > { %4486 = vmatpush1.bf16.msra.mxu0 %v4485_v42  ;;  %4604 = vmatpush1.bf16.msra.mxu1 %v4485_v42  ;;  %v476_v42 = vld [vmem:[%s4778_s27 + $0xd8] sm:$0xff] }
  0x31   : > { %1015 = vperm.xlu1 %4680, %v968_v45   ;;  %503 = vperm.xlu0 %4679, %v456_v46   ;;  %v990_v45 = vld [vmem:[%s4786_s10 + $0xe8] sm:$0xff] }
  0x32   : > { %4487 = vmatprep.subr.bf16.mxu0 %v4690_v6  ;;  %4589 = vmatprep.subr.bf16.mxu1 %v4690_v6  ;;  %v478_v46 = vld [vmem:[%s4778_s27 + $0xe8] sm:$0xff] }
  0x34   : > { %4489 = vmatpush1.bf16.msra.mxu0 %v4488_v47  ;;  %4605 = vmatpush1.bf16.msra.mxu1 %v4488_v47  ;;  %v991_v47 = vld [vmem:[%s4786_s10 + $0xf0] sm:$0xff] }
  0x35   : > { %1018 = vperm.xlu1 %4680, %v969_v50   ;;  %506 = vperm.xlu0 %4679, %v457_v51   ;;  %v992_v50 = vld [vmem:[%s4786_s10 + $0xf8] sm:$0xff] }
  0x36   : > { %4490 = vmatprep.subr.bf16.mxu0 %v4690_v6  ;;  %4590 = vmatprep.subr.bf16.mxu1 %v4690_v6  ;;  %v480_v51 = vld [vmem:[%s4778_s27 + $0xf8] sm:$0xff] }
  0x38   : > { %4492 = vmatpush1.bf16.msra.mxu0 %v4491_v52  ;;  %4606 = vmatpush1.bf16.msra.mxu1 %v4491_v52  ;;  %v4957_v52 = vand.u32 127, %v444_v49 }
  0x39   : > { %1021 = vperm.xlu1 %4680, %v970_v55   ;;  %509 = vperm.xlu0 %4679, %v458_v56   ;;  %v2057_v55 = vld [vmem:[%s4963_s14 + $0x8] sm:$0xff]  ;;  %v2056_v56 = vld [vmem:[%s4963_s14] sm:$0xff] }
  0x3a   : > { %4493 = vmatprep.subr.bf16.mxu0 %v4690_v6  ;;  %4591 = vmatprep.subr.bf16.mxu1 %v4690_v6  ;;  %v4966_v53 = vadd.s32 128, %v4957_v52  ;;  %v4969_v54 = vadd.s32 256, %v4957_v52 }
  0x3c   : > { %4495 = vmatpush1.bf16.msra.mxu0 %v4494_v57  ;;  %4607 = vmatpush1.bf16.msra.mxu1 %v4494_v57 }
  0x3d   : > { %1024 = vperm.xlu1 %4680, %v971_v60   ;;  %512 = vperm.xlu0 %4679, %v459_v61   ;;  %v2058_v60 = vld [vmem:[%s4963_s14 + $0x10] sm:$0xff]  ;;  %v4988_v61 = vadd.s32 384, %v4957_v52 }
  0x3e   : > { %4496 = vmatprep.subr.bf16.mxu0 %v4690_v6  ;;  %4592 = vmatprep.subr.bf16.mxu1 %v4690_v6 }
  0x40   : > { %4498 = vmatpush1.bf16.msra.mxu0 %v4497_v62  ;;  %4608 = vmatpush1.bf16.msra.mxu1 %v4497_v62 }
  0x41   : > { %1027 = vperm.xlu1 %4680, %v972_v1   ;;  %515 = vperm.xlu0 %4679, %v460_v2  }
  0x42   : > { %4499 = vmatprep.subr.bf16.mxu0 %v4690_v6  ;;  %4593 = vmatprep.subr.bf16.mxu1 %v4690_v6 }
  0x44   : > { %4501 = vmatpush1.bf16.msra.mxu0 %v4500_v3  ;;  %4609 = vmatpush1.bf16.msra.mxu1 %v4500_v3 }
  0x45   : > { %1030 = vperm.xlu1 %4680, %v973_v7   ;;  %518 = vperm.xlu0 %4679, %v461_v8   ;;  %v413_v7 = vld [vmem:[%s7255_s3 + $0x108] sm:$0xff] }
  0x46   : > { %4502 = vmatprep.subr.bf16.mxu0 %v4690_v6  ;;  %4594 = vmatprep.subr.bf16.mxu1 %v4690_v6 }
  0x48   : > { %4504 = vmatpush1.bf16.msra.mxu0 %v4503_v9  ;;  %4610 = vmatpush1.bf16.msra.mxu1 %v4503_v9 }
  0x49   : > { %1033 = vperm.xlu1 %4680, %v974_v12   ;;  %521 = vperm.xlu0 %4679, %v462_v13  }
  0x4a   : > { %4505 = vmatprep.subr.bf16.mxu0 %v4690_v6  ;;  %4595 = vmatprep.subr.bf16.mxu1 %v4690_v6 }
  0x4c   : > { %4507 = vmatpush1.bf16.msra.mxu0 %v4506_v14  ;;  %4611 = vmatpush1.bf16.msra.mxu1 %v4506_v14 }
  0x4d   : > { %1036 = vperm.xlu1 %4680, %v975_v15   ;;  %524 = vperm.xlu0 %4679, %v463_v16  }
  0x4e   : > { %4508 = vmatprep.subr.bf16.mxu0 %v4690_v6 }
  0x51   : > { %1039 = vperm.xlu1 %4680, %v976_v17   ;;  %527 = vperm.xlu0 %4679, %v464_v18  }
  0x55   : > { %1042 = vperm.xlu1 %4680, %v977_v19   ;;  %530 = vperm.xlu0 %4679, %v465_v20   ;;  %v4509_v19 = vpack.c.bf16 %v413_v7, %v412_v5  ;;  %v414_v20 = vld [vmem:[%s7255_s3 + $0x110] sm:$0xff] }
  0x59   : > { %1045 = vperm.xlu1 %4680, %v978_v21   ;;  %533 = vperm.xlu0 %4679, %v466_v22   ;;  %v415_v21 = vld [vmem:[%s7255_s3 + $0x118] sm:$0xff] }
  0x5d   : > { %1048 = vperm.xlu1 %4680, %v979_v23   ;;  %536 = vperm.xlu0 %4679, %v467_v24   ;;  %v2063_v23 = vld [vmem:[%s4963_s14 + $0x38] sm:$0xff] }
  0x61   : > { %1051 = vperm.xlu1 %4680, %v980_v25   ;;  %539 = vperm.xlu0 %4679, %v468_v26  }
  0x65   : > { %1054 = vperm.xlu1 %4680, %v981_v27   ;;  %542 = vperm.xlu0 %4679, %v469_v28   ;;  %v2062_v28 = vld [vmem:[%s4963_s14 + $0x30] sm:$0xff] }
  0x69   : > { %1057 = vperm.xlu1 %4680, %v982_v29   ;;  %545 = vperm.xlu0 %4679, %v470_v30  }
  0x6d   : > { %1060 = vperm.xlu1 %4680, %v983_v31   ;;  %548 = vperm.xlu0 %4679, %v471_v32   ;;  %v4512_v31 = vpack.c.bf16 %v415_v21, %v414_v20  ;;  %v2068_v20 = vld [vmem:[%s4963_s14 + $0x60] sm:$0xff] }
  0x71   : > { %1063 = vperm.xlu1 %4680, %v984_v33   ;;  %551 = vperm.xlu0 %4679, %v472_v34   ;;  %v416_v34 = vld [vmem:[%s7255_s3 + $0x120] sm:$0xff] }
  0x75   : > { %1066 = vperm.xlu1 %4680, %v985_v35   ;;  %554 = vperm.xlu0 %4679, %v473_v36   ;;  %v417_v35 = vld [vmem:[%s7255_s3 + $0x128] sm:$0xff] }
  0x79   : > { %1069 = vperm.xlu1 %4680, %v986_v37   ;;  %557 = vperm.xlu0 %4679, %v474_v38  }
  0x7d   : > { %1072 = vperm.xlu1 %4680, %v987_v39   ;;  %560 = vperm.xlu0 %4679, %v475_v40  }
  0x81   : > { %1075 = vperm.xlu1 %4680, %v988_v41   ;;  %563 = vperm.xlu0 %4679, %v476_v42   ;;  %v2065_v42 = vld [vmem:[%s4963_s14 + $0x48] sm:$0xff] }
  0x85   : > { %1078 = vperm.xlu1 %4680, %v989_v43   ;;  %566 = vperm.xlu0 %4679, %v477_v44   ;;  %v2064_v43 = vld [vmem:[%s4963_s14 + $0x40] sm:$0xff] }
  0x89   : > { %1081 = vperm.xlu1 %4680, %v990_v45   ;;  %569 = vperm.xlu0 %4679, %v478_v46  }
  0x8d   : > { %1084 = vperm.xlu1 %4680, %v991_v47   ;;  %572 = vperm.xlu0 %4679, %v479_v48   ;;  %v4515_v47 = vpack.c.bf16 %v417_v35, %v416_v34  ;;  %v2071_v35 = vld [vmem:[%s4963_s14 + $0x78] sm:$0xff] }
  0x91   : > { %1087 = vperm.xlu1 %4680, %v992_v50   ;;  %575 = vperm.xlu0 %4679, %v480_v51  }
  0x94   : > { %v4973_v57 = vpop.permute.xlu1 %485  ;;  %v4975_v58 = vpop.permute.xlu0 %482 }
  0x95   : > { %2096 = vperm.xlu1 %4680, %v2057_v55   ;;  %vm577_vm0 = vcmp.eq.s32.totalorder %v4957_v52, %v4975_v58  ;;  %vm579_vm1 = vcmp.eq.s32.totalorder %v4969_v54, %v4975_v58  ;;  %2091 = vperm.xlu0 %4679, %v2056_v56   ;;  %vm578_vm2 = vcmp.eq.s32.totalorder %v4966_v53, %v4975_v58 }
  0x96   : > { %vm582_vm3 = vcmp.eq.s32.totalorder %v4966_v53, %v4973_v57  ;;  %vm581_vm4 = vcmp.eq.s32.totalorder %v4957_v52, %v4973_v57  ;;  %v3826_v1 = vsel %vm579_vm1, 1.0, %v4691_v0  ;;  %v3825_v2 = vsel %vm578_vm2, 1.0, %v4691_v0 }
  0x97   : > { %v3824_v3 = vsel %vm577_vm0, 1.0, %v4691_v0  ;;  %v3829_v8 = vsel %vm582_vm3, 1.0, %v4691_v0  ;;  %vm580_vm13 = vcmp.eq.s32.totalorder %v4988_v61, %v4975_v58  ;;  %v3828_v24 = vsel %vm581_vm4, 1.0, %v4691_v0  ;;  %v418_v58 = vld [vmem:[%s7255_s3 + $0x130] sm:$0xff] }
  0x98   : > { %v4992_v62 = vpop.permute.xlu1 %997  ;;  %v995_v63 = vpop.permute.xlu0 %994  ;;  %vm584_vm0 = vcmp.eq.s32.totalorder %v4988_v61, %v4973_v57  ;;  %v3827_v36 = vsel %vm580_vm13, 1.0, %v4691_v0 }
  0x99   : > { %vm1094_vm5 = vcmp.eq.s32.totalorder %v4966_v53, %v4992_v62  ;;  %2106 = vperm.xlu1 %4680, %v2059_v59   ;;  %vm1089_vm6 = vcmp.eq.s32.totalorder %v4957_v52, %v995_v63  ;;  %vm1091_vm7 = vcmp.eq.s32.totalorder %v4969_v54, %v995_v63  ;;  %2101 = vperm.xlu0 %4679, %v2058_v60   ;;  %v3831_v48 = vsel %vm584_vm0, 1.0, %v4691_v0  ;;  %v419_v59 = vld [vmem:[%s7255_s3 + $0x138] sm:$0xff] }
  0x9a   : > { %vm1090_vm8 = vcmp.eq.s32.totalorder %v4966_v53, %v995_v63  ;;  %vm1093_vm9 = vcmp.eq.s32.totalorder %v4957_v52, %v4992_v62  ;;  %v3954_v9 = vsel %vm1091_vm7, 1.0, %v4691_v0  ;;  %v3952_v12 = vsel %vm1089_vm6, 1.0, %v4691_v0 }
  0x9b   : > { %v3953_v11 = vsel %vm1090_vm8, 1.0, %v4691_v0  ;;  %v5022_v13 = vadd.f32 %v3954_v9, %v3826_v1  ;;  %v1473_v17 = vadd.f32 %v3952_v12, %v3824_v3  ;;  %v3957_v18 = vsel %vm1094_vm5, 1.0, %v4691_v0  ;;  %v2067_v1 = vld [vmem:[%s4963_s14 + $0x58] sm:$0xff] }
  0x9c   : > { %v5024_v14 = vpop.permute.xlu1 %1000  ;;  %v5026_v15 = vpop.permute.xlu0 %488  ;;  %v1474_v16 = vadd.f32 %v3953_v11, %v3825_v2  ;;  %vm1092_vm11 = vcmp.eq.s32.totalorder %v4988_v61, %v995_v63  ;;  %v1478_v22 = vadd.f32 %v3957_v18, %v3829_v8  ;;  %v3956_v25 = vsel %vm1093_vm9, 1.0, %v4691_v0  ;;  %v2066_v2 = vld [vmem:[%s4963_s14 + $0x50] sm:$0xff]  ;;  %v420_v11 = vld [vmem:[%s7255_s3 + $0x140] sm:$0xff] }
  0x9d   : > { %vm1098_vm10 = vcmp.eq.s32.totalorder %v4966_v53, %v5024_v14  ;;  %2116 = vperm.xlu1 %4680, %v2061_v4   ;;  %vm586_vm12 = vcmp.eq.s32.totalorder %v4966_v53, %v5026_v15  ;;  %2111 = vperm.xlu0 %4679, %v2060_v10   ;;  %vm1097_vm14 = vcmp.eq.s32.totalorder %v4957_v52, %v5024_v14  ;;  %v3955_v32 = vsel %vm1092_vm11, 1.0, %v4691_v0 }
  0x9e   : > { %1665 = vmatprep.mubr.f32.mxu0 %v1474_v16  ;;  %vm585_vm15 = vcmp.eq.s32.totalorder %v4957_v52, %v5026_v15  ;;  %v3833_v29 = vsel %vm586_vm12, 1.0, %v4691_v0  ;;  %v3961_v30 = vsel %vm1098_vm10, 1.0, %v4691_v0  ;;  %vm1096_vm2 = vcmp.eq.s32.totalorder %v4988_v61, %v4992_v62 }
  0x9f   : > { %1666 = vmatmul.mubr.f32.vlgmr.msra.gmra.mrb[0].mxu0 %v1473_v17  ;;  %v1477_v33 = vadd.f32 %v3956_v25, %v3828_v24  ;;  %v1482_v37 = vadd.f32 %v3961_v30, %v3833_v29  ;;  %v3832_v38 = vsel %vm585_vm15, 1.0, %v4691_v0  ;;  %v3960_v39 = vsel %vm1097_vm14, 1.0, %v4691_v0  ;;  %v423_v29 = vld [vmem:[%s7255_s3 + $0x158] sm:$0xff] }
  0xa0   : > { %v5058_v26 = vpop.permute.xlu1 %1003  ;;  %v5060_v27 = vpop.permute.xlu0 %491  ;;  %4510 = vmatpush1.bf16.msra.mxu0 %v4509_v19  ;;  %1670 = vmatprep.mubr.f32.mxu0 %v1478_v22  ;;  %v5119_v46 = vadd.f32 %v3955_v32, %v3827_v36  ;;  %v3959_v49 = vsel %vm1096_vm2, 1.0, %v4691_v0  ;;  %vm583_vm7 = vcmp.eq.s32.totalorder %v4969_v54, %v4973_v57  ;;  %vm1095_vm8 = vcmp.eq.s32.totalorder %v4969_v54, %v4992_v62  ;;  %v421_v57 = vld [vmem:[%s7255_s3 + $0x148] sm:$0xff]  ;;  %v2070_v36 = vld [vmem:[%s4963_s14 + $0x70] sm:$0xff] }
  0xa1   : > { %vm1102_vm1 = vcmp.eq.s32.totalorder %v4966_v53, %v5058_v26  ;;  %vm590_vm3 = vcmp.eq.s32.totalorder %v4966_v53, %v5060_v27  ;;  %2126 = vperm.xlu1 %4680, %v2063_v23   ;;  %vm1101_vm4 = vcmp.eq.s32.totalorder %v4957_v52, %v5058_v26  ;;  %2121 = vperm.xlu0 %4679, %v2062_v28   ;;  %v3830_v7 = vsel %vm583_vm7, 1.0, %v4691_v0  ;;  %v2069_v19 = vld [vmem:[%s4963_s14 + $0x68] sm:$0xff]  ;;  %v422_v28 = vld [vmem:[%s7255_s3 + $0x150] sm:$0xff] }
  0xa2   : > { %4511 = vmatprep.subr.bf16.mxu0 %v4690_v6  ;;  %vm589_vm5 = vcmp.eq.s32.totalorder %v4957_v52, %v5060_v27  ;;  %v3837_v44 = vsel %vm590_vm3, 1.0, %v4691_v0  ;;  %v3965_v45 = vsel %vm1102_vm1, 1.0, %v4691_v0  ;;  %v1481_v50 = vadd.f32 %v3960_v39, %v3832_v38 }
  0xa3   : > { %1671 = vmatmul.mubr.f32.gmra.mrb[2].mxu0 %v1477_v33  ;;  %v1486_v51 = vadd.f32 %v3965_v45, %v3837_v44  ;;  %v3836_v55 = vsel %vm589_vm5, 1.0, %v4691_v0  ;;  %v3964_v56 = vsel %vm1101_vm4, 1.0, %v4691_v0  ;;  %v5170_v5 = vadd.f32 %v3959_v49, %v3831_v48  ;;  %v424_v49 = vld [vmem:[%s7255_s3 + $0x160] sm:$0xff] }
  0xa4   : > { %v5105_v40 = vpop.permute.xlu1 %1006  ;;  %v5107_v41 = vpop.permute.xlu0 %494  ;;  %1675 = vmatprep.mubr.f32.mxu0 %v1482_v37  ;;  %4513 = vmatpush1.bf16.msra.mxu0 %v4512_v31  ;;  %v3958_v8 = vsel %vm1095_vm8, 1.0, %v4691_v0  ;;  %v1485_v9 = vadd.f32 %v3964_v56, %v3836_v55  ;;  %v4518_v10 = vpack.c.bf16 %v419_v59, %v418_v58  ;;  %v4521_v24 = vpack.c.bf16 %v421_v57, %v420_v11  ;;  %v2073_v56 = vld [vmem:[%s4963_s14 + $0x88] sm:$0xff]  ;;  %v2072_v58 = vld [vmem:[%s4963_s14 + $0x80] sm:$0xff] }
  0xa5   : > { %vm1106_vm6 = vcmp.eq.s32.totalorder %v4966_v53, %v5105_v40  ;;  %vm594_vm9 = vcmp.eq.s32.totalorder %v4966_v53, %v5107_v41  ;;  %vm1105_vm10 = vcmp.eq.s32.totalorder %v4957_v52, %v5105_v40  ;;  %2136 = vperm.xlu1 %4680, %v2065_v42   ;;  %2131 = vperm.xlu0 %4679, %v2064_v43  }
  0xa6   : > { %vm593_vm11 = vcmp.eq.s32.totalorder %v4957_v52, %v5107_v41  ;;  %4514 = vmatprep.subr.bf16.mxu0 %v4690_v6  ;;  %v3841_v3 = vsel %vm594_vm9, 1.0, %v4691_v0  ;;  %v3969_v4 = vsel %vm1106_vm6, 1.0, %v4691_v0  ;;  %v3968_v16 = vsel %vm1105_vm10, 1.0, %v4691_v0 }
  0xa7   : > { %1676 = vmatmul.mubr.f32.gmra.mrb[4].mxu0 %v1481_v50  ;;  %v1490_v62 = vadd.f32 %v3969_v4, %v3841_v3  ;;  %v3840_v12 = vsel %vm593_vm11, 1.0, %v4691_v0  ;;  %v5217_v23 = vadd.f32 %v3958_v8, %v3830_v7  ;;  %vm1100_vm1 = vcmp.eq.s32.totalorder %v4988_v61, %v5024_v14  ;;  %v425_v50 = vld [vmem:[%s7255_s3 + $0x168] sm:$0xff] }
  0xa8   : > { %v5155_v60 = vpop.permute.xlu1 %1009  ;;  %v5157_v63 = vpop.permute.xlu0 %497  ;;  %1680 = vmatprep.mubr.f32.mxu0 %v1486_v51  ;;  %4516 = vmatpush1.bf16.msra.mxu0 %v4515_v47  ;;  %vm588_vm2 = vcmp.eq.s32.totalorder %v4988_v61, %v5026_v15  ;;  %v1489_v25 = vadd.f32 %v3968_v16, %v3840_v12  ;;  %v4524_v39 = vpack.c.bf16 %v423_v29, %v422_v28  ;;  %v3963_v43 = vsel %vm1100_vm1, 1.0, %v4691_v0  ;;  %v2075_v12 = vld [vmem:[%s4963_s14 + $0x98] sm:$0xff]  ;;  %v2074_v16 = vld [vmem:[%s4963_s14 + $0x90] sm:$0xff]  ;;  %v429_v28 = vld [vmem:[%s7255_s3 + $0x188] sm:$0xff] }
  0xa9   : > { %vm1110_vm12 = vcmp.eq.s32.totalorder %v4966_v53, %v5155_v60  ;;  %vm598_vm13 = vcmp.eq.s32.totalorder %v4966_v53, %v5157_v63  ;;  %vm1109_vm14 = vcmp.eq.s32.totalorder %v4957_v52, %v5155_v60  ;;  %2146 = vperm.xlu1 %4680, %v2067_v1   ;;  %2141 = vperm.xlu0 %4679, %v2066_v2   ;;  %v3835_v42 = vsel %vm588_vm2, 1.0, %v4691_v0 }
  0xaa   : > { %vm597_vm15 = vcmp.eq.s32.totalorder %v4957_v52, %v5157_v63  ;;  %v3845_v21 = vsel %vm598_vm13, 1.0, %v4691_v0  ;;  %v3973_v22 = vsel %vm1110_vm12, 1.0, %v4691_v0  ;;  %4517 = vmatprep.subr.bf16.mxu0 %v4690_v6  ;;  %v3972_v32 = vsel %vm1109_vm14, 1.0, %v4691_v0 }
  0xab   : > { %1681 = vmatmul.mubr.f32.gmra.mrb[6].mxu0 %v1485_v9  ;;  %v1494_v30 = vadd.f32 %v3973_v22, %v3845_v21  ;;  %v3844_v31 = vsel %vm597_vm15, 1.0, %v4691_v0  ;;  %vm1099_vm7 = vcmp.eq.s32.totalorder %v4969_v54, %v5024_v14  ;;  %vm587_vm8 = vcmp.eq.s32.totalorder %v4969_v54, %v5026_v15  ;;  %v426_v9 = vld [vmem:[%s7255_s3 + $0x170] sm:$0xff]  ;;  %v427_v15 = vld [vmem:[%s7255_s3 + $0x178] sm:$0xff] }
  0xac   : > { %v5202_v17 = vpop.permute.xlu1 %1012  ;;  %v5204_v18 = vpop.permute.xlu0 %500  ;;  %1685 = vmatprep.mubr.f32.mxu0 %v1490_v62  ;;  %4519 = vmatpush1.bf16.msra.mxu0 %v4518_v10  ;;  %v1493_v44 = vadd.f32 %v3972_v32, %v3844_v31  ;;  %v5309_v2 = vadd.f32 %v3963_v43, %v3835_v42  ;;  %v3834_v3 = vsel %vm587_vm8, 1.0, %v4691_v0  ;;  %v3962_v4 = vsel %vm1099_vm7, 1.0, %v4691_v0 }
  0xad   : > { %vm1114_vm0 = vcmp.eq.s32.totalorder %v4966_v53, %v5202_v17  ;;  %vm602_vm3 = vcmp.eq.s32.totalorder %v4966_v53, %v5204_v18  ;;  %2156 = vperm.xlu1 %4680, %v2069_v19   ;;  %2151 = vperm.xlu0 %4679, %v2068_v20   ;;  %vm1113_vm4 = vcmp.eq.s32.totalorder %v4957_v52, %v5202_v17 }
  0xae   : > { %vm601_vm5 = vcmp.eq.s32.totalorder %v4957_v52, %v5204_v18  ;;  %v3849_v37 = vsel %vm602_vm3, 1.0, %v4691_v0  ;;  %v3977_v38 = vsel %vm1114_vm0, 1.0, %v4691_v0  ;;  %4520 = vmatprep.subr.bf16.mxu0 %v4690_v6  ;;  %v3976_v48 = vsel %vm1113_vm4, 1.0, %v4691_v0 }
  0xaf   : > { %1686 = vmatmul.mubr.f32.gmra.mrb[8].mxu0 %v1489_v25  ;;  %v1498_v45 = vadd.f32 %v3977_v38, %v3849_v37  ;;  %v3848_v47 = vsel %vm601_vm5, 1.0, %v4691_v0  ;;  %v4527_v8 = vpack.c.bf16 %v425_v50, %v424_v49  ;;  %v5356_v21 = vadd.f32 %v3962_v4, %v3834_v3  ;;  %v428_v25 = vld [vmem:[%s7255_s3 + $0x180] sm:$0xff]  ;;  %v430_v50 = vld [vmem:[%s7255_s3 + $0x190] sm:$0xff] }
  0xb0   : > { %v5245_v33 = vpop.permute.xlu1 %1015  ;;  %v5247_v34 = vpop.permute.xlu0 %503  ;;  %1690 = vmatprep.mubr.f32.mxu0 %v1494_v30  ;;  %4522 = vmatpush1.bf16.msra.mxu0 %v4521_v24  ;;  %v1497_v7 = vadd.f32 %v3976_v48, %v3848_v47  ;;  %v4530_v22 = vpack.c.bf16 %v427_v15, %v426_v9  ;;  %vm1104_vm1 = vcmp.eq.s32.totalorder %v4988_v61, %v5058_v26  ;;  %v2076_v37 = vld [vmem:[%s4963_s14 + $0xa0] sm:$0xff]  ;;  %v2078_v3 = vld [vmem:[%s4963_s14 + $0xb0] sm:$0xff] }
  0xb1   : > { %vm1118_vm6 = vcmp.eq.s32.totalorder %v4966_v53, %v5245_v33  ;;  %vm606_vm9 = vcmp.eq.s32.totalorder %v4966_v53, %v5247_v34  ;;  %vm1117_vm10 = vcmp.eq.s32.totalorder %v4957_v52, %v5245_v33  ;;  %2166 = vperm.xlu1 %4680, %v2071_v35   ;;  %2161 = vperm.xlu0 %4679, %v2070_v36   ;;  %v2077_v36 = vld [vmem:[%s4963_s14 + $0xa8] sm:$0xff] }
  0xb2   : > { %vm605_vm11 = vcmp.eq.s32.totalorder %v4957_v52, %v5247_v34  ;;  %v3853_v59 = vsel %vm606_vm9, 1.0, %v4691_v0  ;;  %v3981_v1 = vsel %vm1118_vm6, 1.0, %v4691_v0  ;;  %4523 = vmatprep.subr.bf16.mxu0 %v4690_v6  ;;  %v3980_v11 = vsel %vm1117_vm10, 1.0, %v4691_v0 }
  0xb3   : > { %1691 = vmatmul.mubr.f32.gmra.mrb[10].mxu0 %v1493_v44  ;;  %v1502_v14 = vadd.f32 %v3981_v1, %v3853_v59  ;;  %v3852_v10 = vsel %vm605_vm11, 1.0, %v4691_v0  ;;  %vm592_vm2 = vcmp.eq.s32.totalorder %v4988_v61, %v5060_v27  ;;  %v4533_v42 = vpack.c.bf16 %v429_v28, %v428_v25  ;;  %v2079_v1 = vld [vmem:[%s4963_s14 + $0xb8] sm:$0xff] }
  0xb4   : > { %v5294_v51 = vpop.permute.xlu1 %1018  ;;  %v5296_v55 = vpop.permute.xlu0 %506  ;;  %1695 = vmatprep.mubr.f32.mxu0 %v1498_v45  ;;  %4525 = vmatpush1.bf16.msra.mxu0 %v4524_v39  ;;  %v1501_v24 = vadd.f32 %v3980_v11, %v3852_v10  ;;  %v3839_v43 = vsel %vm592_vm2, 1.0, %v4691_v0  ;;  %v3967_v44 = vsel %vm1104_vm1, 1.0, %v4691_v0  ;;  %vm1103_vm7 = vcmp.eq.s32.totalorder %v4969_v54, %v5058_v26  ;;  %v432_v11 = vld [vmem:[%s7255_s3 + $0x1a0] sm:$0xff] }
  0xb5   : > { %vm1122_vm12 = vcmp.eq.s32.totalorder %v4966_v53, %v5294_v51  ;;  %vm610_vm13 = vcmp.eq.s32.totalorder %v4966_v53, %v5296_v55  ;;  %vm1121_vm14 = vcmp.eq.s32.totalorder %v4957_v52, %v5294_v51  ;;  %2176 = vperm.xlu1 %4680, %v2073_v56   ;;  %2171 = vperm.xlu0 %4679, %v2072_v58   ;;  %v431_v56 = vld [vmem:[%s7255_s3 + $0x198] sm:$0xff]  ;;  %v3966_v15 = vsel %vm1103_vm7, 1.0, %v4691_v0 }
  0xb6   : > { %vm609_vm15 = vcmp.eq.s32.totalorder %v4957_v52, %v5296_v55  ;;  %v3857_v19 = vsel %vm610_vm13, 1.0, %v4691_v0  ;;  %v3985_v20 = vsel %vm1122_vm12, 1.0, %v4691_v0  ;;  %4526 = vmatprep.subr.bf16.mxu0 %v4690_v6  ;;  %v3984_v31 = vsel %vm1121_vm14, 1.0, %v4691_v0 }
  0xb7   : > { %1696 = vmatmul.mubr.f32.gmra.mrb[12].mxu0 %v1497_v7  ;;  %v1506_v29 = vadd.f32 %v3985_v20, %v3857_v19  ;;  %v3856_v30 = vsel %vm609_vm15, 1.0, %v4691_v0  ;;  %vm591_vm8 = vcmp.eq.s32.totalorder %v4969_v54, %v5060_v27  ;;  %v4536_v10 = vpack.c.bf16 %v431_v56, %v430_v50  ;;  %v433_v27 = vld [vmem:[%s7255_s3 + $0x1a8] sm:$0xff] }
  0xb8   : > { %v5341_v57 = vpop.permute.xlu1 %1021  ;;  %v5343_v62 = vpop.permute.xlu0 %509  ;;  %1700 = vmatprep.mubr.f32.mxu0 %v1502_v14  ;;  %4528 = vmatpush1.bf16.msra.mxu0 %v4527_v8  ;;  %v1505_v45 = vadd.f32 %v3984_v31, %v3856_v30  ;;  %v5448_v8 = vadd.f32 %v3967_v44, %v3839_v43  ;;  %v3838_v9 = vsel %vm591_vm8, 1.0, %v4691_v0  ;;  %v4539_v30 = vpack.c.bf16 %v433_v27, %v432_v11  ;;  %v2085_v27 = vld [vmem:[%s4963_s14 + $0xe8] sm:$0xff] }
  0xb9   : > { %vm1126_vm0 = vcmp.eq.s32.totalorder %v4966_v53, %v5341_v57  ;;  %vm614_vm3 = vcmp.eq.s32.totalorder %v4966_v53, %v5343_v62  ;;  %2186 = vperm.xlu1 %4680, %v2075_v12   ;;  %2181 = vperm.xlu0 %4679, %v2074_v16   ;;  %vm1125_vm4 = vcmp.eq.s32.totalorder %v4957_v52, %v5341_v57 }
  0xba   : > { %vm613_vm5 = vcmp.eq.s32.totalorder %v4957_v52, %v5343_v62  ;;  %v3861_v38 = vsel %vm614_vm3, 1.0, %v4691_v0  ;;  %v3989_v39 = vsel %vm1126_vm0, 1.0, %v4691_v0  ;;  %4529 = vmatprep.subr.bf16.mxu0 %v4690_v6  ;;  %v3988_v49 = vsel %vm1125_vm4, 1.0, %v4691_v0 }
  0xbb   : > { %1701 = vmatmul.mubr.f32.gmra.mrb[14].mxu0 %v1501_v24  ;;  %v1510_v47 = vadd.f32 %v3989_v39, %v3861_v38  ;;  %v3860_v48 = vsel %vm613_vm5, 1.0, %v4691_v0  ;;  %v2080_v24 = vld [vmem:[%s4963_s14 + $0xc0] sm:$0xff]  ;;  %vm1108_vm1 = vcmp.eq.s32.totalorder %v4988_v61, %v5105_v40  ;;  %vm596_vm2 = vcmp.eq.s32.totalorder %v4988_v61, %v5107_v41 }
  0xbc   : > { %v5384_v32 = vpop.permute.xlu1 %1024  ;;  %v5386_v35 = vpop.permute.xlu0 %512  ;;  %1705 = vmatprep.mubr.f32.mxu0 %v1506_v29  ;;  %4531 = vmatpush1.bf16.msra.mxu0 %v4530_v22  ;;  %v1509_v14 = vadd.f32 %v3988_v49, %v3860_v48  ;;  %v2081_v22 = vld [vmem:[%s4963_s14 + $0xc8] sm:$0xff]  ;;  %v5495_v29 = vadd.f32 %v3966_v15, %v3838_v9  ;;  %v3843_v56 = vsel %vm596_vm2, 1.0, %v4691_v0  ;;  %vm1107_vm7 = vcmp.eq.s32.totalorder %v4969_v54, %v5105_v40  ;;  %v436_v15 = vld [vmem:[%s7255_s3 + $0x1c0] sm:$0xff] }
  0xbd   : > { %vm1130_vm6 = vcmp.eq.s32.totalorder %v4966_v53, %v5384_v32  ;;  %vm618_vm9 = vcmp.eq.s32.totalorder %v4966_v53, %v5386_v35  ;;  %vm1129_vm10 = vcmp.eq.s32.totalorder %v4957_v52, %v5384_v32  ;;  %2196 = vperm.xlu1 %4680, %v2077_v36   ;;  %2191 = vperm.xlu0 %4679, %v2076_v37   ;;  %v434_v36 = vld [vmem:[%s7255_s3 + $0x1b0] sm:$0xff]  ;;  %v435_v37 = vld [vmem:[%s7255_s3 + $0x1b8] sm:$0xff] }
  0xbe   : > { %vm617_vm11 = vcmp.eq.s32.totalorder %v4957_v52, %v5386_v35  ;;  %v3865_v4 = vsel %vm618_vm9, 1.0, %v4691_v0  ;;  %v3993_v7 = vsel %vm1130_vm6, 1.0, %v4691_v0  ;;  %4532 = vmatprep.subr.bf16.mxu0 %v4690_v6  ;;  %v3992_v16 = vsel %vm1129_vm10, 1.0, %v4691_v0 }
  0xbf   : > { %1706 = vmatmul.mubr.f32.gmra.mrb[16].mxu0 %v1505_v45  ;;  %v1514_v26 = vadd.f32 %v3993_v7, %v3865_v4  ;;  %v3864_v12 = vsel %vm617_vm11, 1.0, %v4691_v0  ;;  %v2083_v45 = vld [vmem:[%s4963_s14 + $0xd8] sm:$0xff]  ;;  %v4542_v50 = vpack.c.bf16 %v435_v37, %v434_v36  ;;  %vm595_vm8 = vcmp.eq.s32.totalorder %v4969_v54, %v5107_v41 }
  0xc0   : > { %v5433_v58 = vpop.permute.xlu1 %1027  ;;  %v5435_v59 = vpop.permute.xlu0 %515  ;;  %1710 = vmatprep.mubr.f32.mxu0 %v1510_v47  ;;  %4534 = vmatpush1.bf16.msra.mxu0 %v4533_v42  ;;  %v1513_v31 = vadd.f32 %v3992_v16, %v3864_v12  ;;  %v2082_v47 = vld [vmem:[%s4963_s14 + $0xd0] sm:$0xff]  ;;  %v439_v41 = vld [vmem:[%s7255_s3 + $0x1d8] sm:$0xff]  ;;  %vm600_vm2 = vcmp.eq.s32.totalorder %v4988_v61, %v5157_v63 }
  0xc1   : > { %vm1134_vm12 = vcmp.eq.s32.totalorder %v4966_v53, %v5433_v58  ;;  %vm622_vm13 = vcmp.eq.s32.totalorder %v4966_v53, %v5435_v59  ;;  %vm1133_vm14 = vcmp.eq.s32.totalorder %v4957_v52, %v5433_v58  ;;  %2206 = vperm.xlu1 %4680, %v2079_v1   ;;  %2201 = vperm.xlu0 %4679, %v2078_v3   ;;  %v3971_v1 = vsel %vm1108_vm1, 1.0, %v4691_v0 }
  0xc2   : > { %vm621_vm15 = vcmp.eq.s32.totalorder %v4957_v52, %v5435_v59  ;;  %v3869_v25 = vsel %vm622_vm13, 1.0, %v4691_v0  ;;  %v3997_v28 = vsel %vm1134_vm12, 1.0, %v4691_v0  ;;  %4535 = vmatprep.subr.bf16.mxu0 %v4690_v6  ;;  %v3996_v42 = vsel %vm1133_vm14, 1.0, %v4691_v0 }
  0xc3   : > { %1711 = vmatmul.mubr.f32.gmra.mrb[18].mxu0 %v1509_v14  ;;  %v1518_v38 = vadd.f32 %v3997_v28, %v3869_v25  ;;  %v3868_v39 = vsel %vm621_vm15, 1.0, %v4691_v0  ;;  %v437_v14 = vld [vmem:[%s7255_s3 + $0x1c8] sm:$0xff]  ;;  %v3970_v25 = vsel %vm1107_vm7, 1.0, %v4691_v0  ;;  %vm1112_vm1 = vcmp.eq.s32.totalorder %v4988_v61, %v5155_v60 }
  0xc4   : > { %v5480_v19 = vpop.permute.xlu1 %1030  ;;  %v5482_v20 = vpop.permute.xlu0 %518  ;;  %1715 = vmatprep.mubr.f32.mxu0 %v1514_v26  ;;  %4537 = vmatpush1.bf16.msra.mxu0 %v4536_v10  ;;  %v1517_v3 = vadd.f32 %v3996_v42, %v3868_v39  ;;  %v2084_v26 = vld [vmem:[%s4963_s14 + $0xe0] sm:$0xff]  ;;  %v2087_v42 = vld [vmem:[%s4963_s14 + $0xf8] sm:$0xff]  ;;  %vm1111_vm7 = vcmp.eq.s32.totalorder %v4969_v54, %v5155_v60 }
  0xc5   : > { %vm1138_vm0 = vcmp.eq.s32.totalorder %v4966_v53, %v5480_v19  ;;  %vm626_vm3 = vcmp.eq.s32.totalorder %v4966_v53, %v5482_v20  ;;  %2216 = vperm.xlu1 %4680, %v2081_v22   ;;  %2211 = vperm.xlu0 %4679, %v2080_v24   ;;  %vm1137_vm4 = vcmp.eq.s32.totalorder %v4957_v52, %v5480_v19  ;;  %v3842_v24 = vsel %vm595_vm8, 1.0, %v4691_v0 }
  0xc6   : > { %vm625_vm5 = vcmp.eq.s32.totalorder %v4957_v52, %v5482_v20  ;;  %v3873_v48 = vsel %vm626_vm3, 1.0, %v4691_v0  ;;  %v4001_v49 = vsel %vm1138_vm0, 1.0, %v4691_v0  ;;  %4538 = vmatprep.subr.bf16.mxu0 %v4690_v6  ;;  %v4000_v9 = vsel %vm1137_vm4, 1.0, %v4691_v0 }
  0xc7   : > { %1716 = vmatmul.mubr.f32.gmra.mrb[20].mxu0 %v1513_v31  ;;  %v1522_v4 = vadd.f32 %v4001_v49, %v3873_v48  ;;  %v3872_v7 = vsel %vm625_vm5, 1.0, %v4691_v0  ;;  %v5587_v22 = vadd.f32 %v3971_v1, %v3843_v56  ;;  %v438_v31 = vld [vmem:[%s7255_s3 + $0x1d0] sm:$0xff]  ;;  %v5634_v49 = vadd.f32 %v3970_v25, %v3842_v24  ;;  %v440_v1 = vld [vmem:[%s7255_s3 + $0x1e0] sm:$0xff] }
  0xc8   : > { %v5523_v43 = vpop.permute.xlu1 %1033  ;;  %v5525_v44 = vpop.permute.xlu0 %521  ;;  %1720 = vmatprep.mubr.f32.mxu0 %v1518_v38  ;;  %4540 = vmatpush1.bf16.msra.mxu0 %v4539_v30  ;;  %v1521_v28 = vadd.f32 %v4000_v9, %v3872_v7  ;;  %v4545_v30 = vpack.c.bf16 %v437_v14, %v436_v15  ;;  %v3975_v24 = vsel %vm1112_vm1, 1.0, %v4691_v0  ;;  %vm599_vm8 = vcmp.eq.s32.totalorder %v4969_v54, %v5157_v63 }
  0xc9   : > { %vm1142_vm6 = vcmp.eq.s32.totalorder %v4966_v53, %v5523_v43  ;;  %vm630_vm9 = vcmp.eq.s32.totalorder %v4966_v53, %v5525_v44  ;;  %vm1141_vm10 = vcmp.eq.s32.totalorder %v4957_v52, %v5523_v43  ;;  %2226 = vperm.xlu1 %4680, %v2083_v45   ;;  %2221 = vperm.xlu0 %4679, %v2082_v47   ;;  %v2086_v45 = vld [vmem:[%s4963_s14 + $0xf0] sm:$0xff] }
  0xca   : > { %vm629_vm11 = vcmp.eq.s32.totalorder %v4957_v52, %v5525_v44  ;;  %v3877_v12 = vsel %vm630_vm9, 1.0, %v4691_v0  ;;  %v4005_v16 = vsel %vm1142_vm6, 1.0, %v4691_v0  ;;  %4541 = vmatprep.subr.bf16.mxu0 %v4690_v6  ;;  %v4004_v37 = vsel %vm1141_vm10, 1.0, %v4691_v0 }
  0xcb   : > { %1721 = vmatmul.mubr.f32.gmra.mrb[22].mxu0 %v1517_v3  ;;  %v1526_v40 = vadd.f32 %v4005_v16, %v3877_v12  ;;  %v3876_v36 = vsel %vm629_vm11, 1.0, %v4691_v0  ;;  %v441_v3 = vld [vmem:[%s7255_s3 + $0x1e8] sm:$0xff]  ;;  %v3847_v16 = vsel %vm600_vm2, 1.0, %v4691_v0  ;;  %vm1116_vm1 = vcmp.eq.s32.totalorder %v4988_v61, %v5202_v17 }
  0xcc   : > { %v5572_v10 = vpop.permute.xlu1 %1036  ;;  %v5574_v11 = vpop.permute.xlu0 %524  ;;  %1725 = vmatprep.mubr.f32.mxu0 %v1522_v4  ;;  %4543 = vmatpush1.bf16.msra.mxu0 %v4542_v50  ;;  %v4548_v50 = vpack.c.bf16 %v439_v41, %v438_v31  ;;  %v1525_v56 = vadd.f32 %v4004_v37, %v3876_v36  ;;  %v4551_v12 = vpack.c.bf16 %v441_v3, %v440_v1  ;;  %v442_v41 = vld [vmem:[%s7255_s3 + $0x1f0] sm:$0xff] }
  0xcd   : > { %vm1146_vm12 = vcmp.eq.s32.totalorder %v4966_v53, %v5572_v10  ;;  %vm634_vm13 = vcmp.eq.s32.totalorder %v4966_v53, %v5574_v11  ;;  %vm1145_vm14 = vcmp.eq.s32.totalorder %v4957_v52, %v5572_v10  ;;  %2236 = vperm.xlu1 %4680, %v2085_v27   ;;  %2231 = vperm.xlu0 %4679, %v2084_v26  }
  0xce   : > { %vm633_vm15 = vcmp.eq.s32.totalorder %v4957_v52, %v5574_v11  ;;  %v3881_v47 = vsel %vm634_vm13, 1.0, %v4691_v0  ;;  %v4009_v48 = vsel %vm1146_vm12, 1.0, %v4691_v0  ;;  %4544 = vmatprep.subr.bf16.mxu0 %v4690_v6  ;;  %v4008_v9 = vsel %vm1145_vm14, 1.0, %v4691_v0 }
  0xcf   : > { %1726 = vmatmul.mubr.f32.gmra.mrb[24].mxu0 %v1521_v28  ;;  %v1530_v4 = vadd.f32 %v4009_v48, %v3881_v47  ;;  %v3880_v7 = vsel %vm633_vm15, 1.0, %v4691_v0  ;;  %v5716_v47 = vadd.f32 %v3975_v24, %v3847_v16  ;;  %v3846_v48 = vsel %vm599_vm8, 1.0, %v4691_v0 }
  0xd0   : > { %v5619_v38 = vpop.permute.xlu1 %1039  ;;  %v5621_v39 = vpop.permute.xlu0 %527  ;;  %1730 = vmatprep.mubr.f32.mxu0 %v1526_v40  ;;  %4546 = vmatpush1.bf16.msra.mxu0 %v4545_v30  ;;  %v1529_v25 = vadd.f32 %v4008_v9, %v3880_v7  ;;  %v443_v40 = vld [vmem:[%s7255_s3 + $0x1f8] sm:$0xff]  ;;  %vm604_vm2 = vcmp.eq.s32.totalorder %v4988_v61, %v5204_v18  ;;  %vm603_vm8 = vcmp.eq.s32.totalorder %v4969_v54, %v5204_v18 }
  0xd1   : > { %vm1150_vm0 = vcmp.eq.s32.totalorder %v4966_v53, %v5619_v38  ;;  %vm638_vm3 = vcmp.eq.s32.totalorder %v4966_v53, %v5621_v39  ;;  %2246 = vperm.xlu1 %4680, %v2087_v42   ;;  %2241 = vperm.xlu0 %4679, %v2086_v45   ;;  %vm1149_vm4 = vcmp.eq.s32.totalorder %v4957_v52, %v5619_v38 }
  0xd2   : > { %vm637_vm5 = vcmp.eq.s32.totalorder %v4957_v52, %v5621_v39  ;;  %v3885_v27 = vsel %vm638_vm3, 1.0, %v4691_v0  ;;  %v4013_v26 = vsel %vm1150_vm0, 1.0, %v4691_v0  ;;  %4547 = vmatprep.subr.bf16.mxu0 %v4690_v6  ;;  %v4012_v31 = vsel %vm1149_vm4, 1.0, %v4691_v0 }
  0xd3   : > { %1731 = vmatmul.mubr.f32.gmra.mrb[26].mxu0 %v1525_v56  ;;  %v1534_v28 = vadd.f32 %v4013_v26, %v3885_v27  ;;  %v3884_v30 = vsel %vm637_vm5, 1.0, %v4691_v0  ;;  %v4554_v1 = vpack.c.bf16 %v443_v40, %v442_v41  ;;  %v3851_v41 = vsel %vm604_vm2, 1.0, %v4691_v0 }
  0xd4   : > { %v5662_v15 = vpop.permute.xlu1 %1042  ;;  %v5664_v14 = vpop.permute.xlu0 %530  ;;  %1735 = vmatprep.mubr.f32.mxu0 %v1530_v4  ;;  %4549 = vmatpush1.bf16.msra.mxu0 %v4548_v50  ;;  %v3974_v50 = vsel %vm1111_vm7, 1.0, %v4691_v0  ;;  %v1533_v56 = vadd.f32 %v4012_v31, %v3884_v30  ;;  %v3979_v40 = vsel %vm1116_vm1, 1.0, %v4691_v0  ;;  %vm1115_vm7 = vcmp.eq.s32.totalorder %v4969_v54, %v5202_v17 }
  0xd5   : > { %vm1154_vm6 = vcmp.eq.s32.totalorder %v4966_v53, %v5662_v15  ;;  %vm642_vm9 = vcmp.eq.s32.totalorder %v4966_v53, %v5664_v14  ;;  %vm1153_vm10 = vcmp.eq.s32.totalorder %v4957_v52, %v5662_v15  ;;  %4550 = vmatprep.subr.bf16.mxu0 %v4690_v6  ;;  %vm641_vm11 = vcmp.eq.s32.totalorder %v4957_v52, %v5664_v14 }
  0xd6   : > { %v3889_v42 = vsel %vm642_vm9, 1.0, %v4691_v0  ;;  %v4017_v45 = vsel %vm1154_vm6, 1.0, %v4691_v0  ;;  %v3888_v63 = vsel %vm641_vm11, 1.0, %v4691_v0  ;;  %v4016_v60 = vsel %vm1153_vm10, 1.0, %v4691_v0 }
  0xd7   : > { %1736 = vmatmul.mubr.f32.gmra.mrb[28].mxu0 %v1529_v25  ;;  %v1538_v3 = vadd.f32 %v4017_v45, %v3889_v42  ;;  %v5752_v26 = vadd.f32 %v3974_v50, %v3846_v48  ;;  %vm1120_vm1 = vcmp.eq.s32.totalorder %v4988_v61, %v5245_v33  ;;  %vm608_vm2 = vcmp.eq.s32.totalorder %v4988_v61, %v5247_v34 }
  0xd8   : > { %v5707_v36 = vpop.permute.xlu1 %1045  ;;  %v5709_v37 = vpop.permute.xlu0 %533  ;;  %1740 = vmatprep.mubr.f32.mxu0 %v1534_v28  ;;  %4552 = vmatpush1.bf16.msra.mxu0 %v4551_v12 }
  0xd9   : > { %vm1158_vm12 = vcmp.eq.s32.totalorder %v4966_v53, %v5707_v36  ;;  %vm646_vm13 = vcmp.eq.s32.totalorder %v4966_v53, %v5709_v37  ;;  %vm1157_vm14 = vcmp.eq.s32.totalorder %v4957_v52, %v5707_v36  ;;  %4553 = vmatprep.subr.bf16.mxu0 %v4690_v6  ;;  %vm645_vm15 = vcmp.eq.s32.totalorder %v4957_v52, %v5709_v37 }
  0xda   : > { %v3893_v9 = vsel %vm646_vm13, 1.0, %v4691_v0  ;;  %v4021_v27 = vsel %vm1158_vm12, 1.0, %v4691_v0  ;;  %v1537_v6 = vadd.f32 %v4016_v60, %v3888_v63  ;;  %v3892_v16 = vsel %vm645_vm15, 1.0, %v4691_v0 }
  0xdb   : > { %1741 = vmatmul.mubr.f32.gmra.mrb[30].mxu0 %v1533_v56  ;;  %v1542_v12 = vadd.f32 %v4021_v27, %v3893_v9  ;;  %v4020_v24 = vsel %vm1157_vm14, 1.0, %v4691_v0  ;;  %v5814_v60 = vadd.f32 %v3979_v40, %v3851_v41  ;;  %v3850_v9 = vsel %vm603_vm8, 1.0, %v4691_v0 }
  0xdc   : > { %v5743_v4 = vpop.permute.xlu1 %1048  ;;  %v5745_v7 = vpop.permute.xlu0 %536  ;;  %1745 = vmatprep.mubr.f32.mxu0 %v1538_v3  ;;  %4555 = vmatpush1.bf16.msra.mxu0 %v4554_v1  ;;  %v1541_v42 = vadd.f32 %v4020_v24, %v3892_v16  ;;  %v3978_v27 = vsel %vm1115_vm7, 1.0, %v4691_v0  ;;  %vm1119_vm7 = vcmp.eq.s32.totalorder %v4969_v54, %v5245_v33  ;;  %vm607_vm8 = vcmp.eq.s32.totalorder %v4969_v54, %v5247_v34 }
  0xdd   : > { %vm1162_vm0 = vcmp.eq.s32.totalorder %v4966_v53, %v5743_v4  ;;  %vm650_vm3 = vcmp.eq.s32.totalorder %v4966_v53, %v5745_v7  ;;  %vm1161_vm4 = vcmp.eq.s32.totalorder %v4957_v52, %v5743_v4  ;;  %vm649_vm5 = vcmp.eq.s32.totalorder %v4957_v52, %v5745_v7 }
  0xde   : > { %v3897_v30 = vsel %vm650_vm3, 1.0, %v4691_v0  ;;  %v4025_v31 = vsel %vm1162_vm0, 1.0, %v4691_v0  ;;  %v3896_v48 = vsel %vm649_vm5, 1.0, %v4691_v0  ;;  %v4024_v50 = vsel %vm1161_vm4, 1.0, %v4691_v0 }
  0xdf   : > { %1746 = vmatmul.mubr.f32.gmra.mrb[32].mxu0 %v1537_v6  ;;  %v1546_v45 = vadd.f32 %v4025_v31, %v3897_v30  ;;  %v1545_v6 = vadd.f32 %v4024_v50, %v3896_v48  ;;  %v5843_v41 = vadd.f32 %v3978_v27, %v3850_v9  ;;  %v3855_v27 = vsel %vm608_vm2, 1.0, %v4691_v0 }
  0xe0   : > { %v5771_v25 = vpop.permute.xlu1 %1051  ;;  %v5773_v28 = vpop.permute.xlu0 %539  ;;  %1750 = vmatprep.mubr.f32.mxu0 %v1542_v12 }
  0xe1   : > { %vm1166_vm6 = vcmp.eq.s32.totalorder %v4966_v53, %v5771_v25  ;;  %vm654_vm9 = vcmp.eq.s32.totalorder %v4966_v53, %v5773_v28  ;;  %vm1165_vm10 = vcmp.eq.s32.totalorder %v4957_v52, %v5771_v25  ;;  %vm653_vm11 = vcmp.eq.s32.totalorder %v4957_v52, %v5773_v28 }
  0xe2   : > { %v3901_v3 = vsel %vm654_vm9, 1.0, %v4691_v0  ;;  %v4029_v63 = vsel %vm1166_vm6, 1.0, %v4691_v0  ;;  %v3900_v16 = vsel %vm653_vm11, 1.0, %v4691_v0  ;;  %v4028_v18 = vsel %vm1165_vm10, 1.0, %v4691_v0 }
  0xe3   : > { %1751 = vmatmul.mubr.f32.gmra.mrb[34].mxu0 %v1541_v42  ;;  %v1550_v12 = vadd.f32 %v4029_v63, %v3901_v3  ;;  %v1549_v40 = vadd.f32 %v4028_v18, %v3900_v16 }
  0xe4   : > { %v5805_v56 = vpop.permute.xlu1 %1054  ;;  %v5807_v1 = vpop.permute.xlu0 %542  ;;  %1755 = vmatprep.mubr.f32.mxu0 %v1546_v45 }
  0xe5   : > { %vm1170_vm12 = vcmp.eq.s32.totalorder %v4966_v53, %v5805_v56  ;;  %vm658_vm13 = vcmp.eq.s32.totalorder %v4966_v53, %v5807_v1  ;;  %vm1169_vm14 = vcmp.eq.s32.totalorder %v4957_v52, %v5805_v56  ;;  %vm657_vm15 = vcmp.eq.s32.totalorder %v4957_v52, %v5807_v1 }
  0xe6   : > { %v3905_v30 = vsel %vm658_vm13, 1.0, %v4691_v0  ;;  %v4033_v31 = vsel %vm1170_vm12, 1.0, %v4691_v0  ;;  %v3904_v45 = vsel %vm657_vm15, 1.0, %v4691_v0  ;;  %v4032_v48 = vsel %vm1169_vm14, 1.0, %v4691_v0 }
  0xe7   : > { %1756 = vmatmul.mubr.f32.gmra.mrb[36].mxu0 %v1545_v6  ;;  %v1554_v42 = vadd.f32 %v4033_v31, %v3905_v30  ;;  %v3983_v6 = vsel %vm1120_vm1, 1.0, %v4691_v0  ;;  %vm612_vm1 = vcmp.eq.s32.totalorder %v4988_v61, %v5296_v55 }
  0xe8   : > { %v5837_v17 = vpop.permute.xlu1 %1057  ;;  %v5839_v24 = vpop.permute.xlu0 %545  ;;  %1760 = vmatprep.mubr.f32.mxu0 %v1550_v12  ;;  %v1553_v12 = vadd.f32 %v4032_v48, %v3904_v45  ;;  %v5902_v48 = vadd.f32 %v3983_v6, %v3855_v27 }
  0xe9   : > { %7278 = vst [vmem:[#allocation2_spill] sm:$0xff] %v5839_v24  ;;  %vm1174_vm0 = vcmp.eq.s32.totalorder %v4966_v53, %v5837_v17  ;;  %vm662_vm3 = vcmp.eq.s32.totalorder %v4966_v53, %v5839_v24  ;;  %vm1173_vm4 = vcmp.eq.s32.totalorder %v4957_v52, %v5837_v17  ;;  %vm661_vm5 = vcmp.eq.s32.totalorder %v4957_v52, %v5839_v24 }
  0xea   : > { %v3909_v63 = vsel %vm662_vm3, 1.0, %v4691_v0  ;;  %v4037_v9 = vsel %vm1174_vm0, 1.0, %v4691_v0  ;;  %v3908_v18 = vsel %vm661_vm5, 1.0, %v4691_v0  ;;  %v4036_v30 = vsel %vm1173_vm4, 1.0, %v4691_v0 }
  0xeb   : > { %1761 = vmatmul.mubr.f32.gmra.mrb[38].mxu0 %v1549_v40  ;;  %v1558_v16 = vadd.f32 %v4037_v9, %v3909_v63  ;;  %v3854_v63 = vsel %vm607_vm8, 1.0, %v4691_v0  ;;  %v3982_v9 = vsel %vm1119_vm7, 1.0, %v4691_v0  ;;  %vm1124_vm0 = vcmp.eq.s32.totalorder %v4988_v61, %v5294_v51 }
  0xec   : > { %v5862_v50 = vpop.permute.xlu1 %1060  ;;  %v5864_v3 = vpop.permute.xlu0 %548  ;;  %1765 = vmatprep.mubr.f32.mxu0 %v1554_v42 }
  0xed   : > { %7279 = vst [vmem:[#allocation3_spill] sm:$0xff] %v5862_v50  ;;  %7280 = vst [vmem:[#allocation4_spill] sm:$0xff] %v5864_v3  ;;  %vm1178_vm6 = vcmp.eq.s32.totalorder %v4966_v53, %v5862_v50  ;;  %vm666_vm9 = vcmp.eq.s32.totalorder %v4966_v53, %v5864_v3  ;;  %vm1177_vm10 = vcmp.eq.s32.totalorder %v4957_v52, %v5862_v50 }
  0xee   : > { %vm665_vm11 = vcmp.eq.s32.totalorder %v4957_v52, %v5864_v3  ;;  %v3913_v42 = vsel %vm666_vm9, 1.0, %v4691_v0  ;;  %v4041_v45 = vsel %vm1178_vm6, 1.0, %v4691_v0  ;;  %v4040_v34 = vsel %vm1177_vm10, 1.0, %v4691_v0 }
  0xef   : > { %1766 = vmatmul.mubr.f32.gmra.mrb[40].mxu0 %v1553_v12  ;;  %v1557_v12 = vadd.f32 %v4036_v30, %v3908_v18  ;;  %v1562_v27 = vadd.f32 %v4041_v45, %v3913_v42  ;;  %v3912_v6 = vsel %vm665_vm11, 1.0, %v4691_v0  ;;  %v5931_v42 = vadd.f32 %v3982_v9, %v3854_v63 }
  0xf0   : > { %v5893_v31 = vpop.permute.xlu1 %1063  ;;  %v5895_v40 = vpop.permute.xlu0 %551  ;;  %1770 = vmatprep.mubr.f32.mxu0 %v1558_v16  ;;  %v1561_v45 = vadd.f32 %v4040_v34, %v3912_v6  ;;  %vm1123_vm6 = vcmp.eq.s32.totalorder %v4969_v54, %v5294_v51  ;;  %vm611_vm9 = vcmp.eq.s32.totalorder %v4969_v54, %v5296_v55 }
  0xf1   : > { %7281 = vst [vmem:[#allocation5_spill] sm:$0xff] %v5893_v31  ;;  %7282 = vst [vmem:[#allocation6_spill] sm:$0xff] %v5895_v40  ;;  %vm1182_vm12 = vcmp.eq.s32.totalorder %v4966_v53, %v5893_v31  ;;  %vm670_vm13 = vcmp.eq.s32.totalorder %v4966_v53, %v5895_v40  ;;  %vm669_vm14 = vcmp.eq.s32.totalorder %v4957_v52, %v5895_v40 }
  0xf2   : > { %vm1181_vm15 = vcmp.eq.s32.totalorder %v4957_v52, %v5893_v31  ;;  %v3917_v18 = vsel %vm670_vm13, 1.0, %v4691_v0  ;;  %v4045_v30 = vsel %vm1182_vm12, 1.0, %v4691_v0  ;;  %7285 = vst [vmem:[#allocation9_spill] sm:$0xff] %v5931_v42  ;;  %v3916_v63 = vsel %vm669_vm14, 1.0, %v4691_v0 }
  0xf3   : > { %1771 = vmatmul.mubr.f32.gmra.mrb[42].mxu0 %v1557_v12  ;;  %v1566_v9 = vadd.f32 %v4045_v30, %v3917_v18  ;;  %v4044_v6 = vsel %vm1181_vm15, 1.0, %v4691_v0  ;;  %vm1128_vm14 = vcmp.eq.s32.totalorder %v4988_v61, %v5341_v57  ;;  %vm616_vm15 = vcmp.eq.s32.totalorder %v4988_v61, %v5343_v62 }
  0xf4   : > { %v5925_v33 = vpop.permute.xlu1 %1066  ;;  %v5927_v16 = vpop.permute.xlu0 %554  ;;  %1775 = vmatprep.mubr.f32.mxu0 %v1562_v27 }
  0xf5   : > { %7283 = vst [vmem:[#allocation7_spill] sm:$0xff] %v5925_v33  ;;  %7284 = vst [vmem:[#allocation8_spill] sm:$0xff] %v5927_v16  ;;  %vm1185_vm2 = vcmp.eq.s32.totalorder %v4957_v52, %v5925_v33  ;;  %vm673_vm3 = vcmp.eq.s32.totalorder %v4957_v52, %v5927_v16  ;;  %vm674_vm4 = vcmp.eq.s32.totalorder %v4966_v53, %v5927_v16 }
  0xf6   : > { %vm1186_vm5 = vcmp.eq.s32.totalorder %v4966_v53, %v5925_v33  ;;  %v3921_v12 = vsel %vm674_vm4, 1.0, %v4691_v0  ;;  %v3920_v18 = vsel %vm673_vm3, 1.0, %v4691_v0  ;;  %v4048_v30 = vsel %vm1185_vm2, 1.0, %v4691_v0 }
  0xf7   : > { %v4049_v27 = vsel %vm1186_vm5, 1.0, %v4691_v0  ;;  %1776 = vmatmul.mubr.f32.gmra.mrb[44].mxu0 %v1561_v45  ;;  %v3859_v45 = vsel %vm612_vm1, 1.0, %v4691_v0 }
  0xf8   : > { %v5957_v34 = vpop.permute.xlu1 %1069  ;;  %v5959_v16 = vpop.permute.xlu0 %557  ;;  %v1570_v40 = vadd.f32 %v4049_v27, %v3921_v12  ;;  %1780 = vmatprep.mubr.f32.mxu0 %v1566_v9  ;;  %v3987_v12 = vsel %vm1124_vm0, 1.0, %v4691_v0  ;;  %v1565_v9 = vadd.f32 %v4044_v6, %v3916_v63  ;;  %v1569_v27 = vadd.f32 %v4048_v30, %v3920_v18 }
  0xf9   : > { %7286 = vst [vmem:[#allocation10_spill] sm:$0xff] %v5959_v16  ;;  %vm1189_vm7 = vcmp.eq.s32.totalorder %v4957_v52, %v5957_v34  ;;  %vm1190_vm8 = vcmp.eq.s32.totalorder %v4966_v53, %v5957_v34  ;;  %vm677_vm10 = vcmp.eq.s32.totalorder %v4957_v52, %v5959_v16  ;;  %vm678_vm11 = vcmp.eq.s32.totalorder %v4966_v53, %v5959_v16 }
  0xfa   : > { %1785 = vmatprep.mubr.f32.mxu1 %v1570_v40  ;;  %v3925_v33 = vsel %vm678_vm11, 1.0, %v4691_v0  ;;  %v4053_v31 = vsel %vm1190_vm8, 1.0, %v4691_v0  ;;  %v3924_v24 = vsel %vm677_vm10, 1.0, %v4691_v0  ;;  %v4052_v16 = vsel %vm1189_vm7, 1.0, %v4691_v0 }
  0xfb   : > { %1781 = vmatmul.mubr.f32.gmra.mrb[46].mxu0 %v1565_v9  ;;  %v1574_v42 = vadd.f32 %v4053_v31, %v3925_v33  ;;  %v5995_v40 = vadd.f32 %v3987_v12, %v3859_v45  ;;  %1786 = vmatmul.mubr.f32.vlgmr.msra.gmra.mrb[0].mxu1 %v1569_v27  ;;  %v3858_v31 = vsel %vm611_vm9, 1.0, %v4691_v0  ;;  %v3986_v33 = vsel %vm1123_vm6, 1.0, %v4691_v0 }
  0xfc   : > { %v5986_v3 = vpop.permute.xlu1 %1072  ;;  %v5988_v50 = vpop.permute.xlu0 %560  ;;  %1890 = vmatprep.mubr.f32.mxu0 %v5119_v46  ;;  %v1573_v46 = vadd.f32 %v4052_v16, %v3924_v24  ;;  %v3991_v24 = vsel %vm1128_vm14, 1.0, %v4691_v0  ;;  %vm1127_vm8 = vcmp.eq.s32.totalorder %v4969_v54, %v5341_v57  ;;  %vm615_vm9 = vcmp.eq.s32.totalorder %v4969_v54, %v5343_v62 }
  0xfd   : > { %vm1193_vm12 = vcmp.eq.s32.totalorder %v4957_v52, %v5986_v3  ;;  %vm1194_vm13 = vcmp.eq.s32.totalorder %v4966_v53, %v5986_v3  ;;  %vm681_vm0 = vcmp.eq.s32.totalorder %v4957_v52, %v5988_v50  ;;  %vm682_vm1 = vcmp.eq.s32.totalorder %v4966_v53, %v5988_v50  ;;  %1790 = vmatprep.mubr.f32.mxu1 %v1574_v42 }
  0xfe   : > { %v3929_v55 = vsel %vm682_vm1, 1.0, %v4691_v0  ;;  %v4057_v63 = vsel %vm1194_vm13, 1.0, %v4691_v0  ;;  %v3928_v30 = vsel %vm681_vm0, 1.0, %v4691_v0  ;;  %v4056_v45 = vsel %vm1193_vm12, 1.0, %v4691_v0 }
  0xff   : > { %1891 = vmatmul.mubr.f32.vlgmr.msra.gmra.mrb[0].mxu0 %v5022_v13  ;;  %v1578_v18 = vadd.f32 %v4057_v63, %v3929_v55  ;;  %v6030_v42 = vadd.f32 %v3986_v33, %v3858_v31  ;;  %1791 = vmatmul.mubr.f32.gmra.mrb[2].mxu1 %v1573_v46  ;;  %v3863_v13 = vsel %vm616_vm15, 1.0, %v4691_v0  ;;  %vm1132_vm12 = vcmp.eq.s32.totalorder %v4988_v61, %v5384_v32 }
 0x100   : > { %v6021_v51 = vpop.permute.xlu1 %1075  ;;  %v6023_v6 = vpop.permute.xlu0 %563  ;;  %1895 = vmatprep.mubr.f32.mxu0 %v5170_v5  ;;  %v1577_v5 = vadd.f32 %v4056_v45, %v3928_v30  ;;  %v6058_v55 = vadd.f32 %v3991_v24, %v3863_v13  ;;  %vm1131_vm13 = vcmp.eq.s32.totalorder %v4969_v54, %v5384_v32  ;;  %vm619_vm0 = vcmp.eq.s32.totalorder %v4969_v54, %v5386_v35 }
 0x101   : > { %vm1197_vm2 = vcmp.eq.s32.totalorder %v4957_v52, %v6021_v51  ;;  %vm1198_vm3 = vcmp.eq.s32.totalorder %v4966_v53, %v6021_v51  ;;  %vm685_vm4 = vcmp.eq.s32.totalorder %v4957_v52, %v6023_v6  ;;  %vm686_vm5 = vcmp.eq.s32.totalorder %v4966_v53, %v6023_v6  ;;  %1795 = vmatprep.mubr.f32.mxu1 %v1578_v18 }
 0x102   : > { %v3933_v16 = vsel %vm686_vm5, 1.0, %v4691_v0  ;;  %v4061_v12 = vsel %vm1198_vm3, 1.0, %v4691_v0  ;;  %v3932_v33 = vsel %vm685_vm4, 1.0, %v4691_v0  ;;  %v4060_v46 = vsel %vm1197_vm2, 1.0, %v4691_v0 }
 0x103   : > { %1896 = vmatmul.mubr.f32.gmra.mrb[2].mxu0 %v5217_v23  ;;  %v1582_v31 = vadd.f32 %v4061_v12, %v3933_v16  ;;  %1796 = vmatmul.mubr.f32.gmra.mrb[4].mxu1 %v1577_v5  ;;  %v1581_v23 = vadd.f32 %v4060_v46, %v3932_v33  ;;  %v3990_v5 = vsel %vm1127_vm8, 1.0, %v4691_v0  ;;  %vm620_vm1 = vcmp.eq.s32.totalorder %v4988_v61, %v5386_v35 }
 0x104   : > { %v6052_v9 = vpop.permute.xlu1 %1078  ;;  %v6054_v27 = vpop.permute.xlu0 %566  ;;  %1900 = vmatprep.mubr.f32.mxu0 %v5309_v2  ;;  %vm1135_vm4 = vcmp.eq.s32.totalorder %v4969_v54, %v5433_v58  ;;  %vm1136_vm5 = vcmp.eq.s32.totalorder %v4988_v61, %v5433_v58  ;;  %vm1143_vm8 = vcmp.eq.s32.totalorder %v4969_v54, %v5523_v43 }
 0x105   : > { %vm1201_vm6 = vcmp.eq.s32.totalorder %v4957_v52, %v6052_v9  ;;  %vm1202_vm7 = vcmp.eq.s32.totalorder %v4966_v53, %v6052_v9  ;;  %vm689_vm10 = vcmp.eq.s32.totalorder %v4957_v52, %v6054_v27  ;;  %vm690_vm11 = vcmp.eq.s32.totalorder %v4966_v53, %v6054_v27  ;;  %1800 = vmatprep.mubr.f32.mxu1 %v1582_v31 }
 0x106   : > { %v3937_v2 = vsel %vm690_vm11, 1.0, %v4691_v0  ;;  %v4065_v63 = vsel %vm1202_vm7, 1.0, %v4691_v0  ;;  %v3936_v13 = vsel %vm689_vm10, 1.0, %v4691_v0  ;;  %v4064_v24 = vsel %vm1201_vm6, 1.0, %v4691_v0 }
 0x107   : > { %1901 = vmatmul.mubr.f32.gmra.mrb[4].mxu0 %v5356_v21  ;;  %v1586_v45 = vadd.f32 %v4065_v63, %v3937_v2  ;;  %1801 = vmatmul.mubr.f32.gmra.mrb[6].mxu1 %v1581_v23  ;;  %v3862_v21 = vsel %vm615_vm9, 1.0, %v4691_v0  ;;  %vm623_vm6 = vcmp.eq.s32.totalorder %v4969_v54, %v5435_v59  ;;  %vm624_vm7 = vcmp.eq.s32.totalorder %v4988_v61, %v5435_v59 }
 0x108   : > { %v6078_v18 = vpop.permute.xlu1 %1081  ;;  %v6080_v30 = vpop.permute.xlu0 %569  ;;  %1905 = vmatprep.mubr.f32.mxu0 %v5448_v8  ;;  %v1585_v57 = vadd.f32 %v4064_v24, %v3936_v13  ;;  %vm628_vm9 = vcmp.eq.s32.totalorder %v4988_v61, %v5482_v20  ;;  %v6137_v23 = vadd.f32 %v3990_v5, %v3862_v21  ;;  %v3995_v2 = vsel %vm1132_vm12, 1.0, %v4691_v0 }
 0x109   : > { %vm1205_vm14 = vcmp.eq.s32.totalorder %v4957_v52, %v6078_v18  ;;  %vm1206_vm15 = vcmp.eq.s32.totalorder %v4966_v53, %v6078_v18  ;;  %vm693_vm2 = vcmp.eq.s32.totalorder %v4957_v52, %v6080_v30  ;;  %vm694_vm3 = vcmp.eq.s32.totalorder %v4966_v53, %v6080_v30  ;;  %1805 = vmatprep.mubr.f32.mxu1 %v1586_v45 }
 0x10a   : > { %v3941_v62 = vsel %vm694_vm3, 1.0, %v4691_v0  ;;  %v4069_v8 = vsel %vm1206_vm15, 1.0, %v4691_v0  ;;  %v3940_v33 = vsel %vm693_vm2, 1.0, %v4691_v0  ;;  %v4068_v46 = vsel %vm1205_vm14, 1.0, %v4691_v0 }
 0x10b   : > { %1906 = vmatmul.mubr.f32.gmra.mrb[6].mxu0 %v5495_v29  ;;  %v1590_v31 = vadd.f32 %v4069_v8, %v3941_v62  ;;  %1806 = vmatmul.mubr.f32.gmra.mrb[8].mxu1 %v1585_v57  ;;  %v3867_v29 = vsel %vm620_vm1, 1.0, %v4691_v0  ;;  %vm1155_vm10 = vcmp.eq.s32.totalorder %v4969_v54, %v5662_v15  ;;  %vm643_vm12 = vcmp.eq.s32.totalorder %v4969_v54, %v5664_v14 }
 0x10c   : > { %v6125_v16 = vpop.permute.xlu1 %1084  ;;  %v6127_v12 = vpop.permute.xlu0 %572  ;;  %1910 = vmatprep.mubr.f32.mxu0 %v5587_v22  ;;  %v1589_v22 = vadd.f32 %v4068_v46, %v3940_v33  ;;  %v6188_v62 = vadd.f32 %v3995_v2, %v3867_v29  ;;  %v3994_v46 = vsel %vm1131_vm13, 1.0, %v4691_v0  ;;  %v3871_v32 = vsel %vm624_vm7, 1.0, %v4691_v0 }
 0x10d   : > { %vm1209_vm15 = vcmp.eq.s32.totalorder %v4957_v52, %v6125_v16  ;;  %vm1210_vm2 = vcmp.eq.s32.totalorder %v4966_v53, %v6125_v16  ;;  %vm697_vm11 = vcmp.eq.s32.totalorder %v4957_v52, %v6127_v12  ;;  %vm698_vm1 = vcmp.eq.s32.totalorder %v4966_v53, %v6127_v12  ;;  %1810 = vmatprep.mubr.f32.mxu1 %v1590_v31 }
 0x10e   : > { %v3945_v63 = vsel %vm698_vm1, 1.0, %v4691_v0  ;;  %v4073_v45 = vsel %vm1210_vm2, 1.0, %v4691_v0  ;;  %v3944_v5 = vsel %vm697_vm11, 1.0, %v4691_v0  ;;  %v4072_v57 = vsel %vm1209_vm15, 1.0, %v4691_v0 }
 0x10f   : > { %1911 = vmatmul.mubr.f32.gmra.mrb[8].mxu0 %v5634_v49  ;;  %v1594_v21 = vadd.f32 %v4073_v45, %v3945_v63  ;;  %1811 = vmatmul.mubr.f32.gmra.mrb[10].mxu1 %v1589_v22  ;;  %v3866_v49 = vsel %vm619_vm0, 1.0, %v4691_v0  ;;  %vm1156_vm11 = vcmp.eq.s32.totalorder %v4988_v61, %v5662_v15  ;;  %vm644_vm15 = vcmp.eq.s32.totalorder %v4988_v61, %v5664_v14 }
 0x110   : > { %v6179_v13 = vpop.permute.xlu1 %1087  ;;  %v6181_v24 = vpop.permute.xlu0 %575  ;;  %1915 = vmatprep.mubr.f32.mxu0 %v5716_v47  ;;  %v1593_v47 = vadd.f32 %v4072_v57, %v3944_v5  ;;  %vm1159_vm0 = vcmp.eq.s32.totalorder %v4969_v54, %v5707_v36  ;;  %v3870_v29 = vsel %vm623_vm6, 1.0, %v4691_v0  ;;  %v3998_v2 = vsel %vm1135_vm4, 1.0, %v4691_v0 }
 0x111   : > { %vm1213_vm1 = vcmp.eq.s32.totalorder %v4957_v52, %v6179_v13  ;;  %vm1214_vm3 = vcmp.eq.s32.totalorder %v4966_v53, %v6179_v13  ;;  %vm701_vm2 = vcmp.eq.s32.totalorder %v4957_v52, %v6181_v24  ;;  %vm702_vm14 = vcmp.eq.s32.totalorder %v4966_v53, %v6181_v24  ;;  %1815 = vmatprep.mubr.f32.mxu1 %v1594_v21 }
 0x112   : > { %v3949_v8 = vsel %vm702_vm14, 1.0, %v4691_v0  ;;  %v4077_v31 = vsel %vm1214_vm3, 1.0, %v4691_v0  ;;  %v3948_v35 = vsel %vm701_vm2, 1.0, %v4691_v0  ;;  %v4076_v33 = vsel %vm1213_vm1, 1.0, %v4691_v0 }
 0x113   : > { %1916 = vmatmul.mubr.f32.gmra.mrb[10].mxu0 %v5752_v26  ;;  %v1598_v53 = vadd.f32 %v4077_v31, %v3949_v8  ;;  %vm1160_vm14 = vcmp.eq.s32.totalorder %v4988_v61, %v5707_v36  ;;  %vm647_vm3 = vcmp.eq.s32.totalorder %v4969_v54, %v5709_v37  ;;  %vm648_vm2 = vcmp.eq.s32.totalorder %v4988_v61, %v5709_v37 }
 0x114   : > { %1816 = vmatmul.mubr.f32.gmra.mrb[12].mxu1 %v1593_v47  ;;  %1920 = vmatprep.mubr.f32.mxu0 %v5814_v60  ;;  %v1597_v52 = vadd.f32 %v4076_v33, %v3948_v35  ;;  %v6240_v26 = vadd.f32 %v3994_v46, %v3866_v49  ;;  %vm652_vm1 = vcmp.eq.s32.totalorder %v4988_v61, %v5745_v7  ;;  %v3999_v60 = vsel %vm1136_vm5, 1.0, %v4691_v0  ;;  %v7294_v47 = vld [vmem:[#allocation2_spill] sm:$0xff]  ;;  %v7298_v35 = vld [vmem:[#allocation9_spill] sm:$0xff] }
 0x115   : > { %1820 = vmatprep.mubr.f32.mxu1 %v1598_v53  ;;  %v6266_v22 = vadd.f32 %v3999_v60, %v3871_v32  ;;  %v6268_v63 = vadd.f32 %v3998_v2, %v3870_v29  ;;  %v3875_v59 = vsel %vm628_vm9, 1.0, %v4691_v0  ;;  %vm7287_vm5 = vcmp.eq.s32.totalorder %v4988_v61, %v5480_v19  ;;  %v7302_v32 = vld [vmem:[#allocation4_spill] sm:$0xff] }
 0x116   : > { %v4003_v58 = vsel %vm7287_vm5, 1.0, %v4691_v0  ;;  %vm7288_vm6 = vcmp.eq.s32.totalorder %v4969_v54, %v5482_v20  ;;  %vm7289_vm9 = vcmp.eq.s32.totalorder %v4969_v54, %v5480_v19  ;;  %vm7290_vm5 = vcmp.eq.s32.totalorder %v4988_v61, %v5525_v44 }
 0x117   : > { %1921 = vmatmul.mubr.f32.gmra.mrb[12].mxu0 %v5843_v41  ;;  %v6281_v45 = vadd.f32 %v4003_v58, %v3875_v59  ;;  %v3874_v21 = vsel %vm7288_vm6, 1.0, %v4691_v0  ;;  %v4002_v5 = vsel %vm7289_vm9, 1.0, %v4691_v0  ;;  %v3879_v57 = vsel %vm7290_vm5, 1.0, %v4691_v0  ;;  %v7305_v59 = vld [vmem:[#allocation6_spill] sm:$0xff] }
 0x118   : > { %1821 = vmatmul.mubr.f32.gmra.mrb[14].mxu1 %v1597_v52  ;;  %1925 = vmatprep.mubr.f32.mxu0 %v5902_v48  ;;  %v6302_v20 = vadd.f32 %v4002_v5, %v3874_v21  ;;  %vm7291_vm6 = vcmp.eq.s32.totalorder %v4988_v61, %v5523_v43  ;;  %vm7292_vm9 = vcmp.eq.s32.totalorder %v4969_v54, %v5525_v44  ;;  %v4006_v44 = vsel %vm1143_vm8, 1.0, %v4691_v0  ;;  %v7301_v52 = vld [vmem:[#allocation3_spill] sm:$0xff] }
 0x119   : > { %v4007_v19 = vsel %vm7291_vm6, 1.0, %v4691_v0  ;;  %v3878_v41 = vsel %vm7292_vm9, 1.0, %v4691_v0  ;;  %vm660_vm13 = vcmp.eq.s32.totalorder %v4988_v61, %v5807_v1  ;;  %vm7293_vm6 = vcmp.eq.s32.totalorder %v4988_v61, %v5574_v11 }
 0x11a   : > { %v6320_v48 = vadd.f32 %v4007_v19, %v3879_v57  ;;  %v3883_v49 = vsel %vm7293_vm6, 1.0, %v4691_v0  ;;  %v6334_v8 = vadd.f32 %v4006_v44, %v3878_v41  ;;  %vm7295_vm7 = vcmp.eq.s32.totalorder %v4988_v61, %v5572_v10 }
 0x11b   : > { %v4011_v31 = vsel %vm7295_vm7, 1.0, %v4691_v0  ;;  %vm7296_vm8 = vcmp.eq.s32.totalorder %v4969_v54, %v5574_v11  ;;  %vm7297_vm6 = vcmp.eq.s32.totalorder %v4969_v54, %v5572_v10  ;;  %1926 = vmatmul.mubr.f32.gmra.mrb[14].mxu0 %v7298_v35  ;;  %vm7299_vm7 = vcmp.eq.s32.totalorder %v4988_v61, %v5621_v39 }
 0x11c   : > { %v3882_v43 = vsel %vm7296_vm8, 1.0, %v4691_v0  ;;  %v4010_v53 = vsel %vm7297_vm6, 1.0, %v4691_v0  ;;  %v6351_v33 = vadd.f32 %v4011_v31, %v3883_v49  ;;  %v3887_v11 = vsel %vm7299_vm7, 1.0, %v4691_v0  ;;  %1930 = vmatprep.mubr.f32.mxu0 %v5995_v40  ;;  %v7307_v49 = vld [vmem:[#allocation7_spill] sm:$0xff] }
 0x11d   : > { %v6353_v46 = vadd.f32 %v4010_v53, %v3882_v43  ;;  %vm7300_vm8 = vcmp.eq.s32.totalorder %v4988_v61, %v5619_v38  ;;  %vm1175_vm6 = vcmp.eq.s32.totalorder %v4969_v54, %v5837_v17  ;;  %vm668_vm4 = vcmp.eq.s32.totalorder %v4988_v61, %v7302_v32  ;;  %v7310_v53 = vld [vmem:[#allocation10_spill] sm:$0xff] }
 0x11e   : > { %v4015_v10 = vsel %vm7300_vm8, 1.0, %v4691_v0  ;;  %vm7303_vm7 = vcmp.eq.s32.totalorder %v4969_v54, %v5621_v39  ;;  %vm7304_vm8 = vcmp.eq.s32.totalorder %v4969_v54, %v5619_v38  ;;  %vm1179_vm5 = vcmp.eq.s32.totalorder %v4969_v54, %v7301_v52  ;;  %v7306_v38 = vld [vmem:[#allocation5_spill] sm:$0xff] }
 0x11f   : > { %v6372_v60 = vadd.f32 %v4015_v10, %v3887_v11  ;;  %v3886_v29 = vsel %vm7303_vm7, 1.0, %v4691_v0  ;;  %v4014_v2 = vsel %vm7304_vm8, 1.0, %v4691_v0  ;;  %v3891_v40 = vsel %vm644_vm15, 1.0, %v4691_v0  ;;  %1931 = vmatmul.mubr.f32.gmra.mrb[16].mxu0 %v6030_v42  ;;  %v7308_v42 = vld [vmem:[#allocation8_spill] sm:$0xff] }
 0x120   : > { %v6386_v58 = vadd.f32 %v4014_v2, %v3886_v29  ;;  %v4019_v39 = vsel %vm1156_vm11, 1.0, %v4691_v0  ;;  %vm1183_vm7 = vcmp.eq.s32.totalorder %v4969_v54, %v7306_v38  ;;  %vm1184_vm8 = vcmp.eq.s32.totalorder %v4988_v61, %v7306_v38  ;;  %1935 = vmatprep.mubr.f32.mxu0 %v6058_v55 }
 0x121   : > { %vm671_vm9 = vcmp.eq.s32.totalorder %v4969_v54, %v7305_v59  ;;  %v6402_v21 = vadd.f32 %v4019_v39, %v3891_v40  ;;  %v3890_v5 = vsel %vm643_vm12, 1.0, %v4691_v0  ;;  %v4018_v57 = vsel %vm1155_vm10, 1.0, %v4691_v0 }
 0x122   : > { %v3895_v19 = vsel %vm648_vm2, 1.0, %v4691_v0  ;;  %v6417_v41 = vadd.f32 %v4018_v57, %v3890_v5  ;;  %v4023_v14 = vsel %vm1160_vm14, 1.0, %v4691_v0  ;;  %v3894_v15 = vsel %vm647_vm3, 1.0, %v4691_v0 }
 0x123   : > { %v4022_v44 = vsel %vm1159_vm0, 1.0, %v4691_v0  ;;  %vm1187_vm10 = vcmp.eq.s32.totalorder %v4969_v54, %v7307_v49  ;;  %vm1188_vm12 = vcmp.eq.s32.totalorder %v4988_v61, %v7307_v49  ;;  %vm675_vm11 = vcmp.eq.s32.totalorder %v4969_v54, %v7308_v42  ;;  %1936 = vmatmul.mubr.f32.gmra.mrb[18].mxu0 %v6137_v23 }
 0x124   : > { %vm676_vm15 = vcmp.eq.s32.totalorder %v4988_v61, %v7308_v42  ;;  %v6440_v37 = vadd.f32 %v4023_v14, %v3895_v19  ;;  %v6442_v31 = vadd.f32 %v4022_v44, %v3894_v15  ;;  %v3899_v36 = vsel %vm652_vm1, 1.0, %v4691_v0  ;;  %1940 = vmatprep.mubr.f32.mxu0 %v6188_v62 }
 0x125   : > { %vm7309_vm0 = vcmp.eq.s32.totalorder %v4988_v61, %v5743_v4  ;;  %vm7311_vm2 = vcmp.eq.s32.totalorder %v4969_v54, %v5745_v7  ;;  %vm7312_vm1 = vcmp.eq.s32.totalorder %v4969_v54, %v5743_v4  ;;  %vm7315_vm3 = vcmp.eq.s32.totalorder %v4969_v54, %v5773_v28 }
 0x126   : > { %v4027_v43 = vsel %vm7309_vm0, 1.0, %v4691_v0  ;;  %v3898_v35 = vsel %vm7311_vm2, 1.0, %v4691_v0  ;;  %v4026_v11 = vsel %vm7312_vm1, 1.0, %v4691_v0  ;;  %vm7313_vm2 = vcmp.eq.s32.totalorder %v4988_v61, %v5773_v28 }
 0x127   : > { %v6456_v55 = vadd.f32 %v4027_v43, %v3899_v36  ;;  %v6472_v10 = vadd.f32 %v4026_v11, %v3898_v35  ;;  %v3903_v7 = vsel %vm7313_vm2, 1.0, %v4691_v0  ;;  %vm7314_vm1 = vcmp.eq.s32.totalorder %v4988_v61, %v5771_v25  ;;  %1941 = vmatmul.mubr.f32.gmra.mrb[20].mxu0 %v6240_v26 }
 0x128   : > { %v4031_v4 = vsel %vm7314_vm1, 1.0, %v4691_v0  ;;  %v3902_v2 = vsel %vm7315_vm3, 1.0, %v4691_v0  ;;  %vm7316_vm2 = vcmp.eq.s32.totalorder %v4969_v54, %v5771_v25  ;;  %v3907_v39 = vsel %vm660_vm13, 1.0, %v4691_v0  ;;  %1945 = vmatprep.mubr.f32.mxu0 %v6266_v22 }
 0x129   : > { %v6485_v29 = vadd.f32 %v4031_v4, %v3903_v7  ;;  %v4030_v40 = vsel %vm7316_vm2, 1.0, %v4691_v0  ;;  %vm7317_vm3 = vcmp.eq.s32.totalorder %v4988_v61, %v5805_v56  ;;  %vm7318_vm13 = vcmp.eq.s32.totalorder %v4969_v54, %v5807_v1 }
 0x12a   : > { %v6506_v28 = vadd.f32 %v4030_v40, %v3902_v2  ;;  %v4035_v25 = vsel %vm7317_vm3, 1.0, %v4691_v0  ;;  %v3906_v23 = vsel %vm7318_vm13, 1.0, %v4691_v0  ;;  %vm7319_vm2 = vcmp.eq.s32.totalorder %v4969_v54, %v5805_v56 }
 0x12b   : > { %v4034_v5 = vsel %vm7319_vm2, 1.0, %v4691_v0  ;;  %vm1200_vm1 = vcmp.eq.s32.totalorder %v4988_v61, %v6021_v51  ;;  %v6526_v62 = vadd.f32 %v4035_v25, %v3907_v39  ;;  %vm7320_vm3 = vcmp.eq.s32.totalorder %v4988_v61, %v7294_v47  ;;  %1946 = vmatmul.mubr.f32.gmra.mrb[22].mxu0 %v6268_v63 }
 0x12c   : > { %v6528_v57 = vadd.f32 %v4034_v5, %v3906_v23  ;;  %v3911_v1 = vsel %vm7320_vm3, 1.0, %v4691_v0  ;;  %vm7321_vm13 = vcmp.eq.s32.totalorder %v4988_v61, %v5837_v17  ;;  %vm692_vm14 = vcmp.eq.s32.totalorder %v4988_v61, %v6054_v27  ;;  %1950 = vmatprep.mubr.f32.mxu0 %v6281_v45 }
 0x12d   : > { %v4039_v56 = vsel %vm7321_vm13, 1.0, %v4691_v0  ;;  %vm7322_vm0 = vcmp.eq.s32.totalorder %v4969_v54, %v7294_v47  ;;  %v4038_v15 = vsel %vm1175_vm6, 1.0, %v4691_v0  ;;  %v3915_v44 = vsel %vm668_vm4, 1.0, %v4691_v0 }
 0x12e   : > { %v6542_v19 = vadd.f32 %v4039_v56, %v3911_v1  ;;  %v3910_v14 = vsel %vm7322_vm0, 1.0, %v4691_v0  ;;  %vm7323_vm13 = vcmp.eq.s32.totalorder %v4988_v61, %v7301_v52  ;;  %vm7324_vm0 = vcmp.eq.s32.totalorder %v4969_v54, %v7302_v32 }
 0x12f   : > { %v4043_v47 = vsel %vm7323_vm13, 1.0, %v4691_v0  ;;  %v3914_v26 = vsel %vm7324_vm0, 1.0, %v4691_v0  ;;  %vm1203_vm3 = vcmp.eq.s32.totalorder %v4969_v54, %v6052_v9  ;;  %vm1208_vm6 = vcmp.eq.s32.totalorder %v4988_v61, %v6078_v18  ;;  %1951 = vmatmul.mubr.f32.gmra.mrb[24].mxu0 %v6302_v20 }
 0x130   : > { %vm695_vm2 = vcmp.eq.s32.totalorder %v4969_v54, %v6080_v30  ;;  %vm696_vm4 = vcmp.eq.s32.totalorder %v4988_v61, %v6080_v30  ;;  %v6576_v17 = vadd.f32 %v4038_v15, %v3910_v14  ;;  %v6578_v36 = vadd.f32 %v4043_v47, %v3915_v44  ;;  %1955 = vmatprep.mubr.f32.mxu0 %v6320_v48 }
 0x131   : > { %v4042_v32 = vsel %vm1179_vm5, 1.0, %v4691_v0  ;;  %vm7325_vm13 = vcmp.eq.s32.totalorder %v4988_v61, %v7305_v59  ;;  %v4047_v22 = vsel %vm1184_vm8, 1.0, %v4691_v0  ;;  %v3918_v52 = vsel %vm671_vm9, 1.0, %v4691_v0 }
 0x132   : > { %v3919_v43 = vsel %vm7325_vm13, 1.0, %v4691_v0  ;;  %v6590_v35 = vadd.f32 %v4042_v32, %v3914_v26  ;;  %v4046_v11 = vsel %vm1183_vm7, 1.0, %v4691_v0  ;;  %vm1211_vm5 = vcmp.eq.s32.totalorder %v4969_v54, %v6125_v16 }
 0x133   : > { %vm1212_vm13 = vcmp.eq.s32.totalorder %v4988_v61, %v6125_v16  ;;  %vm699_vm0 = vcmp.eq.s32.totalorder %v4969_v54, %v6127_v12  ;;  %vm700_vm8 = vcmp.eq.s32.totalorder %v4988_v61, %v6127_v12  ;;  %v6612_v7 = vadd.f32 %v4047_v22, %v3919_v43  ;;  %1956 = vmatmul.mubr.f32.gmra.mrb[26].mxu0 %v6334_v8 }
 0x134   : > { %v6614_v59 = vadd.f32 %v4046_v11, %v3918_v52  ;;  %v3923_v38 = vsel %vm676_vm15, 1.0, %v4691_v0  ;;  %v4051_v4 = vsel %vm1188_vm12, 1.0, %v4691_v0  ;;  %v3922_v2 = vsel %vm675_vm11, 1.0, %v4691_v0  ;;  %1960 = vmatprep.mubr.f32.mxu0 %v6351_v33 }
 0x135   : > { %v4050_v63 = vsel %vm1187_vm10, 1.0, %v4691_v0  ;;  %v6634_v40 = vadd.f32 %v4051_v4, %v3923_v38  ;;  %vm7326_vm9 = vcmp.eq.s32.totalorder %v4988_v61, %v7310_v53  ;;  %vm7327_vm7 = vcmp.eq.s32.totalorder %v4988_v61, %v5957_v34 }
 0x136   : > { %v6636_v39 = vadd.f32 %v4050_v63, %v3922_v2  ;;  %v3927_v25 = vsel %vm7326_vm9, 1.0, %v4691_v0  ;;  %v4055_v42 = vsel %vm7327_vm7, 1.0, %v4691_v0  ;;  %vm7328_vm10 = vcmp.eq.s32.totalorder %v4969_v54, %v7310_v53 }
 0x137   : > { %v6646_v23 = vadd.f32 %v4055_v42, %v3927_v25  ;;  %v3926_v45 = vsel %vm7328_vm10, 1.0, %v4691_v0  ;;  %vm7329_vm12 = vcmp.eq.s32.totalorder %v4969_v54, %v5957_v34  ;;  %vm7330_vm11 = vcmp.eq.s32.totalorder %v4988_v61, %v5988_v50  ;;  %1961 = vmatmul.mubr.f32.gmra.mrb[28].mxu0 %v6353_v46 }
 0x138   : > { %v4054_v49 = vsel %vm7329_vm12, 1.0, %v4691_v0  ;;  %v3931_v5 = vsel %vm7330_vm11, 1.0, %v4691_v0  ;;  %vm1215_vm15 = vcmp.eq.s32.totalorder %v4969_v54, %v6179_v13  ;;  %vm1216_vm9 = vcmp.eq.s32.totalorder %v4988_v61, %v6179_v13  ;;  %1965 = vmatprep.mubr.f32.mxu0 %v6372_v60  ;;  %v2289_v13 = vld [vmem:[%s7257_s5 + $0x10] sm:$0xff] }
 0x139   : > { %v6664_v1 = vadd.f32 %v4054_v49, %v3926_v45  ;;  %vm7331_vm7 = vcmp.eq.s32.totalorder %v4988_v61, %v5986_v3  ;;  %vm7332_vm10 = vcmp.eq.s32.totalorder %v4969_v54, %v5988_v50  ;;  %vm7333_vm12 = vcmp.eq.s32.totalorder %v4969_v54, %v5986_v3 }
 0x13a   : > { %v4059_v53 = vsel %vm7331_vm7, 1.0, %v4691_v0  ;;  %v3930_v56 = vsel %vm7332_vm10, 1.0, %v4691_v0  ;;  %v4058_v14 = vsel %vm7333_vm12, 1.0, %v4691_v0  ;;  %vm7334_vm11 = vcmp.eq.s32.totalorder %v4988_v61, %v6023_v6 }
 0x13b   : > { %v6671_v34 = vadd.f32 %v4059_v53, %v3931_v5  ;;  %v3935_v15 = vsel %vm7334_vm11, 1.0, %v4691_v0  ;;  %v6686_v20 = vadd.f32 %v4058_v14, %v3930_v56  ;;  %v4063_v50 = vsel %vm1200_vm1, 1.0, %v4691_v0  ;;  %1966 = vmatmul.mubr.f32.gmra.mrb[30].mxu0 %v6386_v58 }
 0x13c   : > { %vm7335_vm7 = vcmp.eq.s32.totalorder %v4969_v54, %v6023_v6  ;;  %vm7336_vm10 = vcmp.eq.s32.totalorder %v4969_v54, %v6021_v51  ;;  %v6700_v47 = vadd.f32 %v4063_v50, %v3935_v15  ;;  %v3939_v26 = vsel %vm692_vm14, 1.0, %v4691_v0  ;;  %1970 = vmatprep.mubr.f32.mxu0 %v6402_v21 }
 0x13d   : > { %v3934_v3 = vsel %vm7335_vm7, 1.0, %v4691_v0  ;;  %v4062_v44 = vsel %vm7336_vm10, 1.0, %v4691_v0  ;;  %vm7337_vm1 = vcmp.eq.s32.totalorder %v4988_v61, %v6052_v9  ;;  %vm703_vm12 = vcmp.eq.s32.totalorder %v4969_v54, %v6181_v24 }
 0x13e   : > { %v6702_v48 = vadd.f32 %v4062_v44, %v3934_v3  ;;  %v4067_v6 = vsel %vm7337_vm1, 1.0, %v4691_v0  ;;  %vm704_vm11 = vcmp.eq.s32.totalorder %v4988_v61, %v6181_v24  ;;  %vm7338_vm7 = vcmp.eq.s32.totalorder %v4969_v54, %v6054_v27  ;;  %v2288_v61 = vld [vmem:[%s7257_s5 + $0x8] sm:$0xff]  ;;  %v2290_v24 = vld [vmem:[%s7257_s5 + $0x18] sm:$0xff] }
 0x13f   : > { %v1588_v51 = vadd.f32 %v4067_v6, %v3939_v26  ;;  %v3938_v32 = vsel %vm7338_vm7, 1.0, %v4691_v0  ;;  %v4066_v43 = vsel %vm1203_vm3, 1.0, %v4691_v0  ;;  %v3943_v22 = vsel %vm696_vm4, 1.0, %v4691_v0  ;;  %1971 = vmatmul.mubr.f32.gmra.mrb[32].mxu0 %v6417_v41 }
 0x140   : > { %v4071_v52 = vsel %vm1208_vm6, 1.0, %v4691_v0  ;;  %v3942_v27 = vsel %vm695_vm2, 1.0, %v4691_v0  ;;  %v1587_v8 = vadd.f32 %v4066_v43, %v3938_v32  ;;  %vm7339_vm14 = vcmp.eq.s32.totalorder %v4969_v54, %v6078_v18  ;;  %1975 = vmatprep.mubr.f32.mxu0 %v6440_v37  ;;  %v2287_v54 = vld [vmem:[%s7257_s5] sm:$0xff] }
 0x141   : > { %v1592_v9 = vadd.f32 %v4071_v52, %v3943_v22  ;;  %v4070_v11 = vsel %vm7339_vm14, 1.0, %v4691_v0  ;;  %v3947_v38 = vsel %vm700_vm8, 1.0, %v4691_v0  ;;  %v4075_v30 = vsel %vm1212_vm13, 1.0, %v4691_v0 }
 0x142   : > { %v1591_v4 = vadd.f32 %v4070_v11, %v3942_v27  ;;  %v3946_v33 = vsel %vm699_vm0, 1.0, %v4691_v0  ;;  %v4074_v18 = vsel %vm1211_vm5, 1.0, %v4691_v0  ;;  %v1596_v2 = vadd.f32 %v4075_v30, %v3947_v38 }
 0x143   : > { %v1595_v63 = vadd.f32 %v4074_v18, %v3946_v33  ;;  %v3951_v25 = vsel %vm704_vm11, 1.0, %v4691_v0  ;;  %v4079_v12 = vsel %vm1216_vm9, 1.0, %v4691_v0  ;;  %v3950_v16 = vsel %vm703_vm12, 1.0, %v4691_v0  ;;  %1976 = vmatmul.mubr.f32.gmra.mrb[34].mxu0 %v6442_v31 }
 0x144   : > { %v4078_v46 = vsel %vm1215_vm15, 1.0, %v4691_v0  ;;  %v1600_v42 = vadd.f32 %v4079_v12, %v3951_v25  ;;  %1980 = vmatprep.mubr.f32.mxu0 %v6456_v55  ;;  %v4556_v0 = vpack.c.bf16 %v2288_v61, %v2287_v54  ;;  %v4560_v60 = vpack.c.bf16 %v2290_v24, %v2289_v13 }
 0x145   : > { %v1599_v45 = vadd.f32 %v4078_v46, %v3950_v16  ;;  %vm2291_vm2 = vcmask 261120  }
 0x146   : > { %4557 = vmatprep.subr.bf16.mxu1 %v4556_v0 }
 0x147   : > { %1981 = vmatmul.mubr.f32.gmra.mrb[36].mxu0 %v6472_v10  ;;  %4559 = vmatpush3.bf16.msra.mxu1 %v4556_v0 }
 0x148   : > { %1985 = vmatprep.mubr.f32.mxu0 %v6485_v29  ;;  %4561 = vmatprep.subr.bf16.mxu1 %v4560_v60 }
 0x14b   : > { %1986 = vmatmul.mubr.f32.gmra.mrb[38].mxu0 %v6506_v28  ;;  %4563 = vmatpush3.bf16.msra.mxu1 %v4560_v60 }
 0x14c   : > { %1990 = vmatprep.mubr.f32.mxu0 %v6526_v62 }
 0x14f   : > { %1991 = vmatmul.mubr.f32.gmra.mrb[40].mxu0 %v6528_v57 }
 0x150   : > { %1995 = vmatprep.mubr.f32.mxu0 %v6542_v19 }
 0x153   : > { %1996 = vmatmul.mubr.f32.gmra.mrb[42].mxu0 %v6576_v17 }
 0x154   : > { %2000 = vmatprep.mubr.f32.mxu0 %v6578_v36 }
 0x157   : > { %2001 = vmatmul.mubr.f32.gmra.mrb[44].mxu0 %v6590_v35 }
 0x158   : > { %2005 = vmatprep.mubr.f32.mxu0 %v6612_v7 }
 0x15b   : > { %2006 = vmatmul.mubr.f32.gmra.mrb[46].mxu0 %v6614_v59 }
 0x15c   : > { %2010 = vmatprep.mubr.f32.mxu0 %v6634_v40 }
 0x15f   : > { %2011 = vmatmul.mubr.f32.gmra.mrb[48].mxu0 %v6636_v39 }
 0x160   : > { %2015 = vmatprep.mubr.f32.mxu0 %v6646_v23 }
 0x163   : > { %2016 = vmatmul.mubr.f32.gmra.mrb[50].mxu0 %v6664_v1 }
 0x164   : > { %2020 = vmatprep.mubr.f32.mxu0 %v6671_v34 }
 0x167   : > { %2021 = vmatmul.mubr.f32.gmra.mrb[52].mxu0 %v6686_v20 }
 0x168   : > { %2025 = vmatprep.mubr.f32.mxu0 %v6700_v47 }
 0x16b   : > { %2026 = vmatmul.mubr.f32.gmra.mrb[54].mxu0 %v6702_v48 }
 0x16c   : > { %2030 = vmatprep.mubr.f32.mxu0 %v1588_v51 }
 0x16f   : > { %2031 = vmatmul.mubr.f32.gmra.mrb[56].mxu0 %v1587_v8 }
 0x170   : > { %2035 = vmatprep.mubr.f32.mxu0 %v1592_v9 }
 0x173   : > { %2036 = vmatmul.mubr.f32.gmra.mrb[58].mxu0 %v1591_v4 }
 0x174   : > { %2040 = vmatprep.mubr.f32.mxu0 %v1596_v2 }
 0x177   : > { %2041 = vmatmul.mubr.f32.gmra.mrb[60].mxu0 %v1595_v63 }
 0x178   : > { %2045 = vmatprep.mubr.f32.mxu0 %v1600_v42 }
 0x17b   : > { %2046 = vmatmul.mubr.f32.gmra.mrb[62].mxu0 %v1599_v45 }
 0x1ce   : > { %v6813_v58 = vpop.f32.mrb[0].mxu1 }
 0x1cf   : > { %v1789_v21 = vpop.f32.mrb[1].mxu1 }
 0x1d0   : > { %v2777_v21 = vld [vmem:[%s7258_s6] sm:$0xff] }
 0x1d2   : > { %v1892_v41 = vpop.f32.mrb[0].mxu0  ;;  %v6815_v37 = vpop.f32.mrb[2].mxu1 }
 0x1d3   : > { %v1894_v31 = vpop.f32.mrb[1].mxu0  ;;  %4300 = vmatprep.mubr.msk.f32.mxu1 %vm2291_vm2, %v1892_v41  ;;  %v1794_v55 = vpop.f32.mrb[3].mxu1  ;;  %v2778_v41 = vld [vmem:[%s7258_s6 + $0x8] sm:$0xff] }
 0x1d4   : > { %v2779_v31 = vld [vmem:[%s7258_s6 + $0x10] sm:$0xff] }
 0x1d6   : > { %v1897_v10 = vpop.f32.mrb[2].mxu0  ;;  %v6818_v29 = vpop.f32.mrb[4].mxu1 }
 0x1d7   : > { %v1899_v28 = vpop.f32.mrb[3].mxu0  ;;  %4301 = vmatmul.mubr.msk.f32.vlgmr.msra.gmra.mrb[16].mxu1 %vm2291_vm2, %v1897_v10  ;;  %v1799_v62 = vpop.f32.mrb[5].mxu1  ;;  %v4564_v10 = vpack.c.bf16 %v2778_v41, %v2777_v21 }
 0x1d8   : > { %v2780_v28 = vld [vmem:[%s7258_s6 + $0x18] sm:$0xff] }
 0x1d9   : > { %4565 = vmatprep.subr.bf16.mxu1 %v4564_v10 }
 0x1da   : > { %v1902_v57 = vpop.f32.mrb[4].mxu0  ;;  %v6821_v19 = vpop.f32.mrb[6].mxu1  ;;  %4567 = vmatpush3.bf16.msra.mxu1 %v4564_v10 }
 0x1db   : > { %v1904_v17 = vpop.f32.mrb[5].mxu0  ;;  %4303 = vmatprep.mubr.msk.f32.mxu1 %vm2291_vm2, %v1902_v57  ;;  %v1804_v36 = vpop.f32.mrb[7].mxu1 }
 0x1dc   : > { %v4568_v17 = vpack.c.bf16 %v2780_v28, %v2779_v31 }
 0x1de   : > { %v1907_v35 = vpop.f32.mrb[6].mxu0  ;;  %v6824_v7 = vpop.f32.mrb[8].mxu1  ;;  %4569 = vmatprep.subr.bf16.mxu1 %v4568_v17 }
 0x1df   : > { %v1909_v59 = vpop.f32.mrb[7].mxu0  ;;  %4304 = vmatmul.mubr.msk.f32.gmra.mrb[18].mxu1 %vm2291_vm2, %v1907_v35  ;;  %v1809_v40 = vpop.f32.mrb[9].mxu1 }
 0x1e0   : > { %4571 = vmatpush3.bf16.msra.mxu1 %v4568_v17 }
 0x1e2   : > { %v1912_v39 = vpop.f32.mrb[8].mxu0  ;;  %v6827_v23 = vpop.f32.mrb[10].mxu1 }
 0x1e3   : > { %v1914_v49 = vpop.f32.mrb[9].mxu0  ;;  %4306 = vmatprep.mubr.msk.f32.mxu1 %vm2291_vm2, %v1912_v39  ;;  %v1814_v5 = vpop.f32.mrb[11].mxu1 }
 0x1e6   : > { %v1917_v1 = vpop.f32.mrb[10].mxu0 }
 0x1e7   : > { %v6830_v53 = vpop.f32.mrb[12].mxu1  ;;  %v1919_v34 = vpop.f32.mrb[11].mxu0  ;;  %4307 = vmatmul.mubr.msk.f32.gmra.mrb[20].mxu1 %vm2291_vm2, %v1917_v1 }
 0x1e8   : > { %v1819_v56 = vpop.f32.mrb[13].mxu1 }
 0x1ea   : > { %v1922_v14 = vpop.f32.mrb[12].mxu0 }
 0x1eb   : > { %v6833_v15 = vpop.f32.mrb[14].mxu1  ;;  %v1924_v20 = vpop.f32.mrb[13].mxu0  ;;  %4309 = vmatprep.mubr.msk.f32.mxu1 %vm2291_vm2, %v1922_v14 }
 0x1ec   : > { %v1824_v50 = vpop.f32.mrb[15].mxu1 }
 0x1ee   : > { %v1927_v3 = vpop.f32.mrb[14].mxu0 }
 0x1ef   : > { %v1929_v44 = vpop.f32.mrb[15].mxu0  ;;  %4310 = vmatmul.mubr.msk.f32.gmra.mrb[22].mxu1 %vm2291_vm2, %v1927_v3 }
 0x1f2   : > { %v1932_v47 = vpop.f32.mrb[16].mxu0 }
 0x1f3   : > { %v1934_v48 = vpop.f32.mrb[17].mxu0  ;;  %4312 = vmatprep.mubr.msk.f32.mxu1 %vm2291_vm2, %v1932_v47 }
 0x1f6   : > { %v1937_v26 = vpop.f32.mrb[18].mxu0 }
 0x1f7   : > { %v1939_v6 = vpop.f32.mrb[19].mxu0  ;;  %4313 = vmatmul.mubr.msk.f32.gmra.mrb[24].mxu1 %vm2291_vm2, %v1937_v26  ;;  %v2092_v26 = vpop.permute.xlu0 %2091 }
 0x1fa   : > { %v1942_v51 = vpop.f32.mrb[20].mxu0 }
 0x1fb   : > { %v1944_v32 = vpop.f32.mrb[21].mxu0  ;;  %4315 = vmatprep.mubr.msk.f32.mxu1 %vm2291_vm2, %v1942_v51  ;;  %v6891_v51 = vld [vmem:[%s7260_s8] ss:$0 sm:$0xff] }
 0x1fe   : > { %v1947_v43 = vpop.f32.mrb[22].mxu0 }
 0x1ff   : > { %v1949_v22 = vpop.f32.mrb[23].mxu0  ;;  %4316 = vmatmul.mubr.msk.f32.gmra.mrb[26].mxu1 %vm2291_vm2, %v1947_v43 }
 0x202   : > { %v1952_v52 = vpop.f32.mrb[24].mxu0 }
 0x203   : > { %v1954_v27 = vpop.f32.mrb[25].mxu0  ;;  %4318 = vmatprep.mubr.msk.f32.mxu1 %vm2291_vm2, %v1952_v52 }
 0x206   : > { %v1957_v8 = vpop.f32.mrb[26].mxu0 }
 0x207   : > { %v1959_v9 = vpop.f32.mrb[27].mxu0  ;;  %4319 = vmatmul.mubr.msk.f32.gmra.mrb[28].mxu1 %vm2291_vm2, %v1957_v8 }
 0x208   : > { %v2102_v9 = vpop.permute.xlu0 %2101 }
 0x20a   : > { %v1962_v11 = vpop.f32.mrb[28].mxu0 }
 0x20b   : > { %v1964_v38 = vpop.f32.mrb[29].mxu0  ;;  %4321 = vmatprep.mubr.msk.f32.mxu1 %vm2291_vm2, %v1962_v11 }
 0x20e   : > { %v1967_v4 = vpop.f32.mrb[30].mxu0 }
 0x20f   : > { %v1969_v30 = vpop.f32.mrb[31].mxu0  ;;  %4322 = vmatmul.mubr.msk.f32.gmra.mrb[30].mxu1 %vm2291_vm2, %v1967_v4 }
 0x212   : > { %v1972_v33 = vpop.f32.mrb[32].mxu0 }
 0x213   : > { %v1974_v18 = vpop.f32.mrb[33].mxu0  ;;  %4324 = vmatprep.mubr.msk.f32.mxu1 %vm2291_vm2, %v1972_v33 }
 0x216   : > { %v1977_v2 = vpop.f32.mrb[34].mxu0 }
 0x217   : > { %v1979_v63 = vpop.f32.mrb[35].mxu0  ;;  %4325 = vmatmul.mubr.msk.f32.gmra.mrb[32].mxu1 %vm2291_vm2, %v1977_v2 }
 0x21a   : > { %v1982_v25 = vpop.f32.mrb[36].mxu0 }
 0x21b   : > { %v1984_v12 = vpop.f32.mrb[37].mxu0  ;;  %4327 = vmatprep.mubr.msk.f32.mxu1 %vm2291_vm2, %v1982_v25 }
 0x21e   : > { %v1987_v16 = vpop.f32.mrb[38].mxu0 }
 0x21f   : > { %v1989_v46 = vpop.f32.mrb[39].mxu0  ;;  %4328 = vmatmul.mubr.msk.f32.gmra.mrb[34].mxu1 %vm2291_vm2, %v1987_v16 }
 0x222   : > { %v1992_v42 = vpop.f32.mrb[40].mxu0 }
 0x223   : > { %v1994_v45 = vpop.f32.mrb[41].mxu0  ;;  %4330 = vmatprep.mubr.msk.f32.mxu1 %vm2291_vm2, %v1992_v42 }
 0x224   : > { %v2112_v45 = vpop.permute.xlu0 %2111 }
 0x226   : > { %v1997_v54 = vpop.f32.mrb[42].mxu0 }
 0x227   : > { %v1999_v61 = vpop.f32.mrb[43].mxu0  ;;  %4331 = vmatmul.mubr.msk.f32.gmra.mrb[36].mxu1 %vm2291_vm2, %v1997_v54 }
 0x22a   : > { %v2002_v0 = vpop.f32.mrb[44].mxu0 }
 0x22b   : > { %v2004_v13 = vpop.f32.mrb[45].mxu0  ;;  %4333 = vmatprep.mubr.msk.f32.mxu1 %vm2291_vm2, %v2002_v0 }
 0x22e   : > { %v2007_v24 = vpop.f32.mrb[46].mxu0 }
 0x22f   : > { %v2009_v60 = vpop.f32.mrb[47].mxu0  ;;  %4334 = vmatmul.mubr.msk.f32.gmra.mrb[38].mxu1 %vm2291_vm2, %v2007_v24 }
 0x232   : > { %v2012_v55 = vpop.f32.mrb[48].mxu0 }
 0x233   : > { %v2013_v62 = vadd.f32 %v2012_v55, %v6813_v58  ;;  %v2014_v57 = vpop.f32.mrb[49].mxu0 }
 0x234   : > { %v2122_v57 = vpop.permute.xlu0 %2121 }
 0x235   : > { %4336 = vmatprep.mubr.msk.f32.mxu1 %vm2291_vm2, %v2013_v62 }
 0x236   : > { %v2017_v36 = vpop.f32.mrb[50].mxu0 }
 0x237   : > { %v2018_v35 = vadd.f32 %v2017_v36, %v6815_v37  ;;  %v2019_v59 = vpop.f32.mrb[51].mxu0 }
 0x239   : > { %4337 = vmatmul.mubr.msk.f32.gmra.mrb[40].mxu1 %vm2291_vm2, %v2018_v35 }
 0x23a   : > { %v2022_v40 = vpop.f32.mrb[52].mxu0 }
 0x23b   : > { %v2023_v39 = vadd.f32 %v2022_v40, %v6818_v29  ;;  %v2024_v49 = vpop.f32.mrb[53].mxu0 }
 0x23d   : > { %4339 = vmatprep.mubr.msk.f32.mxu1 %vm2291_vm2, %v2023_v39 }
 0x23e   : > { %v2027_v58 = vpop.f32.mrb[54].mxu0 }
 0x23f   : > { %v2028_v5 = vadd.f32 %v2027_v58, %v6821_v19  ;;  %v2029_v1 = vpop.f32.mrb[55].mxu0 }
 0x241   : > { %4340 = vmatmul.mubr.msk.f32.gmra.mrb[42].mxu1 %vm2291_vm2, %v2028_v5 }
 0x242   : > { %v2032_v34 = vpop.f32.mrb[56].mxu0 }
 0x243   : > { %v2033_v56 = vadd.f32 %v2032_v34, %v6824_v7  ;;  %v2034_v37 = vpop.f32.mrb[57].mxu0  ;;  %v6884_v7 = vld [vmem:[%s7256_s4] ss:$0 sm:$0xff] }
 0x244   : > { %v2257_v30 = vmul.f32 %v6884_v7, %v2102_v9  ;;  %v2259_v13 = vmul.f32 %v6884_v7, %v2112_v45  ;;  %v2261_v59 = vmul.f32 %v6884_v7, %v2122_v57 }
 0x245   : > { %4342 = vmatprep.mubr.msk.f32.mxu1 %vm2291_vm2, %v2033_v56 }
 0x246   : > { %v2037_v14 = vpop.f32.mrb[58].mxu0 }
 0x247   : > { %v2038_v20 = vadd.f32 %v2037_v14, %v6827_v23  ;;  %v2039_v50 = vpop.f32.mrb[59].mxu0  ;;  %v2097_v23 = vpop.permute.xlu1 %2096 }
 0x248   : > { %v2256_v6 = vmul.f32 %v6884_v7, %v2097_v23  ;;  %v2132_v14 = vpop.permute.xlu0 %2131 }
 0x249   : > { %4343 = vmatmul.mubr.msk.f32.gmra.mrb[44].mxu1 %vm2291_vm2, %v2038_v20 }
 0x24a   : > { %v2042_v29 = vpop.f32.mrb[60].mxu0 }
 0x24b   : > { %v2043_v3 = vadd.f32 %v2042_v29, %v6830_v53  ;;  %v2044_v44 = vpop.f32.mrb[61].mxu0  ;;  %v2255_v53 = vmul.f32 %v6884_v7, %v2092_v26  ;;  %v2107_v27 = vpop.permute.xlu1 %2106 }
 0x24c   : > { %v2258_v4 = vmul.f32 %v6884_v7, %v2107_v27 }
 0x24d   : > { %4345 = vmatprep.mubr.msk.f32.mxu1 %vm2291_vm2, %v2043_v3  ;;  %v2263_v3 = vmul.f32 %v6884_v7, %v2132_v14 }
 0x24e   : > { %v2047_v19 = vpop.f32.mrb[62].mxu0 }
 0x24f   : > { %v2048_v47 = vadd.f32 %v2047_v19, %v6833_v15  ;;  %v2049_v48 = vpop.f32.mrb[63].mxu0  ;;  %v2117_v46 = vpop.permute.xlu1 %2116 }
 0x250   : > { %v2260_v0 = vmul.f32 %v6884_v7, %v2117_v46 }
 0x251   : > { %4346 = vmatmul.mubr.msk.f32.gmra.mrb[46].mxu1 %vm2291_vm2, %v2048_v47 }
 0x253   : > { %v2127_v28 = vpop.permute.xlu1 %2126 }
 0x254   : > { %v2262_v35 = vmul.f32 %v6884_v7, %v2127_v28 }
 0x257   : > { %v2137_v56 = vpop.permute.xlu1 %2136 }
 0x258   : > { %v2264_v29 = vmul.f32 %v6884_v7, %v2137_v56 }
 0x2aa   : > { %v4302_v15 = vpop.f32.mrb[16].mxu1 }
 0x2ab   : > { %v2614_v32 = vadd.f32 %v4302_v15, %v2256_v6  ;;  %v2454_v43 = vpop.f32.mrb[17].mxu1 }
 0x2ac   : > { %v2613_v22 = vadd.f32 %v2454_v43, %v2255_v53  ;;  %v2147_v53 = vpop.permute.xlu1 %2146 }
 0x2ad   : > { %v2650_v52 = vadd.f32 %v6891_v51, %v2614_v32  ;;  %v2142_v32 = vpop.permute.xlu0 %2141 }
 0x2ae   : > { %v2649_v8 = vadd.f32 %v6891_v51, %v2613_v22  ;;  %v2265_v27 = vmul.f32 %v6884_v7, %v2142_v32 }
 0x2af   : > { %v2714_v11 = vmul.f32 0.01, %v2650_v52  ;;  %vm2682_vm3 = vcmp.ge.f32.partialorder %v2650_v52, 0.0 }
 0x2b0   : > { %v2713_v38 = vmul.f32 0.01, %v2649_v8  ;;  %vm2681_vm6 = vcmp.ge.f32.partialorder %v2649_v8, 0.0 }
 0x2b1   : > { %v2746_v2 = vsel %vm2682_vm3, %v2650_v52, %v2714_v11  ;;  %v2266_v52 = vmul.f32 %v6884_v7, %v2147_v53 }
 0x2b2   : > { %v4305_v33 = vpop.f32.mrb[18].mxu1  ;;  %v2745_v18 = vsel %vm2681_vm6, %v2649_v8, %v2713_v38 }
 0x2b3   : > { %v2616_v63 = vadd.f32 %v4305_v33, %v2258_v4  ;;  %v2464_v25 = vpop.f32.mrb[19].mxu1  ;;  %4356 = vmatprep.mubr.msk.f32.mxu1 %vm2291_vm2, %v2745_v18  ;;  %v2157_v18 = vpop.permute.xlu1 %2156 }
 0x2b4   : > { %v2615_v12 = vadd.f32 %v2464_v25, %v2257_v30  ;;  %4357 = vmatmul.mubr.msk.f32.vlgmr.msra.gmra.mrb[48].mxu1 %vm2291_vm2, %v2746_v2 }
 0x2b5   : > { %v2652_v16 = vadd.f32 %v6891_v51, %v2616_v63  ;;  %v2152_v63 = vpop.permute.xlu0 %2151 }
 0x2b6   : > { %v2651_v42 = vadd.f32 %v6891_v51, %v2615_v12  ;;  %v2267_v46 = vmul.f32 %v6884_v7, %v2152_v63 }
 0x2b7   : > { %v2716_v54 = vmul.f32 0.01, %v2652_v16  ;;  %vm2684_vm0 = vcmp.ge.f32.partialorder %v2652_v16, 0.0 }
 0x2b8   : > { %v2715_v61 = vmul.f32 0.01, %v2651_v42  ;;  %vm2683_vm4 = vcmp.ge.f32.partialorder %v2651_v42, 0.0 }
 0x2b9   : > { %v2748_v31 = vsel %vm2684_vm0, %v2652_v16, %v2716_v54  ;;  %v2268_v16 = vmul.f32 %v6884_v7, %v2157_v18 }
 0x2ba   : > { %v4308_v24 = vpop.f32.mrb[20].mxu1  ;;  %v2747_v60 = vsel %vm2683_vm4, %v2651_v42, %v2715_v61 }
 0x2bb   : > { %v2618_v21 = vadd.f32 %v4308_v24, %v2260_v0  ;;  %v2474_v41 = vpop.f32.mrb[21].mxu1  ;;  %4359 = vmatprep.mubr.msk.f32.mxu1 %vm2291_vm2, %v2747_v60  ;;  %v2167_v60 = vpop.permute.xlu1 %2166 }
 0x2bc   : > { %v2617_v55 = vadd.f32 %v2474_v41, %v2259_v13  ;;  %4360 = vmatmul.mubr.msk.f32.gmra.mrb[50].mxu1 %vm2291_vm2, %v2748_v31  ;;  %v2162_v41 = vpop.permute.xlu0 %2161 }
 0x2bd   : > { %v2654_v10 = vadd.f32 %v6891_v51, %v2618_v21  ;;  %v2269_v28 = vmul.f32 %v6884_v7, %v2162_v41 }
 0x2be   : > { %v2653_v62 = vadd.f32 %v6891_v51, %v2617_v55 }
 0x2bf   : > { %v2718_v17 = vmul.f32 0.01, %v2654_v10  ;;  %vm2686_vm13 = vcmp.ge.f32.partialorder %v2654_v10, 0.0 }
 0x2c0   : > { %v2717_v36 = vmul.f32 0.01, %v2653_v62  ;;  %vm2685_vm5 = vcmp.ge.f32.partialorder %v2653_v62, 0.0 }
 0x2c1   : > { %v2750_v5 = vsel %vm2686_vm13, %v2654_v10, %v2718_v17  ;;  %v2270_v10 = vmul.f32 %v6884_v7, %v2167_v60 }
 0x2c2   : > { %v4311_v40 = vpop.f32.mrb[22].mxu1  ;;  %v2749_v39 = vsel %vm2685_vm5, %v2653_v62, %v2717_v36 }
 0x2c3   : > { %v2620_v49 = vadd.f32 %v4311_v40, %v2262_v35  ;;  %v2484_v58 = vpop.f32.mrb[23].mxu1  ;;  %4362 = vmatprep.mubr.msk.f32.mxu1 %vm2291_vm2, %v2749_v39  ;;  %v2177_v39 = vpop.permute.xlu1 %2176 }
 0x2c4   : > { %v2619_v1 = vadd.f32 %v2484_v58, %v2261_v59  ;;  %4363 = vmatmul.mubr.msk.f32.gmra.mrb[52].mxu1 %vm2291_vm2, %v2750_v5  ;;  %v2172_v58 = vpop.permute.xlu0 %2171 }
 0x2c5   : > { %v2656_v34 = vadd.f32 %v6891_v51, %v2620_v49  ;;  %v2271_v56 = vmul.f32 %v6884_v7, %v2172_v58 }
 0x2c6   : > { %v2655_v37 = vadd.f32 %v6891_v51, %v2619_v1 }
 0x2c7   : > { %v2720_v20 = vmul.f32 0.01, %v2656_v34  ;;  %vm2688_vm15 = vcmp.ge.f32.partialorder %v2656_v34, 0.0 }
 0x2c8   : > { %v2719_v50 = vmul.f32 0.01, %v2655_v37  ;;  %vm2687_vm8 = vcmp.ge.f32.partialorder %v2655_v37, 0.0 }
 0x2c9   : > { %v2752_v23 = vsel %vm2688_vm15, %v2656_v34, %v2720_v20  ;;  %v2272_v34 = vmul.f32 %v6884_v7, %v2177_v39 }
 0x2ca   : > { %v4314_v44 = vpop.f32.mrb[24].mxu1  ;;  %v2751_v19 = vsel %vm2687_vm8, %v2655_v37, %v2719_v50 }
 0x2cb   : > { %v2622_v47 = vadd.f32 %v4314_v44, %v2264_v29  ;;  %v2494_v48 = vpop.f32.mrb[25].mxu1  ;;  %4365 = vmatprep.mubr.msk.f32.mxu1 %vm2291_vm2, %v2751_v19  ;;  %v2187_v19 = vpop.permute.xlu1 %2186 }
 0x2cc   : > { %v2621_v26 = vadd.f32 %v2494_v48, %v2263_v3  ;;  %4366 = vmatmul.mubr.msk.f32.gmra.mrb[54].mxu1 %vm2291_vm2, %v2752_v23  ;;  %v2182_v48 = vpop.permute.xlu0 %2181 }
 0x2cd   : > { %v2658_v6 = vadd.f32 %v6891_v51, %v2622_v47  ;;  %v2273_v53 = vmul.f32 %v6884_v7, %v2182_v48 }
 0x2ce   : > { %v2657_v15 = vadd.f32 %v6891_v51, %v2621_v26 }
 0x2cf   : > { %v2722_v43 = vmul.f32 0.01, %v2658_v6  ;;  %vm2690_vm10 = vcmp.ge.f32.partialorder %v2658_v6, 0.0 }
 0x2d0   : > { %v2721_v22 = vmul.f32 0.01, %v2657_v15  ;;  %vm2689_vm9 = vcmp.ge.f32.partialorder %v2657_v15, 0.0 }
 0x2d1   : > { %v2754_v4 = vsel %vm2690_vm10, %v2658_v6, %v2722_v43  ;;  %v2274_v6 = vmul.f32 %v6884_v7, %v2187_v19 }
 0x2d2   : > { %v4317_v8 = vpop.f32.mrb[26].mxu1  ;;  %v2753_v9 = vsel %vm2689_vm9, %v2657_v15, %v2721_v22 }
 0x2d3   : > { %v2624_v11 = vadd.f32 %v4317_v8, %v2266_v52  ;;  %v2504_v38 = vpop.f32.mrb[27].mxu1  ;;  %4368 = vmatprep.mubr.msk.f32.mxu1 %vm2291_vm2, %v2753_v9  ;;  %v2197_v9 = vpop.permute.xlu1 %2196 }
 0x2d4   : > { %v2623_v30 = vadd.f32 %v2504_v38, %v2265_v27  ;;  %4369 = vmatmul.mubr.msk.f32.gmra.mrb[56].mxu1 %vm2291_vm2, %v2754_v4  ;;  %v2192_v38 = vpop.permute.xlu0 %2191 }
 0x2d5   : > { %v2660_v33 = vadd.f32 %v6891_v51, %v2624_v11  ;;  %v2275_v18 = vmul.f32 %v6884_v7, %v2192_v38 }
 0x2d6   : > { %v2659_v2 = vadd.f32 %v6891_v51, %v2623_v30 }
 0x2d7   : > { %v2724_v25 = vmul.f32 0.01, %v2660_v33  ;;  %vm2692_vm12 = vcmp.ge.f32.partialorder %v2660_v33, 0.0 }
 0x2d8   : > { %v2723_v12 = vmul.f32 0.01, %v2659_v2  ;;  %vm2691_vm1 = vcmp.ge.f32.partialorder %v2659_v2, 0.0 }
 0x2d9   : > { %v2756_v0 = vsel %vm2692_vm12, %v2660_v33, %v2724_v25  ;;  %v2276_v33 = vmul.f32 %v6884_v7, %v2197_v9 }
 0x2da   : > { %v4320_v42 = vpop.f32.mrb[28].mxu1  ;;  %v2755_v45 = vsel %vm2691_vm1, %v2659_v2, %v2723_v12 }
 0x2db   : > { %v2626_v54 = vadd.f32 %v4320_v42, %v2268_v16  ;;  %v2514_v61 = vpop.f32.mrb[29].mxu1  ;;  %4371 = vmatprep.mubr.msk.f32.mxu1 %vm2291_vm2, %v2755_v45  ;;  %v2207_v45 = vpop.permute.xlu1 %2206 }
 0x2dc   : > { %v2625_v13 = vadd.f32 %v2514_v61, %v2267_v46  ;;  %4372 = vmatmul.mubr.msk.f32.gmra.mrb[58].mxu1 %vm2291_vm2, %v2756_v0  ;;  %v2202_v61 = vpop.permute.xlu0 %2201 }
 0x2dd   : > { %v2662_v24 = vadd.f32 %v6891_v51, %v2626_v54  ;;  %v2277_v60 = vmul.f32 %v6884_v7, %v2202_v61 }
 0x2de   : > { %v2661_v21 = vadd.f32 %v6891_v51, %v2625_v13 }
 0x2df   : > { %v2726_v31 = vmul.f32 0.01, %v2662_v24  ;;  %vm2694_vm7 = vcmp.ge.f32.partialorder %v2662_v24, 0.0 }
 0x2e0   : > { %v2725_v55 = vmul.f32 0.01, %v2661_v21  ;;  %vm2693_vm11 = vcmp.ge.f32.partialorder %v2661_v21, 0.0 }
 0x2e1   : > { %v2758_v35 = vsel %vm2694_vm7, %v2662_v24, %v2726_v31  ;;  %v2278_v24 = vmul.f32 %v6884_v7, %v2207_v45 }
 0x2e2   : > { %v4323_v62 = vpop.f32.mrb[30].mxu1  ;;  %v2757_v57 = vsel %vm2693_vm11, %v2661_v21, %v2725_v55 }
 0x2e3   : > { %v2628_v17 = vadd.f32 %v4323_v62, %v2270_v10  ;;  %v2524_v36 = vpop.f32.mrb[31].mxu1  ;;  %4374 = vmatprep.mubr.msk.f32.mxu1 %vm2291_vm2, %v2757_v57 }
 0x2e4   : > { %v2627_v59 = vadd.f32 %v2524_v36, %v2269_v28  ;;  %4375 = vmatmul.mubr.msk.f32.gmra.mrb[60].mxu1 %vm2291_vm2, %v2758_v35  ;;  %v2217_v36 = vpop.permute.xlu1 %2216 }
 0x2e5   : > { %v2664_v40 = vadd.f32 %v6891_v51, %v2628_v17  ;;  %v2280_v39 = vmul.f32 %v6884_v7, %v2217_v36 }
 0x2e6   : > { %v2663_v49 = vadd.f32 %v6891_v51, %v2627_v59  ;;  %v2212_v59 = vpop.permute.xlu0 %2211 }
 0x2e7   : > { %v2728_v5 = vmul.f32 0.01, %v2664_v40  ;;  %vm2696_vm3 = vcmp.ge.f32.partialorder %v2664_v40, 0.0  ;;  %v2279_v58 = vmul.f32 %v6884_v7, %v2212_v59  ;;  %v7002_v59 = vld [vmem:[%s7260_s8 + $0x1] ss:$0 sm:$0xff] }
 0x2e8   : > { %v2727_v1 = vmul.f32 0.01, %v2663_v49  ;;  %vm2695_vm14 = vcmp.ge.f32.partialorder %v2663_v49, 0.0  ;;  %v2227_v19 = vpop.permute.xlu1 %2226 }
 0x2e9   : > { %v2760_v29 = vsel %vm2696_vm3, %v2664_v40, %v2728_v5 }
 0x2ea   : > { %v4326_v37 = vpop.f32.mrb[32].mxu1  ;;  %v2759_v14 = vsel %vm2695_vm14, %v2663_v49, %v2727_v1  ;;  %v3202_v1 = vld [vmem:[%s7259_s7] sm:$0xff]  ;;  %v2222_v48 = vpop.permute.xlu0 %2221 }
 0x2eb   : > { %v2630_v20 = vadd.f32 %v4326_v37, %v2272_v34  ;;  %v2534_v50 = vpop.f32.mrb[33].mxu1  ;;  %4377 = vmatprep.mubr.msk.f32.mxu1 %vm2291_vm2, %v2759_v14  ;;  %v3203_v34 = vld [vmem:[%s7259_s7 + $0x8] sm:$0xff] }
 0x2ec   : > { %v2629_v3 = vadd.f32 %v2534_v50, %v2271_v56  ;;  %4378 = vmatmul.mubr.msk.f32.gmra.mrb[62].mxu1 %vm2291_vm2, %v2760_v29  ;;  %v3204_v56 = vld [vmem:[%s7259_s7 + $0x10] sm:$0xff]  ;;  %v3205_v50 = vld [vmem:[%s7259_s7 + $0x18] sm:$0xff]  ;;  %v2237_v9 = vpop.permute.xlu1 %2236 }
 0x2ed   : > { %v2666_v44 = vadd.f32 %v6891_v51, %v2630_v20  ;;  %v4572_v20 = vpack.c.bf16 %v3203_v34, %v3202_v1 }
 0x2ee   : > { %v2665_v47 = vadd.f32 %v6891_v51, %v2629_v3  ;;  %v4576_v3 = vpack.c.bf16 %v3205_v50, %v3204_v56  ;;  %v2232_v38 = vpop.permute.xlu0 %2231 }
 0x2ef   : > { %v2730_v23 = vmul.f32 0.01, %v2666_v44  ;;  %vm2698_vm4 = vcmp.ge.f32.partialorder %v2666_v44, 0.0  ;;  %4573 = vmatprep.subr.bf16.mxu1 %v4572_v20 }
 0x2f0   : > { %v2729_v26 = vmul.f32 0.01, %v2665_v47  ;;  %vm2697_vm6 = vcmp.ge.f32.partialorder %v2665_v47, 0.0  ;;  %4575 = vmatpush3.bf16.msra.mxu1 %v4572_v20  ;;  %v2247_v45 = vpop.permute.xlu1 %2246 }
 0x2f1   : > { %v2762_v52 = vsel %vm2698_vm4, %v2666_v44, %v2730_v23  ;;  %4577 = vmatprep.subr.bf16.mxu1 %v4576_v3 }
 0x2f2   : > { %v4329_v15 = vpop.f32.mrb[34].mxu1  ;;  %v2761_v32 = vsel %vm2697_vm6, %v2665_v47, %v2729_v26  ;;  %v2242_v61 = vpop.permute.xlu0 %2241 }
 0x2f3   : > { %v2632_v43 = vadd.f32 %v4329_v15, %v2274_v6  ;;  %v2544_v22 = vpop.f32.mrb[35].mxu1  ;;  %4380 = vmatprep.mubr.msk.f32.mxu1 %vm2291_vm2, %v2761_v32  ;;  %v2282_v6 = vmul.f32 %v6884_v7, %v2227_v19 }
 0x2f4   : > { %v2631_v27 = vadd.f32 %v2544_v22, %v2273_v53  ;;  %4381 = vmatmul.mubr.msk.f32.gmra.mrb[64].mxu1 %vm2291_vm2, %v2762_v52  ;;  %v2281_v53 = vmul.f32 %v6884_v7, %v2222_v48 }
 0x2f5   : > { %v2668_v8 = vadd.f32 %v6891_v51, %v2632_v43  ;;  %4579 = vmatpush3.bf16.msra.mxu1 %v4576_v3 }
 0x2f6   : > { %v2667_v11 = vadd.f32 %v6891_v51, %v2631_v27 }
 0x2f7   : > { %v2732_v4 = vmul.f32 0.01, %v2668_v8  ;;  %vm2700_vm5 = vcmp.ge.f32.partialorder %v2668_v8, 0.0 }
 0x2f8   : > { %v2731_v30 = vmul.f32 0.01, %v2667_v11  ;;  %vm2699_vm0 = vcmp.ge.f32.partialorder %v2667_v11, 0.0 }
 0x2f9   : > { %v2764_v16 = vsel %vm2700_vm5, %v2668_v8, %v2732_v4 }
 0x2fa   : > { %v4332_v2 = vpop.f32.mrb[36].mxu1  ;;  %v2763_v63 = vsel %vm2699_vm0, %v2667_v11, %v2731_v30 }
 0x2fb   : > { %v2634_v25 = vadd.f32 %v4332_v2, %v2276_v33  ;;  %v2554_v12 = vpop.f32.mrb[37].mxu1  ;;  %4383 = vmatprep.mubr.msk.f32.mxu1 %vm2291_vm2, %v2763_v63  ;;  %v2284_v33 = vmul.f32 %v6884_v7, %v2237_v9 }
 0x2fc   : > { %v2633_v46 = vadd.f32 %v2554_v12, %v2275_v18  ;;  %4384 = vmatmul.mubr.msk.f32.gmra.mrb[66].mxu1 %vm2291_vm2, %v2764_v16  ;;  %v2283_v18 = vmul.f32 %v6884_v7, %v2232_v38 }
 0x2fd   : > { %v2670_v42 = vadd.f32 %v6891_v51, %v2634_v25 }
 0x2fe   : > { %v2669_v54 = vadd.f32 %v6891_v51, %v2633_v46 }
 0x2ff   : > { %v2734_v0 = vmul.f32 0.01, %v2670_v42  ;;  %vm2702_vm8 = vcmp.ge.f32.partialorder %v2670_v42, 0.0 }
 0x300   : > { %v2733_v13 = vmul.f32 0.01, %v2669_v54  ;;  %vm2701_vm13 = vcmp.ge.f32.partialorder %v2669_v54, 0.0 }
 0x301   : > { %v2766_v10 = vsel %vm2702_vm8, %v2670_v42, %v2734_v0 }
 0x302   : > { %v4335_v21 = vpop.f32.mrb[38].mxu1  ;;  %v2765_v41 = vsel %vm2701_vm13, %v2669_v54, %v2733_v13 }
 0x303   : > { %v2636_v31 = vadd.f32 %v4335_v21, %v2278_v24  ;;  %v2564_v55 = vpop.f32.mrb[39].mxu1  ;;  %4386 = vmatprep.mubr.msk.f32.mxu1 %vm2291_vm2, %v2765_v41  ;;  %v2286_v24 = vmul.f32 %v6884_v7, %v2247_v45 }
 0x304   : > { %v2635_v28 = vadd.f32 %v2564_v55, %v2277_v60  ;;  %4387 = vmatmul.mubr.msk.f32.gmra.mrb[68].mxu1 %vm2291_vm2, %v2766_v10  ;;  %v2285_v60 = vmul.f32 %v6884_v7, %v2242_v61 }
 0x305   : > { %v2672_v62 = vadd.f32 %v6891_v51, %v2636_v31 }
 0x306   : > { %v2671_v57 = vadd.f32 %v6891_v51, %v2635_v28 }
 0x307   : > { %v2736_v17 = vmul.f32 0.01, %v2672_v62  ;;  %vm2704_vm9 = vcmp.ge.f32.partialorder %v2672_v62, 0.0 }
 0x308   : > { %v2735_v35 = vmul.f32 0.01, %v2671_v57  ;;  %vm2703_vm15 = vcmp.ge.f32.partialorder %v2671_v57, 0.0 }
 0x309   : > { %v2768_v49 = vsel %vm2704_vm9, %v2672_v62, %v2736_v17 }
 0x30a   : > { %v2767_v40 = vsel %vm2703_vm15, %v2671_v57, %v2735_v35 }
 0x30b   : > { %4389 = vmatprep.mubr.msk.f32.mxu1 %vm2291_vm2, %v2767_v40 }
 0x30c   : > { %v4338_v5 = vpop.f32.mrb[40].mxu1  ;;  %4390 = vmatmul.mubr.msk.f32.gmra.mrb[70].mxu1 %vm2291_vm2, %v2768_v49 }
 0x30d   : > { %v2638_v37 = vadd.f32 %v4338_v5, %v2280_v39  ;;  %v2574_v14 = vpop.f32.mrb[41].mxu1 }
 0x30e   : > { %v2637_v29 = vadd.f32 %v2574_v14, %v2279_v58 }
 0x30f   : > { %v2674_v44 = vadd.f32 %v6891_v51, %v2638_v37 }
 0x310   : > { %v2673_v47 = vadd.f32 %v6891_v51, %v2637_v29 }
 0x311   : > { %v2738_v23 = vmul.f32 0.01, %v2674_v44  ;;  %vm2706_vm1 = vcmp.ge.f32.partialorder %v2674_v44, 0.0 }
 0x312   : > { %v2737_v26 = vmul.f32 0.01, %v2673_v47  ;;  %vm2705_vm10 = vcmp.ge.f32.partialorder %v2673_v47, 0.0 }
 0x313   : > { %v2770_v52 = vsel %vm2706_vm1, %v2674_v44, %v2738_v23 }
 0x314   : > { %v4341_v15 = vpop.f32.mrb[42].mxu1  ;;  %v2769_v32 = vsel %vm2705_vm10, %v2673_v47, %v2737_v26 }
 0x315   : > { %v2640_v43 = vadd.f32 %v4341_v15, %v2282_v6  ;;  %v2584_v22 = vpop.f32.mrb[43].mxu1  ;;  %4392 = vmatprep.mubr.msk.f32.mxu1 %vm2291_vm2, %v2769_v32 }
 0x316   : > { %v2639_v27 = vadd.f32 %v2584_v22, %v2281_v53  ;;  %4393 = vmatmul.mubr.msk.f32.gmra.mrb[72].mxu1 %vm2291_vm2, %v2770_v52 }
 0x317   : > { %v2676_v8 = vadd.f32 %v6891_v51, %v2640_v43 }
 0x318   : > { %v2675_v11 = vadd.f32 %v6891_v51, %v2639_v27 }
 0x319   : > { %v2740_v4 = vmul.f32 0.01, %v2676_v8  ;;  %vm2708_vm11 = vcmp.ge.f32.partialorder %v2676_v8, 0.0 }
 0x31a   : > { %v2739_v30 = vmul.f32 0.01, %v2675_v11  ;;  %vm2707_vm12 = vcmp.ge.f32.partialorder %v2675_v11, 0.0 }
 0x31b   : > { %v2772_v16 = vsel %vm2708_vm11, %v2676_v8, %v2740_v4 }
 0x31c   : > { %v4344_v2 = vpop.f32.mrb[44].mxu1  ;;  %v2771_v63 = vsel %vm2707_vm12, %v2675_v11, %v2739_v30 }
 0x31d   : > { %v2642_v25 = vadd.f32 %v4344_v2, %v2284_v33  ;;  %v2594_v12 = vpop.f32.mrb[45].mxu1  ;;  %4395 = vmatprep.mubr.msk.f32.mxu1 %vm2291_vm2, %v2771_v63 }
 0x31e   : > { %v2641_v46 = vadd.f32 %v2594_v12, %v2283_v18  ;;  %4396 = vmatmul.mubr.msk.f32.gmra.mrb[74].mxu1 %vm2291_vm2, %v2772_v16 }
 0x31f   : > { %v2678_v42 = vadd.f32 %v6891_v51, %v2642_v25 }
 0x320   : > { %v2677_v54 = vadd.f32 %v6891_v51, %v2641_v46 }
 0x321   : > { %v2742_v0 = vmul.f32 0.01, %v2678_v42  ;;  %vm2710_vm14 = vcmp.ge.f32.partialorder %v2678_v42, 0.0 }
 0x322   : > { %v2741_v13 = vmul.f32 0.01, %v2677_v54  ;;  %vm2709_vm7 = vcmp.ge.f32.partialorder %v2677_v54, 0.0 }
 0x323   : > { %v2774_v10 = vsel %vm2710_vm14, %v2678_v42, %v2742_v0 }
 0x324   : > { %v4347_v21 = vpop.f32.mrb[46].mxu1  ;;  %v2773_v41 = vsel %vm2709_vm7, %v2677_v54, %v2741_v13 }
 0x325   : > { %v2644_v31 = vadd.f32 %v4347_v21, %v2286_v24  ;;  %v2604_v55 = vpop.f32.mrb[47].mxu1  ;;  %4398 = vmatprep.mubr.msk.f32.mxu1 %vm2291_vm2, %v2773_v41 }
 0x326   : > { %v2643_v28 = vadd.f32 %v2604_v55, %v2285_v60  ;;  %4399 = vmatmul.mubr.msk.f32.gmra.mrb[76].mxu1 %vm2291_vm2, %v2774_v10 }
 0x327   : > { %v2680_v62 = vadd.f32 %v6891_v51, %v2644_v31 }
 0x328   : > { %v2679_v57 = vadd.f32 %v6891_v51, %v2643_v28 }
 0x329   : > { %v2744_v17 = vmul.f32 0.01, %v2680_v62  ;;  %vm2712_vm6 = vcmp.ge.f32.partialorder %v2680_v62, 0.0 }
 0x32a   : > { %v2743_v36 = vmul.f32 0.01, %v2679_v57  ;;  %vm2711_vm3 = vcmp.ge.f32.partialorder %v2679_v57, 0.0 }
 0x32b   : > { %v2776_v7 = vsel %vm2712_vm6, %v2680_v62, %v2744_v17 }
 0x32c   : > { %v2775_v35 = vsel %vm2711_vm3, %v2679_v57, %v2743_v36 }
 0x32d   : > { %4401 = vmatprep.mubr.msk.f32.mxu1 %vm2291_vm2, %v2775_v35 }
 0x32e   : > { %4402 = vmatmul.mubr.msk.f32.gmra.mrb[78].mxu1 %vm2291_vm2, %v2776_v7 }
 0x387   : > { %v4358_v40 = vpop.f32.mrb[48].mxu1 }
 0x388   : > { %v2953_v39 = vadd.f32 %v4358_v40, %v7002_v59  ;;  %v2947_v49 = vpop.f32.mrb[49].mxu1 }
 0x389   : > { %v2948_v51 = vadd.f32 %v7002_v59, %v2947_v49 }
 0x38a   : > { %v3139_v58 = vmul.f32 0.01, %v2953_v39  ;;  %vm3107_vm4 = vcmp.ge.f32.partialorder %v2953_v39, 0.0 }
 0x38b   : > { %vm3106_vm0 = vcmp.ge.f32.partialorder %v2948_v51, 0.0  ;;  %v3138_v5 = vmul.f32 0.01, %v2948_v51 }
 0x38c   : > { %v3171_v34 = vsel %vm3107_vm4, %v2953_v39, %v3139_v58 }
 0x38d   : > { %v3170_v1 = vsel %vm3106_vm0, %v2948_v51, %v3138_v5 }
 0x38e   : > { %4412 = vmatprep.mubr.msk.f32.mxu1 %vm2291_vm2, %v3170_v1 }
 0x38f   : > { %v4361_v56 = vpop.f32.mrb[50].mxu1  ;;  %4413 = vmatmul.mubr.msk.f32.vlgmr.msra.gmra.mrb[80].mxu1 %vm2291_vm2, %v3171_v34 }
 0x390   : > { %v2963_v37 = vadd.f32 %v4361_v56, %v7002_v59  ;;  %v2957_v14 = vpop.f32.mrb[51].mxu1 }
 0x391   : > { %v2958_v20 = vadd.f32 %v7002_v59, %v2957_v14 }
 0x392   : > { %v3141_v50 = vmul.f32 0.01, %v2963_v37  ;;  %vm3109_vm5 = vcmp.ge.f32.partialorder %v2963_v37, 0.0 }
 0x393   : > { %vm3108_vm13 = vcmp.ge.f32.partialorder %v2958_v20, 0.0  ;;  %v3140_v29 = vmul.f32 0.01, %v2958_v20 }
 0x394   : > { %v3173_v44 = vsel %vm3109_vm5, %v2963_v37, %v3141_v50 }
 0x395   : > { %v3172_v3 = vsel %vm3108_vm13, %v2958_v20, %v3140_v29 }
 0x396   : > { %4415 = vmatprep.mubr.msk.f32.mxu1 %vm2291_vm2, %v3172_v3 }
 0x397   : > { %v4364_v19 = vpop.f32.mrb[52].mxu1  ;;  %4416 = vmatmul.mubr.msk.f32.gmra.mrb[82].mxu1 %vm2291_vm2, %v3173_v44 }
 0x398   : > { %v2973_v47 = vadd.f32 %v4364_v19, %v7002_v59  ;;  %v2967_v48 = vpop.f32.mrb[53].mxu1 }
 0x399   : > { %v2968_v23 = vadd.f32 %v7002_v59, %v2967_v48 }
 0x39a   : > { %v3143_v26 = vmul.f32 0.01, %v2973_v47  ;;  %vm3111_vm8 = vcmp.ge.f32.partialorder %v2973_v47, 0.0 }
 0x39b   : > { %vm3110_vm15 = vcmp.ge.f32.partialorder %v2968_v23, 0.0  ;;  %v3142_v6 = vmul.f32 0.01, %v2968_v23 }
 0x39c   : > { %v3175_v15 = vsel %vm3111_vm8, %v2973_v47, %v3143_v26 }
 0x39d   : > { %v3174_v53 = vsel %vm3110_vm15, %v2968_v23, %v3142_v6 }
 0x39e   : > { %4418 = vmatprep.mubr.msk.f32.mxu1 %vm2291_vm2, %v3174_v53 }
 0x39f   : > { %v4367_v32 = vpop.f32.mrb[54].mxu1  ;;  %4419 = vmatmul.mubr.msk.f32.gmra.mrb[84].mxu1 %vm2291_vm2, %v3175_v15 }
 0x3a0   : > { %v2983_v43 = vadd.f32 %v4367_v32, %v7002_v59  ;;  %v2977_v22 = vpop.f32.mrb[55].mxu1 }
 0x3a1   : > { %v2978_v52 = vadd.f32 %v7002_v59, %v2977_v22 }
 0x3a2   : > { %v3145_v27 = vmul.f32 0.01, %v2983_v43  ;;  %vm3113_vm9 = vcmp.ge.f32.partialorder %v2983_v43, 0.0 }
 0x3a3   : > { %vm3112_vm10 = vcmp.ge.f32.partialorder %v2978_v52, 0.0  ;;  %v3144_v8 = vmul.f32 0.01, %v2978_v52 }
 0x3a4   : > { %v3177_v11 = vsel %vm3113_vm9, %v2983_v43, %v3145_v27 }
 0x3a5   : > { %v3176_v9 = vsel %vm3112_vm10, %v2978_v52, %v3144_v8 }
 0x3a6   : > { %4421 = vmatprep.mubr.msk.f32.mxu1 %vm2291_vm2, %v3176_v9 }
 0x3a7   : > { %v4370_v38 = vpop.f32.mrb[56].mxu1  ;;  %4422 = vmatmul.mubr.msk.f32.gmra.mrb[86].mxu1 %vm2291_vm2, %v3177_v11 }
 0x3a8   : > { %v2993_v4 = vadd.f32 %v4370_v38, %v7002_v59  ;;  %v2987_v30 = vpop.f32.mrb[57].mxu1 }
 0x3a9   : > { %v2988_v33 = vadd.f32 %v7002_v59, %v2987_v30 }
 0x3aa   : > { %v3147_v18 = vmul.f32 0.01, %v2993_v4  ;;  %vm3115_vm1 = vcmp.ge.f32.partialorder %v2993_v4, 0.0 }
 0x3ab   : > { %vm3114_vm12 = vcmp.ge.f32.partialorder %v2988_v33, 0.0  ;;  %v3146_v2 = vmul.f32 0.01, %v2988_v33 }
 0x3ac   : > { %v3179_v25 = vsel %vm3115_vm1, %v2993_v4, %v3147_v18 }
 0x3ad   : > { %v3178_v63 = vsel %vm3114_vm12, %v2988_v33, %v3146_v2 }
 0x3ae   : > { %4424 = vmatprep.mubr.msk.f32.mxu1 %vm2291_vm2, %v3178_v63 }
 0x3af   : > { %v4373_v12 = vpop.f32.mrb[58].mxu1  ;;  %4425 = vmatmul.mubr.msk.f32.gmra.mrb[88].mxu1 %vm2291_vm2, %v3179_v25 }
 0x3b0   : > { %v3003_v16 = vadd.f32 %v4373_v12, %v7002_v59  ;;  %v2997_v46 = vpop.f32.mrb[59].mxu1 }
 0x3b1   : > { %v2998_v42 = vadd.f32 %v7002_v59, %v2997_v46 }
 0x3b2   : > { %v3149_v45 = vmul.f32 0.01, %v3003_v16  ;;  %vm3117_vm11 = vcmp.ge.f32.partialorder %v3003_v16, 0.0 }
 0x3b3   : > { %vm3116_vm7 = vcmp.ge.f32.partialorder %v2998_v42, 0.0  ;;  %v3148_v54 = vmul.f32 0.01, %v2998_v42 }
 0x3b4   : > { %v3181_v0 = vsel %vm3117_vm11, %v3003_v16, %v3149_v45 }
 0x3b5   : > { %v3180_v61 = vsel %vm3116_vm7, %v2998_v42, %v3148_v54 }
 0x3b6   : > { %4427 = vmatprep.mubr.msk.f32.mxu1 %vm2291_vm2, %v3180_v61 }
 0x3b7   : > { %v4376_v13 = vpop.f32.mrb[60].mxu1  ;;  %4428 = vmatmul.mubr.msk.f32.gmra.mrb[90].mxu1 %vm2291_vm2, %v3181_v0 }
 0x3b8   : > { %v3013_v24 = vadd.f32 %v4376_v13, %v7002_v59  ;;  %v3007_v60 = vpop.f32.mrb[61].mxu1 }
 0x3b9   : > { %v3008_v21 = vadd.f32 %v7002_v59, %v3007_v60 }
 0x3ba   : > { %v3151_v41 = vmul.f32 0.01, %v3013_v24  ;;  %vm3119_vm14 = vcmp.ge.f32.partialorder %v3013_v24, 0.0 }
 0x3bb   : > { %vm3118_vm3 = vcmp.ge.f32.partialorder %v3008_v21, 0.0  ;;  %v3150_v31 = vmul.f32 0.01, %v3008_v21 }
 0x3bc   : > { %v3183_v10 = vsel %vm3119_vm14, %v3013_v24, %v3151_v41 }
 0x3bd   : > { %v3182_v55 = vsel %vm3118_vm3, %v3008_v21, %v3150_v31 }
 0x3be   : > { %4430 = vmatprep.mubr.msk.f32.mxu1 %vm2291_vm2, %v3182_v55 }
 0x3bf   : > { %v4379_v28 = vpop.f32.mrb[62].mxu1  ;;  %4431 = vmatmul.mubr.msk.f32.gmra.mrb[92].mxu1 %vm2291_vm2, %v3183_v10 }
 0x3c0   : > { %v3023_v62 = vadd.f32 %v4379_v28, %v7002_v59  ;;  %v3017_v57 = vpop.f32.mrb[63].mxu1 }
 0x3c1   : > { %v3018_v17 = vadd.f32 %v7002_v59, %v3017_v57 }
 0x3c2   : > { %v3153_v36 = vmul.f32 0.01, %v3023_v62  ;;  %vm3121_vm6 = vcmp.ge.f32.partialorder %v3023_v62, 0.0 }
 0x3c3   : > { %vm3120_vm4 = vcmp.ge.f32.partialorder %v3018_v17, 0.0  ;;  %v3152_v35 = vmul.f32 0.01, %v3018_v17 }
 0x3c4   : > { %v3185_v40 = vsel %vm3121_vm6, %v3023_v62, %v3153_v36 }
 0x3c5   : > { %v3184_v7 = vsel %vm3120_vm4, %v3018_v17, %v3152_v35 }
 0x3c6   : > { %4433 = vmatprep.mubr.msk.f32.mxu1 %vm2291_vm2, %v3184_v7 }
 0x3c7   : > { %v4382_v39 = vpop.f32.mrb[64].mxu1  ;;  %4434 = vmatmul.mubr.msk.f32.gmra.mrb[94].mxu1 %vm2291_vm2, %v3185_v40 }
 0x3c8   : > { %v3033_v49 = vadd.f32 %v4382_v39, %v7002_v59  ;;  %v3027_v51 = vpop.f32.mrb[65].mxu1 }
 0x3c9   : > { %v3028_v58 = vadd.f32 %v7002_v59, %v3027_v51 }
 0x3ca   : > { %v3155_v5 = vmul.f32 0.01, %v3033_v49  ;;  %vm3123_vm0 = vcmp.ge.f32.partialorder %v3033_v49, 0.0 }
 0x3cb   : > { %vm3122_vm5 = vcmp.ge.f32.partialorder %v3028_v58, 0.0  ;;  %v3154_v1 = vmul.f32 0.01, %v3028_v58 }
 0x3cc   : > { %v3187_v56 = vsel %vm3123_vm0, %v3033_v49, %v3155_v5  ;;  %v7071_v49 = vld [vmem:[%s7260_s8 + $0x2] ss:$0 sm:$0xff] }
 0x3cd   : > { %v3186_v34 = vsel %vm3122_vm5, %v3028_v58, %v3154_v1  ;;  %v7078_v1 = vld [vmem:[%s7260_s8 + $0x3] ss:$0 sm:$0xff] }
 0x3ce   : > { %4436 = vmatprep.mubr.msk.f32.mxu1 %vm2291_vm2, %v3186_v34 }
 0x3cf   : > { %v4385_v37 = vpop.f32.mrb[66].mxu1  ;;  %4437 = vmatmul.mubr.msk.f32.gmra.mrb[96].mxu1 %vm2291_vm2, %v3187_v56 }
 0x3d0   : > { %v3043_v14 = vadd.f32 %v4385_v37, %v7002_v59  ;;  %v3037_v20 = vpop.f32.mrb[67].mxu1  ;;  %v7083_v37 = vld [vmem:[%s7260_s8 + $0x4] ss:$0 sm:$0xff] }
 0x3d1   : > { %v3038_v50 = vadd.f32 %v7002_v59, %v3037_v20 }
 0x3d2   : > { %v3157_v29 = vmul.f32 0.01, %v3043_v14  ;;  %vm3125_vm13 = vcmp.ge.f32.partialorder %v3043_v14, 0.0 }
 0x3d3   : > { %vm3124_vm8 = vcmp.ge.f32.partialorder %v3038_v50, 0.0  ;;  %v3156_v3 = vmul.f32 0.01, %v3038_v50 }
 0x3d4   : > { %v3189_v19 = vsel %vm3125_vm13, %v3043_v14, %v3157_v29 }
 0x3d5   : > { %v3188_v44 = vsel %vm3124_vm8, %v3038_v50, %v3156_v3 }
 0x3d6   : > { %4439 = vmatprep.mubr.msk.f32.mxu1 %vm2291_vm2, %v3188_v44 }
 0x3d7   : > { %v4388_v47 = vpop.f32.mrb[68].mxu1  ;;  %4440 = vmatmul.mubr.msk.f32.gmra.mrb[98].mxu1 %vm2291_vm2, %v3189_v19 }
 0x3d8   : > { %v3053_v48 = vadd.f32 %v4388_v47, %v7002_v59  ;;  %v3047_v23 = vpop.f32.mrb[69].mxu1 }
 0x3d9   : > { %v3048_v26 = vadd.f32 %v7002_v59, %v3047_v23 }
 0x3da   : > { %v3159_v6 = vmul.f32 0.01, %v3053_v48  ;;  %vm3127_vm15 = vcmp.ge.f32.partialorder %v3053_v48, 0.0 }
 0x3db   : > { %vm3126_vm9 = vcmp.ge.f32.partialorder %v3048_v26, 0.0  ;;  %v3158_v53 = vmul.f32 0.01, %v3048_v26 }
 0x3dc   : > { %v3191_v32 = vsel %vm3127_vm15, %v3053_v48, %v3159_v6 }
 0x3dd   : > { %v3190_v15 = vsel %vm3126_vm9, %v3048_v26, %v3158_v53 }
 0x3de   : > { %4442 = vmatprep.mubr.msk.f32.mxu1 %vm2291_vm2, %v3190_v15 }
 0x3df   : > { %v4391_v43 = vpop.f32.mrb[70].mxu1  ;;  %4443 = vmatmul.mubr.msk.f32.gmra.mrb[100].mxu1 %vm2291_vm2, %v3191_v32 }
 0x3e0   : > { %v3063_v22 = vadd.f32 %v4391_v43, %v7002_v59  ;;  %v3057_v52 = vpop.f32.mrb[71].mxu1 }
 0x3e1   : > { %v3058_v27 = vadd.f32 %v7002_v59, %v3057_v52 }
 0x3e2   : > { %v3161_v8 = vmul.f32 0.01, %v3063_v22  ;;  %vm3129_vm10 = vcmp.ge.f32.partialorder %v3063_v22, 0.0 }
 0x3e3   : > { %vm3128_vm1 = vcmp.ge.f32.partialorder %v3058_v27, 0.0  ;;  %v3160_v9 = vmul.f32 0.01, %v3058_v27 }
 0x3e4   : > { %v3193_v38 = vsel %vm3129_vm10, %v3063_v22, %v3161_v8 }
 0x3e5   : > { %v3192_v11 = vsel %vm3128_vm1, %v3058_v27, %v3160_v9 }
 0x3e6   : > { %4445 = vmatprep.mubr.msk.f32.mxu1 %vm2291_vm2, %v3192_v11 }
 0x3e7   : > { %4446 = vmatmul.mubr.msk.f32.gmra.mrb[102].mxu1 %vm2291_vm2, %v3193_v38 }
 0x3e9   : > { %v4394_v4 = vpop.f32.mrb[72].mxu1 }
 0x3ea   : > { %v3073_v30 = vadd.f32 %v4394_v4, %v7002_v59  ;;  %v3067_v33 = vpop.f32.mrb[73].mxu1 }
 0x3eb   : > { %v3068_v18 = vadd.f32 %v7002_v59, %v3067_v33 }
 0x3ec   : > { %v3163_v2 = vmul.f32 0.01, %v3073_v30  ;;  %vm3131_vm12 = vcmp.ge.f32.partialorder %v3073_v30, 0.0 }
 0x3ed   : > { %vm3130_vm11 = vcmp.ge.f32.partialorder %v3068_v18, 0.0  ;;  %v3162_v63 = vmul.f32 0.01, %v3068_v18 }
 0x3ee   : > { %v3195_v12 = vsel %vm3131_vm12, %v3073_v30, %v3163_v2 }
 0x3ef   : > { %v3194_v25 = vsel %vm3130_vm11, %v3068_v18, %v3162_v63 }
 0x3f0   : > { %4448 = vmatprep.mubr.msk.f32.mxu1 %vm2291_vm2, %v3194_v25 }
 0x3f1   : > { %v4397_v16 = vpop.f32.mrb[74].mxu1  ;;  %4449 = vmatmul.mubr.msk.f32.gmra.mrb[104].mxu1 %vm2291_vm2, %v3195_v12 }
 0x3f2   : > { %v3083_v46 = vadd.f32 %v4397_v16, %v7002_v59  ;;  %v3077_v42 = vpop.f32.mrb[75].mxu1 }
 0x3f3   : > { %v3078_v45 = vadd.f32 %v7002_v59, %v3077_v42 }
 0x3f4   : > { %v3165_v54 = vmul.f32 0.01, %v3083_v46  ;;  %vm3133_vm7 = vcmp.ge.f32.partialorder %v3083_v46, 0.0 }
 0x3f5   : > { %vm3132_vm14 = vcmp.ge.f32.partialorder %v3078_v45, 0.0  ;;  %v3164_v61 = vmul.f32 0.01, %v3078_v45 }
 0x3f6   : > { %v3197_v13 = vsel %vm3133_vm7, %v3083_v46, %v3165_v54 }
 0x3f7   : > { %v3196_v0 = vsel %vm3132_vm14, %v3078_v45, %v3164_v61 }
 0x3f8   : > { %4451 = vmatprep.mubr.msk.f32.mxu1 %vm2291_vm2, %v3196_v0 }
 0x3f9   : > { %v4400_v24 = vpop.f32.mrb[76].mxu1  ;;  %4452 = vmatmul.mubr.msk.f32.gmra.mrb[106].mxu1 %vm2291_vm2, %v3197_v13 }
 0x3fa   : > { %v3093_v60 = vadd.f32 %v4400_v24, %v7002_v59  ;;  %v3087_v21 = vpop.f32.mrb[77].mxu1 }
 0x3fb   : > { %v3088_v41 = vadd.f32 %v7002_v59, %v3087_v21 }
 0x3fc   : > { %v3167_v31 = vmul.f32 0.01, %v3093_v60  ;;  %vm3135_vm3 = vcmp.ge.f32.partialorder %v3093_v60, 0.0 }
 0x3fd   : > { %vm3134_vm6 = vcmp.ge.f32.partialorder %v3088_v41, 0.0  ;;  %v3166_v55 = vmul.f32 0.01, %v3088_v41 }
 0x3fe   : > { %v3199_v28 = vsel %vm3135_vm3, %v3093_v60, %v3167_v31 }
 0x3ff   : > { %v3198_v10 = vsel %vm3134_vm6, %v3088_v41, %v3166_v55 }
 0x400   : > { %4454 = vmatprep.mubr.msk.f32.mxu1 %vm2291_vm2, %v3198_v10 }
 0x401   : > { %v4403_v62 = vpop.f32.mrb[78].mxu1  ;;  %4455 = vmatmul.mubr.msk.f32.gmra.mrb[108].mxu1 %vm2291_vm2, %v3199_v28 }
 0x402   : > { %v3103_v57 = vadd.f32 %v4403_v62, %v7002_v59  ;;  %v3097_v17 = vpop.f32.mrb[79].mxu1 }
 0x403   : > { %v3098_v36 = vadd.f32 %v7002_v59, %v3097_v17 }
 0x404   : > { %v3169_v35 = vmul.f32 0.01, %v3103_v57  ;;  %vm3137_vm4 = vcmp.ge.f32.partialorder %v3103_v57, 0.0 }
 0x405   : > { %vm3136_vm0 = vcmp.ge.f32.partialorder %v3098_v36, 0.0  ;;  %v3168_v7 = vmul.f32 0.01, %v3098_v36 }
 0x406   : > { %v3201_v39 = vsel %vm3137_vm4, %v3103_v57, %v3169_v35 }
 0x407   : > { %v3200_v40 = vsel %vm3136_vm0, %v3098_v36, %v3168_v7 }
 0x408   : > { %4457 = vmatprep.mubr.msk.f32.mxu1 %vm2291_vm2, %v3200_v40 }
 0x409   : > { %4458 = vmatmul.mubr.msk.f32.gmra.mrb[110].mxu1 %vm2291_vm2, %v3201_v39 }
 0x462   : > { %v4414_v51 = vpop.f32.mrb[80].mxu1 }
 0x463   : > { %v3378_v58 = vadd.f32 %v4414_v51, %v7071_v49  ;;  %v3372_v59 = vpop.f32.mrb[81].mxu1 }
 0x464   : > { %v3373_v5 = vadd.f32 %v7071_v49, %v3372_v59 }
 0x465   : > { %vm3532_vm5 = vcmp.ge.f32.partialorder %v3378_v58, 0.0  ;;  %v3564_v34 = vmul.f32 0.01, %v3378_v58 }
 0x466   : > { %vm3531_vm13 = vcmp.ge.f32.partialorder %v3373_v5, 0.0  ;;  %v3563_v56 = vmul.f32 0.01, %v3373_v5 }
 0x467   : > { %v3596_v14 = vsel %vm3532_vm5, %v3378_v58, %v3564_v34 }
 0x468   : > { %v3632_v20 = vmul.f32 %v7078_v1, %v3596_v14  ;;  %v3595_v50 = vsel %vm3531_vm13, %v3373_v5, %v3563_v56 }
 0x469   : > { %v3631_v29 = vmul.f32 %v7078_v1, %v3595_v50 }
 0x46a   : > { %v3668_v3 = vadd.f32 %v7083_v37, %v3632_v20  ;;  %v4417_v44 = vpop.f32.mrb[82].mxu1 }
 0x46b   : > { %v3667_v19 = vadd.f32 %v7083_v37, %v3631_v29  ;;  %v3388_v47 = vadd.f32 %v4417_v44, %v7071_v49  ;;  %v3382_v48 = vpop.f32.mrb[83].mxu1 }
 0x46c   : > { %3700 = vst.msk [vmem:[%s7090_s22 + $0x8] sm:$0xff] %vm2291_vm2, %v3668_v3  ;;  %v3383_v23 = vadd.f32 %v7071_v49, %v3382_v48 }
 0x46d   : > { %3699 = vst.msk [vmem:[%s7090_s22] sm:$0xff] %vm2291_vm2, %v3667_v19  ;;  %vm3534_vm8 = vcmp.ge.f32.partialorder %v3388_v47, 0.0  ;;  %v3566_v26 = vmul.f32 0.01, %v3388_v47 }
 0x46e   : > { %vm3533_vm15 = vcmp.ge.f32.partialorder %v3383_v23, 0.0  ;;  %v3565_v6 = vmul.f32 0.01, %v3383_v23 }
 0x46f   : > { %v3598_v53 = vsel %vm3534_vm8, %v3388_v47, %v3566_v26 }
 0x470   : > { %v3634_v15 = vmul.f32 %v7078_v1, %v3598_v53  ;;  %v3597_v32 = vsel %vm3533_vm15, %v3383_v23, %v3565_v6 }
 0x471   : > { %v3633_v43 = vmul.f32 %v7078_v1, %v3597_v32 }
 0x472   : > { %v3670_v22 = vadd.f32 %v7083_v37, %v3634_v15  ;;  %v4420_v52 = vpop.f32.mrb[84].mxu1 }
 0x473   : > { %v3669_v27 = vadd.f32 %v7083_v37, %v3633_v43  ;;  %v3398_v8 = vadd.f32 %v4420_v52, %v7071_v49  ;;  %v3392_v9 = vpop.f32.mrb[85].mxu1 }
 0x474   : > { %3702 = vst.msk [vmem:[%s7090_s22 + $0x18] sm:$0xff] %vm2291_vm2, %v3670_v22  ;;  %v3393_v11 = vadd.f32 %v7071_v49, %v3392_v9 }
 0x475   : > { %3701 = vst.msk [vmem:[%s7090_s22 + $0x10] sm:$0xff] %vm2291_vm2, %v3669_v27  ;;  %vm3536_vm9 = vcmp.ge.f32.partialorder %v3398_v8, 0.0  ;;  %v3568_v38 = vmul.f32 0.01, %v3398_v8 }
 0x476   : > { %vm3535_vm10 = vcmp.ge.f32.partialorder %v3393_v11, 0.0  ;;  %v3567_v4 = vmul.f32 0.01, %v3393_v11 }
 0x477   : > { %v3600_v30 = vsel %vm3536_vm9, %v3398_v8, %v3568_v38 }
 0x478   : > { %v3636_v33 = vmul.f32 %v7078_v1, %v3600_v30  ;;  %v3599_v18 = vsel %vm3535_vm10, %v3393_v11, %v3567_v4 }
 0x479   : > { %v3635_v2 = vmul.f32 %v7078_v1, %v3599_v18 }
 0x47a   : > { %v3672_v63 = vadd.f32 %v7083_v37, %v3636_v33  ;;  %v4423_v25 = vpop.f32.mrb[86].mxu1 }
 0x47b   : > { %v3671_v12 = vadd.f32 %v7083_v37, %v3635_v2  ;;  %v3408_v16 = vadd.f32 %v4423_v25, %v7071_v49  ;;  %v3402_v46 = vpop.f32.mrb[87].mxu1 }
 0x47c   : > { %3704 = vst.msk [vmem:[%s7090_s22 + $0x28] sm:$0xff] %vm2291_vm2, %v3672_v63  ;;  %v3403_v42 = vadd.f32 %v7071_v49, %v3402_v46 }
 0x47d   : > { %3703 = vst.msk [vmem:[%s7090_s22 + $0x20] sm:$0xff] %vm2291_vm2, %v3671_v12  ;;  %vm3538_vm1 = vcmp.ge.f32.partialorder %v3408_v16, 0.0  ;;  %v3570_v45 = vmul.f32 0.01, %v3408_v16 }
 0x47e   : > { %vm3537_vm12 = vcmp.ge.f32.partialorder %v3403_v42, 0.0  ;;  %v3569_v54 = vmul.f32 0.01, %v3403_v42 }
 0x47f   : > { %v3602_v61 = vsel %vm3538_vm1, %v3408_v16, %v3570_v45 }
 0x480   : > { %v3638_v0 = vmul.f32 %v7078_v1, %v3602_v61  ;;  %v3601_v13 = vsel %vm3537_vm12, %v3403_v42, %v3569_v54 }
 0x481   : > { %v3637_v24 = vmul.f32 %v7078_v1, %v3601_v13 }
 0x482   : > { %v3674_v60 = vadd.f32 %v7083_v37, %v3638_v0  ;;  %v4426_v21 = vpop.f32.mrb[88].mxu1 }
 0x483   : > { %v3673_v41 = vadd.f32 %v7083_v37, %v3637_v24  ;;  %v3418_v31 = vadd.f32 %v4426_v21, %v7071_v49  ;;  %v3412_v55 = vpop.f32.mrb[89].mxu1 }
 0x484   : > { %3706 = vst.msk [vmem:[%s7090_s22 + $0x38] sm:$0xff] %vm2291_vm2, %v3674_v60  ;;  %v3413_v10 = vadd.f32 %v7071_v49, %v3412_v55 }
 0x485   : > { %3705 = vst.msk [vmem:[%s7090_s22 + $0x30] sm:$0xff] %vm2291_vm2, %v3673_v41  ;;  %vm3540_vm11 = vcmp.ge.f32.partialorder %v3418_v31, 0.0  ;;  %v3572_v28 = vmul.f32 0.01, %v3418_v31 }
 0x486   : > { %vm3539_vm7 = vcmp.ge.f32.partialorder %v3413_v10, 0.0  ;;  %v3571_v62 = vmul.f32 0.01, %v3413_v10 }
 0x487   : > { %v3604_v57 = vsel %vm3540_vm11, %v3418_v31, %v3572_v28 }
 0x488   : > { %v3640_v17 = vmul.f32 %v7078_v1, %v3604_v57  ;;  %v3603_v36 = vsel %vm3539_vm7, %v3413_v10, %v3571_v62 }
 0x489   : > { %v3639_v35 = vmul.f32 %v7078_v1, %v3603_v36 }
 0x48a   : > { %v3676_v7 = vadd.f32 %v7083_v37, %v3640_v17  ;;  %v4429_v40 = vpop.f32.mrb[90].mxu1 }
 0x48b   : > { %v3675_v39 = vadd.f32 %v7083_v37, %v3639_v35  ;;  %v3428_v51 = vadd.f32 %v4429_v40, %v7071_v49  ;;  %v3422_v58 = vpop.f32.mrb[91].mxu1 }
 0x48c   : > { %3708 = vst.msk [vmem:[%s7090_s22 + $0x48] sm:$0xff] %vm2291_vm2, %v3676_v7  ;;  %v3423_v59 = vadd.f32 %v7071_v49, %v3422_v58 }
 0x48d   : > { %3707 = vst.msk [vmem:[%s7090_s22 + $0x40] sm:$0xff] %vm2291_vm2, %v3675_v39  ;;  %vm3542_vm14 = vcmp.ge.f32.partialorder %v3428_v51, 0.0  ;;  %v3574_v5 = vmul.f32 0.01, %v3428_v51 }
 0x48e   : > { %vm3541_vm3 = vcmp.ge.f32.partialorder %v3423_v59, 0.0  ;;  %v3573_v34 = vmul.f32 0.01, %v3423_v59 }
 0x48f   : > { %v3606_v56 = vsel %vm3542_vm14, %v3428_v51, %v3574_v5 }
 0x490   : > { %v3642_v14 = vmul.f32 %v7078_v1, %v3606_v56  ;;  %v3605_v20 = vsel %vm3541_vm3, %v3423_v59, %v3573_v34 }
 0x491   : > { %v3641_v50 = vmul.f32 %v7078_v1, %v3605_v20 }
 0x492   : > { %v3678_v29 = vadd.f32 %v7083_v37, %v3642_v14  ;;  %v4432_v3 = vpop.f32.mrb[92].mxu1 }
 0x493   : > { %v3677_v44 = vadd.f32 %v7083_v37, %v3641_v50  ;;  %v3438_v19 = vadd.f32 %v4432_v3, %v7071_v49  ;;  %v3432_v47 = vpop.f32.mrb[93].mxu1 }
 0x494   : > { %3710 = vst.msk [vmem:[%s7090_s22 + $0x58] sm:$0xff] %vm2291_vm2, %v3678_v29  ;;  %v3433_v48 = vadd.f32 %v7071_v49, %v3432_v47 }
 0x495   : > { %3709 = vst.msk [vmem:[%s7090_s22 + $0x50] sm:$0xff] %vm2291_vm2, %v3677_v44  ;;  %vm3544_vm6 = vcmp.ge.f32.partialorder %v3438_v19, 0.0  ;;  %v3576_v23 = vmul.f32 0.01, %v3438_v19 }
 0x496   : > { %vm3543_vm4 = vcmp.ge.f32.partialorder %v3433_v48, 0.0  ;;  %v3575_v26 = vmul.f32 0.01, %v3433_v48 }
 0x497   : > { %v3608_v6 = vsel %vm3544_vm6, %v3438_v19, %v3576_v23 }
 0x498   : > { %v3644_v53 = vmul.f32 %v7078_v1, %v3608_v6  ;;  %v3607_v15 = vsel %vm3543_vm4, %v3433_v48, %v3575_v26 }
 0x499   : > { %v3643_v32 = vmul.f32 %v7078_v1, %v3607_v15 }
 0x49a   : > { %v3680_v43 = vadd.f32 %v7083_v37, %v3644_v53  ;;  %v4435_v22 = vpop.f32.mrb[94].mxu1 }
 0x49b   : > { %v3679_v52 = vadd.f32 %v7083_v37, %v3643_v32  ;;  %v3448_v27 = vadd.f32 %v4435_v22, %v7071_v49  ;;  %v3442_v8 = vpop.f32.mrb[95].mxu1 }
 0x49c   : > { %3712 = vst.msk [vmem:[%s7090_s22 + $0x68] sm:$0xff] %vm2291_vm2, %v3680_v43  ;;  %v3443_v9 = vadd.f32 %v7071_v49, %v3442_v8 }
 0x49d   : > { %3711 = vst.msk [vmem:[%s7090_s22 + $0x60] sm:$0xff] %vm2291_vm2, %v3679_v52  ;;  %vm3546_vm0 = vcmp.ge.f32.partialorder %v3448_v27, 0.0  ;;  %v3578_v11 = vmul.f32 0.01, %v3448_v27 }
 0x49e   : > { %vm3545_vm5 = vcmp.ge.f32.partialorder %v3443_v9, 0.0  ;;  %v3577_v38 = vmul.f32 0.01, %v3443_v9 }
 0x49f   : > { %v3610_v4 = vsel %vm3546_vm0, %v3448_v27, %v3578_v11 }
 0x4a0   : > { %v3646_v30 = vmul.f32 %v7078_v1, %v3610_v4  ;;  %v3609_v33 = vsel %vm3545_vm5, %v3443_v9, %v3577_v38 }
 0x4a1   : > { %v3645_v18 = vmul.f32 %v7078_v1, %v3609_v33 }
 0x4a2   : > { %v3682_v2 = vadd.f32 %v7083_v37, %v3646_v30  ;;  %v4438_v63 = vpop.f32.mrb[96].mxu1 }
 0x4a3   : > { %v3681_v25 = vadd.f32 %v7083_v37, %v3645_v18  ;;  %v3458_v12 = vadd.f32 %v4438_v63, %v7071_v49  ;;  %v3452_v16 = vpop.f32.mrb[97].mxu1 }
 0x4a4   : > { %3714 = vst.msk [vmem:[%s7090_s22 + $0x78] sm:$0xff] %vm2291_vm2, %v3682_v2  ;;  %v3453_v46 = vadd.f32 %v7071_v49, %v3452_v16 }
 0x4a5   : > { %3713 = vst.msk [vmem:[%s7090_s22 + $0x70] sm:$0xff] %vm2291_vm2, %v3681_v25  ;;  %vm3548_vm13 = vcmp.ge.f32.partialorder %v3458_v12, 0.0  ;;  %v3580_v42 = vmul.f32 0.01, %v3458_v12 }
 0x4a6   : > { %vm3547_vm8 = vcmp.ge.f32.partialorder %v3453_v46, 0.0  ;;  %v3579_v45 = vmul.f32 0.01, %v3453_v46 }
 0x4a7   : > { %v3612_v54 = vsel %vm3548_vm13, %v3458_v12, %v3580_v42 }
 0x4a8   : > { %v3648_v61 = vmul.f32 %v7078_v1, %v3612_v54  ;;  %v3611_v0 = vsel %vm3547_vm8, %v3453_v46, %v3579_v45 }
 0x4a9   : > { %v3647_v13 = vmul.f32 %v7078_v1, %v3611_v0 }
 0x4aa   : > { %v3684_v24 = vadd.f32 %v7083_v37, %v3648_v61  ;;  %v4441_v60 = vpop.f32.mrb[98].mxu1 }
 0x4ab   : > { %v3683_v21 = vadd.f32 %v7083_v37, %v3647_v13  ;;  %v3468_v41 = vadd.f32 %v4441_v60, %v7071_v49  ;;  %v3462_v31 = vpop.f32.mrb[99].mxu1 }
 0x4ac   : > { %3716 = vst.msk [vmem:[%s7090_s22 + $0x88] sm:$0xff] %vm2291_vm2, %v3684_v24  ;;  %v3463_v55 = vadd.f32 %v7071_v49, %v3462_v31 }
 0x4ad   : > { %3715 = vst.msk [vmem:[%s7090_s22 + $0x80] sm:$0xff] %vm2291_vm2, %v3683_v21  ;;  %vm3550_vm15 = vcmp.ge.f32.partialorder %v3468_v41, 0.0  ;;  %v3582_v10 = vmul.f32 0.01, %v3468_v41 }
 0x4ae   : > { %vm3549_vm9 = vcmp.ge.f32.partialorder %v3463_v55, 0.0  ;;  %v3581_v28 = vmul.f32 0.01, %v3463_v55 }
 0x4af   : > { %v3614_v62 = vsel %vm3550_vm15, %v3468_v41, %v3582_v10 }
 0x4b0   : > { %v3650_v57 = vmul.f32 %v7078_v1, %v3614_v62  ;;  %v3613_v17 = vsel %vm3549_vm9, %v3463_v55, %v3581_v28 }
 0x4b1   : > { %v3649_v36 = vmul.f32 %v7078_v1, %v3613_v17 }
 0x4b2   : > { %v3686_v35 = vadd.f32 %v7083_v37, %v3650_v57  ;;  %v4444_v7 = vpop.f32.mrb[100].mxu1 }
 0x4b3   : > { %v3685_v40 = vadd.f32 %v7083_v37, %v3649_v36  ;;  %v3478_v39 = vadd.f32 %v4444_v7, %v7071_v49  ;;  %v3472_v51 = vpop.f32.mrb[101].mxu1 }
 0x4b4   : > { %3718 = vst.msk [vmem:[%s7090_s22 + $0x98] sm:$0xff] %vm2291_vm2, %v3686_v35  ;;  %v3473_v58 = vadd.f32 %v7071_v49, %v3472_v51 }
 0x4b5   : > { %3717 = vst.msk [vmem:[%s7090_s22 + $0x90] sm:$0xff] %vm2291_vm2, %v3685_v40  ;;  %vm3552_vm10 = vcmp.ge.f32.partialorder %v3478_v39, 0.0  ;;  %v3584_v59 = vmul.f32 0.01, %v3478_v39 }
 0x4b6   : > { %vm3551_vm1 = vcmp.ge.f32.partialorder %v3473_v58, 0.0  ;;  %v3583_v5 = vmul.f32 0.01, %v3473_v58 }
 0x4b7   : > { %v3616_v34 = vsel %vm3552_vm10, %v3478_v39, %v3584_v59 }
 0x4b8   : > { %v3652_v56 = vmul.f32 %v7078_v1, %v3616_v34  ;;  %v3615_v14 = vsel %vm3551_vm1, %v3473_v58, %v3583_v5 }
 0x4b9   : > { %v3651_v20 = vmul.f32 %v7078_v1, %v3615_v14 }
 0x4ba   : > { %v3688_v50 = vadd.f32 %v7083_v37, %v3652_v56  ;;  %v4447_v29 = vpop.f32.mrb[102].mxu1 }
 0x4bb   : > { %v3687_v3 = vadd.f32 %v7083_v37, %v3651_v20  ;;  %v3488_v44 = vadd.f32 %v4447_v29, %v7071_v49  ;;  %v3482_v19 = vpop.f32.mrb[103].mxu1 }
 0x4bc   : > { %3720 = vst.msk [vmem:[%s7090_s22 + $0xa8] sm:$0xff] %vm2291_vm2, %v3688_v50  ;;  %v3483_v47 = vadd.f32 %v7071_v49, %v3482_v19 }
 0x4bd   : > { %3719 = vst.msk [vmem:[%s7090_s22 + $0xa0] sm:$0xff] %vm2291_vm2, %v3687_v3  ;;  %vm3554_vm12 = vcmp.ge.f32.partialorder %v3488_v44, 0.0  ;;  %v3586_v48 = vmul.f32 0.01, %v3488_v44 }
 0x4be   : > { %vm3553_vm11 = vcmp.ge.f32.partialorder %v3483_v47, 0.0  ;;  %v3585_v23 = vmul.f32 0.01, %v3483_v47 }
 0x4bf   : > { %v3618_v26 = vsel %vm3554_vm12, %v3488_v44, %v3586_v48 }
 0x4c0   : > { %v3654_v6 = vmul.f32 %v7078_v1, %v3618_v26  ;;  %v3617_v53 = vsel %vm3553_vm11, %v3483_v47, %v3585_v23 }
 0x4c1   : > { %v3653_v15 = vmul.f32 %v7078_v1, %v3617_v53 }
 0x4c2   : > { %v3690_v32 = vadd.f32 %v7083_v37, %v3654_v6 }
 0x4c3   : > { %v3689_v43 = vadd.f32 %v7083_v37, %v3653_v15 }
 0x4c4   : > { %3722 = vst.msk [vmem:[%s7090_s22 + $0xb8] sm:$0xff] %vm2291_vm2, %v3690_v32  ;;  %v4450_v22 = vpop.f32.mrb[104].mxu1 }
 0x4c5   : > { %3721 = vst.msk [vmem:[%s7090_s22 + $0xb0] sm:$0xff] %vm2291_vm2, %v3689_v43  ;;  %v3498_v52 = vadd.f32 %v4450_v22, %v7071_v49  ;;  %v3492_v27 = vpop.f32.mrb[105].mxu1 }
 0x4c6   : > { %v3493_v8 = vadd.f32 %v7071_v49, %v3492_v27 }
 0x4c7   : > { %vm3556_vm7 = vcmp.ge.f32.partialorder %v3498_v52, 0.0  ;;  %v3588_v9 = vmul.f32 0.01, %v3498_v52 }
 0x4c8   : > { %vm3555_vm14 = vcmp.ge.f32.partialorder %v3493_v8, 0.0  ;;  %v3587_v11 = vmul.f32 0.01, %v3493_v8 }
 0x4c9   : > { %v3620_v38 = vsel %vm3556_vm7, %v3498_v52, %v3588_v9 }
 0x4ca   : > { %v3656_v4 = vmul.f32 %v7078_v1, %v3620_v38  ;;  %v3619_v30 = vsel %vm3555_vm14, %v3493_v8, %v3587_v11 }
 0x4cb   : > { %v3655_v33 = vmul.f32 %v7078_v1, %v3619_v30 }
 0x4cc   : > { %v3692_v18 = vadd.f32 %v7083_v37, %v3656_v4  ;;  %v4453_v2 = vpop.f32.mrb[106].mxu1 }
 0x4cd   : > { %v3691_v63 = vadd.f32 %v7083_v37, %v3655_v33  ;;  %v3508_v25 = vadd.f32 %v4453_v2, %v7071_v49  ;;  %v3502_v12 = vpop.f32.mrb[107].mxu1 }
 0x4ce   : > { %3724 = vst.msk [vmem:[%s7090_s22 + $0xc8] sm:$0xff] %vm2291_vm2, %v3692_v18  ;;  %v3503_v16 = vadd.f32 %v7071_v49, %v3502_v12 }
 0x4cf   : > { %3723 = vst.msk [vmem:[%s7090_s22 + $0xc0] sm:$0xff] %vm2291_vm2, %v3691_v63  ;;  %vm3558_vm3 = vcmp.ge.f32.partialorder %v3508_v25, 0.0  ;;  %v3590_v46 = vmul.f32 0.01, %v3508_v25 }
 0x4d0   : > { %vm3557_vm6 = vcmp.ge.f32.partialorder %v3503_v16, 0.0  ;;  %v3589_v42 = vmul.f32 0.01, %v3503_v16 }
 0x4d1   : > { %v3622_v45 = vsel %vm3558_vm3, %v3508_v25, %v3590_v46 }
 0x4d2   : > { %v3658_v54 = vmul.f32 %v7078_v1, %v3622_v45  ;;  %v3621_v61 = vsel %vm3557_vm6, %v3503_v16, %v3589_v42 }
 0x4d3   : > { %v3657_v0 = vmul.f32 %v7078_v1, %v3621_v61 }
 0x4d4   : > { %v3694_v13 = vadd.f32 %v7083_v37, %v3658_v54  ;;  %v4456_v24 = vpop.f32.mrb[108].mxu1 }
 0x4d5   : > { %v3693_v60 = vadd.f32 %v7083_v37, %v3657_v0  ;;  %v3518_v21 = vadd.f32 %v4456_v24, %v7071_v49  ;;  %v3512_v41 = vpop.f32.mrb[109].mxu1 }
 0x4d6   : > { %3726 = vst.msk [vmem:[%s7090_s22 + $0xd8] sm:$0xff] %vm2291_vm2, %v3694_v13  ;;  %v3513_v31 = vadd.f32 %v7071_v49, %v3512_v41 }
 0x4d7   : > { %3725 = vst.msk [vmem:[%s7090_s22 + $0xd0] sm:$0xff] %vm2291_vm2, %v3693_v60  ;;  %vm3560_vm4 = vcmp.ge.f32.partialorder %v3518_v21, 0.0  ;;  %v3592_v55 = vmul.f32 0.01, %v3518_v21 }
 0x4d8   : > { %vm3559_vm0 = vcmp.ge.f32.partialorder %v3513_v31, 0.0  ;;  %v3591_v10 = vmul.f32 0.01, %v3513_v31 }
 0x4d9   : > { %v3624_v28 = vsel %vm3560_vm4, %v3518_v21, %v3592_v55 }
 0x4da   : > { %v3660_v62 = vmul.f32 %v7078_v1, %v3624_v28  ;;  %v3623_v57 = vsel %vm3559_vm0, %v3513_v31, %v3591_v10 }
 0x4db   : > { %v3659_v17 = vmul.f32 %v7078_v1, %v3623_v57 }
 0x4dc   : > { %v3696_v36 = vadd.f32 %v7083_v37, %v3660_v62  ;;  %v4459_v35 = vpop.f32.mrb[110].mxu1 }
 0x4dd   : > { %v3695_v7 = vadd.f32 %v7083_v37, %v3659_v17  ;;  %v3528_v40 = vadd.f32 %v4459_v35, %v7071_v49  ;;  %v3522_v39 = vpop.f32.mrb[111].mxu1 }
 0x4de   : > { %3728 = vst.msk [vmem:[%s7090_s22 + $0xe8] sm:$0xff] %vm2291_vm2, %v3696_v36  ;;  %v3523_v51 = vadd.f32 %v7071_v49, %v3522_v39 }
 0x4df   : > { %3727 = vst.msk [vmem:[%s7090_s22 + $0xe0] sm:$0xff] %vm2291_vm2, %v3695_v7  ;;  %vm3562_vm5 = vcmp.ge.f32.partialorder %v3528_v40, 0.0  ;;  %v3594_v58 = vmul.f32 0.01, %v3528_v40 }
 0x4e0   : > { %vm3561_vm13 = vcmp.ge.f32.partialorder %v3523_v51, 0.0  ;;  %v3593_v59 = vmul.f32 0.01, %v3523_v51 }
 0x4e1   : > { %v3626_v5 = vsel %vm3562_vm5, %v3528_v40, %v3594_v58 }
 0x4e2   : > { %v3662_v34 = vmul.f32 %v7078_v1, %v3626_v5  ;;  %v3625_v56 = vsel %vm3561_vm13, %v3523_v51, %v3593_v59 }
 0x4e3   : > { %v3661_v14 = vmul.f32 %v7078_v1, %v3625_v56 }
 0x4e4   : > { %v3698_v20 = vadd.f32 %v7083_v37, %v3662_v34 }
 0x4e5   : > { %v3697_v50 = vadd.f32 %v7083_v37, %v3661_v14 }
 0x4e6   : > { %3730 = vst.msk [vmem:[%s7090_s22 + $0xf8] sm:$0xff] %vm2291_vm2, %v3698_v20 }
 0x4e7   : > { %3729 = vst.msk [vmem:[%s7090_s22 + $0xf0] sm:$0xff] %vm2291_vm2, %v3697_v50 }
 0x4e8 PF: > { %s19_s30 = sadd.s32 1, %s4687_s30  }
 0x4e9   : > { %p16_p4 = scmp.ge.s32.totalorder %s19_s30, 6  }
 0x4eb   :  { %18 = sbr.rel (!%p16_p4) target bundleno = 1 (0x1), region = 92 }

</bundles_post_ra>
